<compile_context>
chip_gen: v7x
topology: tpu7x:2x2x1
jax: 0.10.0
libtpu: 0.0.40
codegen_flags: <defaults>
</compile_context>

<pallas_src>
import functools

import jax
import jax.numpy as jnp
from jax import lax
from jax.experimental import pallas as pl
from jax.experimental.pallas import tpu as pltpu

_CIN_PAD = 8  # pad the 3 input channels up to one sublane group


def _fused_model_kernel(x_ref, w1_ref, b1_ref, w2_ref, b2_ref, o_ref,
                        xpad_ref, y1pad_ref, *, H, W):
    """conv3x3(3->32)+ReLU then conv3x3(32->64)+ReLU+1 for one NCHW image.

    x_ref    : (1, Cin, H*W)        NCHW image, spatial flattened (lane-dense)
    w1_ref   : (9*_CIN_PAD, C1)     im2col conv1 weights (rows ordered kh,kw,ci)
    b1_ref   : (1, C1)
    w2_ref   : (9*C1, C2)           im2col conv2 weights
    b2_ref   : (1, C2)
    o_ref    : (1, C2, H*W)         NCHW output, spatial flattened (lane-dense)
    xpad_ref : (H+2, W+2, _CIN_PAD) VMEM scratch: zero-padded NHWC input
    y1pad_ref: (H+2, W+2, C1)       VMEM scratch: zero-padded NHWC conv1 act.
    """
    Cin = x_ref.shape[1]
    C1 = b1_ref.shape[1]
    HW = H * W

    # In-kernel "same" padding: zero the scratches every grid step (safe under
    # megacore grid splitting), then overwrite the interior.
    xpad_ref[...] = jnp.zeros_like(xpad_ref)
    y1pad_ref[...] = jnp.zeros_like(y1pad_ref)

    # NCHW -> padded NHWC (channels padded 3 -> 8 so the transpose stays
    # sublane-aligned; the padded channels are zero and their weights are zero).
    x_cm = x_ref[0]                                               # (Cin, HW)
    x_cm = jnp.concatenate(
        [x_cm, jnp.zeros((_CIN_PAD - Cin, HW), jnp.float32)], axis=0)
    xpad_ref[1:H + 1, 1:W + 1, :] = x_cm.T.reshape(H, W, _CIN_PAD)

    # conv1 as a single im2col matmul: (HW, 72) @ (72, 32).
    p1 = jnp.concatenate(
        [xpad_ref[kh:kh + H, kw:kw + W, :].reshape(HW, _CIN_PAD)
         for kh in range(3) for kw in range(3)], axis=1)
    y1 = jnp.dot(p1, w1_ref[...], preferred_element_type=jnp.float32)
    y1 = jnp.maximum(y1 + b1_ref[...], 0.0)                       # (HW, C1)

    # Intermediate stays on-chip; re-pad it in VMEM for conv2.
    y1pad_ref[1:H + 1, 1:W + 1, :] = y1.reshape(H, W, C1)

    # conv2 as a single im2col matmul: (HW, 288) @ (288, 64).
    p2 = jnp.concatenate(
        [y1pad_ref[kh:kh + H, kw:kw + W, :].reshape(HW, C1)
         for kh in range(3) for kw in range(3)], axis=1)
    y2 = jnp.dot(p2, w2_ref[...], preferred_element_type=jnp.float32)
    y2 = jnp.maximum(y2 + b2_ref[...], 0.0) + 1.0                 # (HW, C2)

    # Emit NCHW directly: (C2, HW) = (64, 256) -> full unmasked lane-dense store.
    o_ref[0] = y2.T.astype(o_ref.dtype)


def simple_model_fused(x_nchw, w1_hwio, b1, w2_hwio, b2):
    """Fused forward: NCHW in, NCHW out, one pallas_call."""
    N, Cin, H, W = x_nchw.shape
    C1 = w1_hwio.shape[3]
    C2 = w2_hwio.shape[3]
    HW = H * W

    # Free, contiguous reshape: NCHW -> (N, Cin, H*W).
    x_flat = x_nchw.reshape(N, Cin, HW)
    # Tiny one-time weight repacks (outside the kernel).
    w1_mat = jnp.pad(
        w1_hwio, ((0, 0), (0, 0), (0, _CIN_PAD - Cin), (0, 0))
    ).reshape(9 * _CIN_PAD, C1)
    w2_mat = w2_hwio.reshape(9 * C1, C2)
    b1_2d = b1.reshape(1, C1)
    b2_2d = b2.reshape(1, C2)

    kernel = functools.partial(_fused_model_kernel, H=H, W=W)
    out_flat = pl.pallas_call(
        kernel,
        out_shape=jax.ShapeDtypeStruct((N, C2, HW), jnp.float32),
        grid=(N,),
        in_specs=[
            pl.BlockSpec((1, Cin, HW), lambda n: (n, 0, 0)),
            pl.BlockSpec((9 * _CIN_PAD, C1), lambda n: (0, 0)),
            pl.BlockSpec((1, C1), lambda n: (0, 0)),
            pl.BlockSpec((9 * C1, C2), lambda n: (0, 0)),
            pl.BlockSpec((1, C2), lambda n: (0, 0)),
        ],
        out_specs=pl.BlockSpec((1, C2, HW), lambda n: (n, 0, 0)),
        scratch_shapes=[
            pltpu.VMEM((H + 2, W + 2, _CIN_PAD), jnp.float32),
            pltpu.VMEM((H + 2, W + 2, C1), jnp.float32),
        ],
        compiler_params=pltpu.CompilerParams(
            dimension_semantics=("parallel",),
        ),
    )(x_flat, w1_mat, b1_2d, w2_mat, b2_2d)

    # Free reshape back to NCHW (N, 64, H, W).
    return out_flat.reshape(N, C2, H, W)


def init_params(key):
    """Deterministic params matching the PyTorch module's shapes (HWIO)."""
    k1, k2, k3, k4 = jax.random.split(key, 4)
    w1 = jax.random.normal(k1, (3, 3, 3, 32), jnp.float32) * 0.1
    b1 = jax.random.normal(k2, (32,), jnp.float32) * 0.1
    w2 = jax.random.normal(k3, (3, 3, 32, 64), jnp.float32) * 0.1
    b2 = jax.random.normal(k4, (64,), jnp.float32) * 0.1
    return w1, b1, w2, b2


@jax.jit
def simple_model_forward(x_nchw, w1, b1, w2, b2):
    """Forward pass mirroring SimpleModel.forward: NCHW in, NCHW out."""
    return simple_model_fused(x_nchw, w1, b1, w2, b2)


def _reference_forward(x_nchw, w1, b1, w2, b2):
    """Pure-JAX reference (lax.conv) for correctness checking."""
    dn = ("NHWC", "HWIO", "NHWC")
    x = jnp.transpose(x_nchw, (0, 2, 3, 1))
    x = lax.conv_general_dilated(x, w1, (1, 1), "SAME", dimension_numbers=dn) + b1
    x = jnp.maximum(x, 0.0)
    x = lax.conv_general_dilated(x, w2, (1, 1), "SAME", dimension_numbers=dn) + b2
    x = jnp.maximum(x, 0.0) + 1.0
    return jnp.transpose(x, (0, 3, 1, 2))


if __name__ == "__main__":
    key = jax.random.PRNGKey(0)
    kx, kp = jax.random.split(key)

    # Small NCHW input consistent with Conv2d(3, 32, ...): batch=2, C=3, 16x16.
    x = jax.random.normal(kx, (2, 3, 16, 16), jnp.float32)
    w1, b1, w2, b2 = init_params(kp)

    out = simple_model_forward(x, w1, b1, w2, b2)
    out = jax.block_until_ready(out)

    ref = _reference_forward(x, w1, b1, w2, b2)
    assert out.shape == (2, 64, 16, 16), out.shape
    assert jnp.allclose(out, ref, atol=1e-3, rtol=1e-3), "mismatch vs reference"

    print("KERNEL_OK")
</pallas_src>

<mosaic_0001>
module attributes {stable_mosaic.version = 11 : i64} {
  func.func @_fused_model_kernel(%arg0: i32, %arg1: memref<1x3x256xf32, #tpu.memory_space<vmem>>, %arg2: memref<72x32xf32, #tpu.memory_space<vmem>>, %arg3: memref<1x32xf32, #tpu.memory_space<vmem>>, %arg4: memref<288x64xf32, #tpu.memory_space<vmem>>, %arg5: memref<1x64xf32, #tpu.memory_space<vmem>>, %arg6: memref<1x64x256xf32, #tpu.memory_space<vmem>>, %arg7: memref<18x18x8xf32, #tpu.memory_space<vmem>>, %arg8: memref<18x18x32xf32, #tpu.memory_space<vmem>>) attributes {dimension_semantics = [#tpu.dimension_semantics<parallel>], iteration_bounds = array<i64: 2>, scalar_prefetch = 0 : i64, scratch_operands = 2 : i64, tpu.core_type = #tpu.core_type<tc>, window_params = [{transform_indices = @transform_0, window_bounds = array<i64: 1, 3, 256>}, {pipeline_mode = #tpu.pipeline_mode<synchronous>, transform_indices = @transform_1, window_bounds = array<i64: 72, 32>}, {pipeline_mode = #tpu.pipeline_mode<synchronous>, transform_indices = @transform_2, window_bounds = array<i64: 1, 32>}, {pipeline_mode = #tpu.pipeline_mode<synchronous>, transform_indices = @transform_3, window_bounds = array<i64: 288, 64>}, {pipeline_mode = #tpu.pipeline_mode<synchronous>, transform_indices = @transform_4, window_bounds = array<i64: 1, 64>}, {transform_indices = @transform_5, window_bounds = array<i64: 1, 64, 256>}]} {
    %cst = arith.constant 0.000000e+00 : f32
    %0 = vector.broadcast %cst : f32 to vector<18x18x8xf32>
    %c0 = arith.constant 0 : index
    %c0_0 = arith.constant 0 : index
    %c0_1 = arith.constant 0 : index
    %1 = vector.load %arg7[%c0, %c0_0, %c0_1] : memref<18x18x8xf32, #tpu.memory_space<vmem>>, vector<18x18x8xf32>
    tpu.vector_store %arg7[%c0, %c0_0, %c0_1], %0 {strides = array<i32>} : memref<18x18x8xf32, #tpu.memory_space<vmem>>, vector<18x18x8xf32>,
    %cst_2 = arith.constant 0.000000e+00 : f32
    %2 = vector.broadcast %cst_2 : f32 to vector<18x18x32xf32>
    %c0_3 = arith.constant 0 : index
    %c0_4 = arith.constant 0 : index
    %c0_5 = arith.constant 0 : index
    %3 = vector.load %arg8[%c0_3, %c0_4, %c0_5] : memref<18x18x32xf32, #tpu.memory_space<vmem>>, vector<18x18x32xf32>
    tpu.vector_store %arg8[%c0_3, %c0_4, %c0_5], %2 {strides = array<i32>} : memref<18x18x32xf32, #tpu.memory_space<vmem>>, vector<18x18x32xf32>,
    %c0_6 = arith.constant 0 : index
    %c0_7 = arith.constant 0 : index
    %c0_8 = arith.constant 0 : index
    %4 = vector.load %arg1[%c0_6, %c0_7, %c0_8] : memref<1x3x256xf32, #tpu.memory_space<vmem>>, vector<1x3x256xf32>
    %5 = vector.shape_cast %4 : vector<1x3x256xf32> to vector<3x256xf32>
    %cst_9 = arith.constant 0.000000e+00 : f32
    %6 = vector.broadcast %cst_9 : f32 to vector<5x256xf32>
    %7 = tpu.concatenate %5, %6 in 0 : vector<3x256xf32>, vector<5x256xf32> -> vector<8x256xf32>
    %8 = tpu.transpose %7, [1, 0] : vector<8x256xf32> -> vector<256x8xf32>
    %9 = vector.shape_cast %8 : vector<256x8xf32> to vector<16x16x8xf32>
    %c1 = arith.constant 1 : index
    %c1_10 = arith.constant 1 : index
    %c0_11 = arith.constant 0 : index
    %10 = vector.load %arg7[%c1, %c1_10, %c0_11] : memref<18x18x8xf32, #tpu.memory_space<vmem>>, vector<16x16x8xf32>
    tpu.vector_store %arg7[%c1, %c1_10, %c0_11], %9 {strides = array<i32>} : memref<18x18x8xf32, #tpu.memory_space<vmem>>, vector<16x16x8xf32>,
    %c0_12 = arith.constant 0 : index
    %c0_13 = arith.constant 0 : index
    %c0_14 = arith.constant 0 : index
    %11 = vector.load %arg7[%c0_12, %c0_13, %c0_14] : memref<18x18x8xf32, #tpu.memory_space<vmem>>, vector<16x16x8xf32>
    %12 = vector.shape_cast %11 : vector<16x16x8xf32> to vector<256x8xf32>
    %c0_15 = arith.constant 0 : index
    %c1_16 = arith.constant 1 : index
    %c0_17 = arith.constant 0 : index
    %13 = vector.load %arg7[%c0_15, %c1_16, %c0_17] : memref<18x18x8xf32, #tpu.memory_space<vmem>>, vector<16x16x8xf32>
    %14 = vector.shape_cast %13 : vector<16x16x8xf32> to vector<256x8xf32>
    %c0_18 = arith.constant 0 : index
    %c2 = arith.constant 2 : index
    %c0_19 = arith.constant 0 : index
    %15 = vector.load %arg7[%c0_18, %c2, %c0_19] : memref<18x18x8xf32, #tpu.memory_space<vmem>>, vector<16x16x8xf32>
    %16 = vector.shape_cast %15 : vector<16x16x8xf32> to vector<256x8xf32>
    %c1_20 = arith.constant 1 : index
    %c0_21 = arith.constant 0 : index
    %c0_22 = arith.constant 0 : index
    %17 = vector.load %arg7[%c1_20, %c0_21, %c0_22] : memref<18x18x8xf32, #tpu.memory_space<vmem>>, vector<16x16x8xf32>
    %18 = vector.shape_cast %17 : vector<16x16x8xf32> to vector<256x8xf32>
    %c1_23 = arith.constant 1 : index
    %c1_24 = arith.constant 1 : index
    %c0_25 = arith.constant 0 : index
    %19 = vector.load %arg7[%c1_23, %c1_24, %c0_25] : memref<18x18x8xf32, #tpu.memory_space<vmem>>, vector<16x16x8xf32>
    %20 = vector.shape_cast %19 : vector<16x16x8xf32> to vector<256x8xf32>
    %c1_26 = arith.constant 1 : index
    %c2_27 = arith.constant 2 : index
    %c0_28 = arith.constant 0 : index
    %21 = vector.load %arg7[%c1_26, %c2_27, %c0_28] : memref<18x18x8xf32, #tpu.memory_space<vmem>>, vector<16x16x8xf32>
    %22 = vector.shape_cast %21 : vector<16x16x8xf32> to vector<256x8xf32>
    %c2_29 = arith.constant 2 : index
    %c0_30 = arith.constant 0 : index
    %c0_31 = arith.constant 0 : index
    %23 = vector.load %arg7[%c2_29, %c0_30, %c0_31] : memref<18x18x8xf32, #tpu.memory_space<vmem>>, vector<16x16x8xf32>
    %24 = vector.shape_cast %23 : vector<16x16x8xf32> to vector<256x8xf32>
    %c2_32 = arith.constant 2 : index
    %c1_33 = arith.constant 1 : index
    %c0_34 = arith.constant 0 : index
    %25 = vector.load %arg7[%c2_32, %c1_33, %c0_34] : memref<18x18x8xf32, #tpu.memory_space<vmem>>, vector<16x16x8xf32>
    %26 = vector.shape_cast %25 : vector<16x16x8xf32> to vector<256x8xf32>
    %c2_35 = arith.constant 2 : index
    %c2_36 = arith.constant 2 : index
    %c0_37 = arith.constant 0 : index
    %27 = vector.load %arg7[%c2_35, %c2_36, %c0_37] : memref<18x18x8xf32, #tpu.memory_space<vmem>>, vector<16x16x8xf32>
    %28 = vector.shape_cast %27 : vector<16x16x8xf32> to vector<256x8xf32>
    %29 = tpu.concatenate %12, %14, %16, %18, %20, %22, %24, %26, %28 in 1 : vector<256x8xf32>, vector<256x8xf32>, vector<256x8xf32>, vector<256x8xf32>, vector<256x8xf32>, vector<256x8xf32>, vector<256x8xf32>, vector<256x8xf32>, vector<256x8xf32> -> vector<256x72xf32>
    %c0_38 = arith.constant 0 : index
    %c0_39 = arith.constant 0 : index
    %30 = vector.load %arg2[%c0_38, %c0_39] : memref<72x32xf32, #tpu.memory_space<vmem>>, vector<72x32xf32>
    %cst_40 = arith.constant dense<0.000000e+00> : vector<256x32xf32>
    %31 = tpu.matmul %29, %30, %cst_40 {dimension_numbers = #tpu.dot_dimension_numbers<[1], [0], [0], [1], [0, 0, 1, 1], [], []>} : vector<256x72xf32>, vector<72x32xf32>, vector<256x32xf32> -> vector<256x32xf32>
    %c0_41 = arith.constant 0 : index
    %c0_42 = arith.constant 0 : index
    %32 = vector.load %arg3[%c0_41, %c0_42] : memref<1x32xf32, #tpu.memory_space<vmem>>, vector<1x32xf32>
    %33 = vector.broadcast %32 : vector<1x32xf32> to vector<256x32xf32>
    %34 = arith.addf %31, %33 : vector<256x32xf32>
    %cst_43 = arith.constant 0.000000e+00 : f32
    %35 = vector.broadcast %cst_43 : f32 to vector<256x32xf32>
    %36 = arith.maximumf %34, %35 : vector<256x32xf32>
    %37 = vector.shape_cast %36 : vector<256x32xf32> to vector<16x16x32xf32>
    %c1_44 = arith.constant 1 : index
    %c1_45 = arith.constant 1 : index
    %c0_46 = arith.constant 0 : index
    %38 = vector.load %arg8[%c1_44, %c1_45, %c0_46] : memref<18x18x32xf32, #tpu.memory_space<vmem>>, vector<16x16x32xf32>
    tpu.vector_store %arg8[%c1_44, %c1_45, %c0_46], %37 {strides = array<i32>} : memref<18x18x32xf32, #tpu.memory_space<vmem>>, vector<16x16x32xf32>,
    %c0_47 = arith.constant 0 : index
    %c0_48 = arith.constant 0 : index
    %c0_49 = arith.constant 0 : index
    %39 = vector.load %arg8[%c0_47, %c0_48, %c0_49] : memref<18x18x32xf32, #tpu.memory_space<vmem>>, vector<16x16x32xf32>
    %40 = vector.shape_cast %39 : vector<16x16x32xf32> to vector<256x32xf32>
    %c0_50 = arith.constant 0 : index
    %c1_51 = arith.constant 1 : index
    %c0_52 = arith.constant 0 : index
    %41 = vector.load %arg8[%c0_50, %c1_51, %c0_52] : memref<18x18x32xf32, #tpu.memory_space<vmem>>, vector<16x16x32xf32>
    %42 = vector.shape_cast %41 : vector<16x16x32xf32> to vector<256x32xf32>
    %c0_53 = arith.constant 0 : index
    %c2_54 = arith.constant 2 : index
    %c0_55 = arith.constant 0 : index
    %43 = vector.load %arg8[%c0_53, %c2_54, %c0_55] : memref<18x18x32xf32, #tpu.memory_space<vmem>>, vector<16x16x32xf32>
    %44 = vector.shape_cast %43 : vector<16x16x32xf32> to vector<256x32xf32>
    %c1_56 = arith.constant 1 : index
    %c0_57 = arith.constant 0 : index
    %c0_58 = arith.constant 0 : index
    %45 = vector.load %arg8[%c1_56, %c0_57, %c0_58] : memref<18x18x32xf32, #tpu.memory_space<vmem>>, vector<16x16x32xf32>
    %46 = vector.shape_cast %45 : vector<16x16x32xf32> to vector<256x32xf32>
    %c1_59 = arith.constant 1 : index
    %c1_60 = arith.constant 1 : index
    %c0_61 = arith.constant 0 : index
    %47 = vector.load %arg8[%c1_59, %c1_60, %c0_61] : memref<18x18x32xf32, #tpu.memory_space<vmem>>, vector<16x16x32xf32>
    %48 = vector.shape_cast %47 : vector<16x16x32xf32> to vector<256x32xf32>
    %c1_62 = arith.constant 1 : index
    %c2_63 = arith.constant 2 : index
    %c0_64 = arith.constant 0 : index
    %49 = vector.load %arg8[%c1_62, %c2_63, %c0_64] : memref<18x18x32xf32, #tpu.memory_space<vmem>>, vector<16x16x32xf32>
    %50 = vector.shape_cast %49 : vector<16x16x32xf32> to vector<256x32xf32>
    %c2_65 = arith.constant 2 : index
    %c0_66 = arith.constant 0 : index
    %c0_67 = arith.constant 0 : index
    %51 = vector.load %arg8[%c2_65, %c0_66, %c0_67] : memref<18x18x32xf32, #tpu.memory_space<vmem>>, vector<16x16x32xf32>
    %52 = vector.shape_cast %51 : vector<16x16x32xf32> to vector<256x32xf32>
    %c2_68 = arith.constant 2 : index
    %c1_69 = arith.constant 1 : index
    %c0_70 = arith.constant 0 : index
    %53 = vector.load %arg8[%c2_68, %c1_69, %c0_70] : memref<18x18x32xf32, #tpu.memory_space<vmem>>, vector<16x16x32xf32>
    %54 = vector.shape_cast %53 : vector<16x16x32xf32> to vector<256x32xf32>
    %c2_71 = arith.constant 2 : index
    %c2_72 = arith.constant 2 : index
    %c0_73 = arith.constant 0 : index
    %55 = vector.load %arg8[%c2_71, %c2_72, %c0_73] : memref<18x18x32xf32, #tpu.memory_space<vmem>>, vector<16x16x32xf32>
    %56 = vector.shape_cast %55 : vector<16x16x32xf32> to vector<256x32xf32>
    %57 = tpu.concatenate %40, %42, %44, %46, %48, %50, %52, %54, %56 in 1 : vector<256x32xf32>, vector<256x32xf32>, vector<256x32xf32>, vector<256x32xf32>, vector<256x32xf32>, vector<256x32xf32>, vector<256x32xf32>, vector<256x32xf32>, vector<256x32xf32> -> vector<256x288xf32>
    %c0_74 = arith.constant 0 : index
    %c0_75 = arith.constant 0 : index
    %58 = vector.load %arg4[%c0_74, %c0_75] : memref<288x64xf32, #tpu.memory_space<vmem>>, vector<288x64xf32>
    %cst_76 = arith.constant dense<0.000000e+00> : vector<256x64xf32>
    %59 = tpu.matmul %57, %58, %cst_76 {dimension_numbers = #tpu.dot_dimension_numbers<[1], [0], [0], [1], [0, 0, 1, 1], [], []>} : vector<256x288xf32>, vector<288x64xf32>, vector<256x64xf32> -> vector<256x64xf32>
    %c0_77 = arith.constant 0 : index
    %c0_78 = arith.constant 0 : index
    %60 = vector.load %arg5[%c0_77, %c0_78] : memref<1x64xf32, #tpu.memory_space<vmem>>, vector<1x64xf32>
    %61 = vector.broadcast %60 : vector<1x64xf32> to vector<256x64xf32>
    %62 = arith.addf %59, %61 : vector<256x64xf32>
    %cst_79 = arith.constant 0.000000e+00 : f32
    %63 = vector.broadcast %cst_79 : f32 to vector<256x64xf32>
    %64 = arith.maximumf %62, %63 : vector<256x64xf32>
    %cst_80 = arith.constant 1.000000e+00 : f32
    %65 = vector.broadcast %cst_80 : f32 to vector<256x64xf32>
    %66 = arith.addf %64, %65 : vector<256x64xf32>
    %67 = tpu.transpose %66, [1, 0] : vector<256x64xf32> -> vector<64x256xf32>
    %c0_81 = arith.constant 0 : index
    %c0_82 = arith.constant 0 : index
    %c0_83 = arith.constant 0 : index
    %68 = vector.load %arg6[%c0_81, %c0_82, %c0_83] : memref<1x64x256xf32, #tpu.memory_space<vmem>>, vector<1x64x256xf32>
    %69 = vector.shape_cast %68 : vector<1x64x256xf32> to vector<64x256xf32>
    %70 = vector.shape_cast %67 : vector<64x256xf32> to vector<1x64x256xf32>
    tpu.vector_store %arg6[%c0_81, %c0_82, %c0_83], %70 {strides = array<i32>} : memref<1x64x256xf32, #tpu.memory_space<vmem>>, vector<1x64x256xf32>,
    return
  }
  func.func @transform_0(%arg0: i32) -> (i32, i32, i32) {
    %c0_i32 = arith.constant 0 : i32
    %c0_i32_0 = arith.constant 0 : i32
    %c0_i32_1 = arith.constant 0 : i32
    return %arg0, %c0_i32, %c0_i32_0 : i32, i32, i32
  }
  func.func @transform_1(%arg0: i32) -> (i32, i32) {
    %c0_i32 = arith.constant 0 : i32
    %c0_i32_0 = arith.constant 0 : i32
    %c0_i32_1 = arith.constant 0 : i32
    return %c0_i32, %c0_i32_0 : i32, i32
  }
  func.func @transform_2(%arg0: i32) -> (i32, i32) {
    %c0_i32 = arith.constant 0 : i32
    %c0_i32_0 = arith.constant 0 : i32
    %c0_i32_1 = arith.constant 0 : i32
    return %c0_i32, %c0_i32_0 : i32, i32
  }
  func.func @transform_3(%arg0: i32) -> (i32, i32) {
    %c0_i32 = arith.constant 0 : i32
    %c0_i32_0 = arith.constant 0 : i32
    %c0_i32_1 = arith.constant 0 : i32
    return %c0_i32, %c0_i32_0 : i32, i32
  }
  func.func @transform_4(%arg0: i32) -> (i32, i32) {
    %c0_i32 = arith.constant 0 : i32
    %c0_i32_0 = arith.constant 0 : i32
    %c0_i32_1 = arith.constant 0 : i32
    return %c0_i32, %c0_i32_0 : i32, i32
  }
  func.func @transform_5(%arg0: i32) -> (i32, i32, i32) {
    %c0_i32 = arith.constant 0 : i32
    %c0_i32_0 = arith.constant 0 : i32
    %c0_i32_1 = arith.constant 0 : i32
    return %arg0, %c0_i32, %c0_i32_0 : i32, i32, i32
  }
}

</mosaic_0001>

<bundles_post_ra>
// kernel: simple_model_forward.1
= control target key start
LH: loop header
LB: loop body
LE: loop exit
PB: predicated region body
PF: predicated region fallthrough
CT: control target
= control target key end

     0   :  { %10 = vsyncpa [#allocation5], 0  ;;  %s5490_s18 = smov 0   ;;  %s8016_s0 = inlined_call_operand.vmem [shape: f32[2,3,256], index: 0, kind: input, shape index: {}]   ;;  %s8017_s1 = inlined_call_operand.vmem [shape: f32[72,32], index: 1, kind: input, shape index: {}]   ;;  %s8018_s2 = inlined_call_operand.vmem [shape: f32[1,32], index: 2, kind: input, shape index: {}]   ;;  %s8019_s3 = inlined_call_operand.hbm [shape: f32[288,64], index: 3, kind: input, shape index: {}]   ;;  %s8020_s4 = inlined_call_operand.vmem [shape: f32[1,64], index: 4, kind: input, shape index: {}]   ;;  %s8021_s5 = inlined_call_operand.vmem [shape: f32[2,64,256], index: 5, kind: output, shape index: {}]  }
   0x1 LB: > { %s5496_s19 = sadd.s32 4294967295, %s5444_s18   ;;  %p4486_p0 = scmp.ge.s32.totalorder %s5444_s18, 1  ;;  %s5444_s18 = sphi %s5490_s18, %s16_s18  }
   0x2   : > { %p157_p1 = scmp.lt.s32.totalorder %s5444_s18, 3  ;;  %s5446_s20 = smov [#allocation4]  }
   0x3   : > { %s175_s21 = sshll.u32 %s5446_s20, 4  ;;  %p8022_p3 = scmp.eq.s32.totalorder %s5496_s19, 0  ;;  %s176_s21 = int_to_ptr.vmem [resolvable:$true] %s175_s21 }
   0x4   : > { %p5500_p2 = pnand %p4486_p0, %p157_p1  ;;  %s5406_s26 = scalar_lea.hbm %s8019_s3, 4608 }
   0x5   : > { %p5407_p6 = scmp.ne.s32.totalorder %s8019_s3, %s5406_s26  ;;  %p5413_p10 = scmp.lt.u32.totalorder %s5406_s26, %s8019_s3 }
   0x6   : > { %s8029_s22 = scalar_select %p5500_p2, 1, 0 }
   0x7   : > { %p4872_p4 = pneg %p5500_p2 }
   0x9   : > { %p5509_p5 = pnand %p8022_p3, %p4872_p4 }
   0xb   : > { %p5408_p7 = pneg %p5509_p5 }
   0xd   : > { %p5409_p8 = pnand %p5408_p7, %p5407_p6 }
   0xf   : > { %p5410_p9 = pneg %p5409_p8 }
  0x11   : > { %p5415_p11 = pnand %p5413_p10, %p5410_p9 }
  0x13   : > { %5418 = shalt.err (!%p5415_p11)
}
  0x14   : > { %s5419_s6 = scalar_lea.vmem %s176_s21, 4608  ;;  %p5427_p1 = scmp.lt.s32.totalorder %s176_s21, %s176_s21 }
  0x15   : > { %p5420_p12 = scmp.ne.s32.totalorder %s176_s21, %s5419_s6  ;;  %p5428_p4 = scmp.lt.s32.totalorder %s5419_s6, %s5419_s6 }
  0x17   : > { %p5422_p13 = pnand %p5420_p12, %p5408_p7  ;;  %p5429_p3 = por %p5428_p4, %p5427_p1 }
  0x19   : > { %p5423_p0 = pneg %p5422_p13 }
  0x1b   : > { %p5430_p2 = pnand %p5429_p3, %p5423_p0 }
  0x1d   : > { %5433 = shalt.err (!%p5430_p2)
}
  0x1e   : > { %s5447_s7 = smov 128   ;;  %s5448_s8 = smov 8  }
  0x1f   : > { %4875 = dma.hbm_to_vmem [thread:$0]  (!%p5509_p5), %s8019_s3, 4608, %s176_s21, [#allocation5], %s5447_s7, %s5447_s7, %s5448_s8  }
  0x20   : > { %p8031_p6 = scmp.ne.s32.totalorder %s8029_s22, 0 }
  0x22   : > { %202 = sbr.rel (%p8031_p6) target bundleno = 1575 (0x627), region = 40 }
  0x29   : > { %p8032_p8 = scmp.eq.s32.totalorder %s5496_s19, 0 }
  0x2b   : > { %5439 = dma.done.wait (%p8032_p8), [#allocation5], 4608   ;;  %p8033_p7 = pmov %p8032_p8 }
  0x2c   : > { %p230_p3 = scmp.lt.s32.totalorder %s5496_s19, 1  ;;  %vm240_vm0 = vcmask 64512   ;;  %v8024_v0 = vmov 0.0   ;;  %vm356_vm1 = vcmask 1042432   ;;  %vm243_vm2 = vcmask 58368   ;;  %s5450_s15 = smov 8  }
  0x2d   : > { %5441 = vsyncadd (%p8033_p7), [#allocation5], 4294962688  ;;  %245 = vst.msk [vmem:[#allocation2 + $0x18] sm:$0xff] %vm240_vm0, %v8024_v0  ;;  %s5451_s16 = smov 16   ;;  %s5452_s17 = smov 24   ;;  %vm296_vm3 = vcmask 261120  }
  0x2e   : > { %246 = vst.msk [vmem:[#allocation2 + $0x20] sm:$0xff] %vm240_vm0, %v8024_v0  ;;  %241 = vst.msk [vmem:[#allocation2] sm:$0xff] %vm240_vm0, %v8024_v0  ;;  %s8235_s19 = smov (!%p230_p3, %s5496_s19), 1  ;;  %s5453_s20 = smov 32   ;;  %vm1801_vm4 = vcmask 130048   ;;  %vm1834_vm5 = vcmask 195584  }
  0x2f   : > { %242 = vst.msk [vmem:[#allocation2 + $0x8] sm:$0xff] %vm240_vm0, %v8024_v0  ;;  %248 = vst.msk [vmem:[#allocation2 + $0x30] sm:$0xff] %vm240_vm0, %v8024_v0  ;;  %s4563_s11 = sshll.u32 %s8235_s19, 3  ;;  %s5454_s21 = smov 40   ;;  %vm1899_vm6 = vcmask 326656   ;;  %vm1932_vm7 = vcmask 392192  }
  0x30   : > { %249 = vst.msk [vmem:[#allocation2 + $0x38] sm:$0xff] %vm240_vm0, %v8024_v0  ;;  %251 = vst.msk [vmem:[#allocation2 + $0x48] sm:$0xff] %vm240_vm0, %v8024_v0  ;;  %s234_s14 = scalar_lea.vmem %s8016_s0, %s4563_s11  ;;  %s5455_s22 = smov 48   ;;  %vm1965_vm8 = vcmask 457728   ;;  %vm1998_vm9 = vcmask 523264   ;;  %vm2047_vm10 = vcmask 588800  }
  0x31   : > { %252 = vst.msk [vmem:[#allocation2 + $0x50] sm:$0xff] %vm240_vm0, %v8024_v0  ;;  %254 = vst.msk [vmem:[#allocation2 + $0x60] sm:$0xff] %vm240_vm0, %v8024_v0  ;;  %v352_v1 = vld [vmem:[%s234_s14] sm:$0x77]  ;;  %s5456_s23 = smov 56   ;;  %s5457_s7 = smov 64  }
  0x32   : > { %255 = vst.msk [vmem:[#allocation2 + $0x68] sm:$0xff] %vm240_vm0, %v8024_v0  ;;  %257 = vst.msk [vmem:[#allocation2 + $0x78] sm:$0xff] %vm240_vm0, %v8024_v0  ;;  %v357_v2 = vsel %vm356_vm1, %v352_v1, 0.0  ;;  %v354_v5 = vcombine.high %v352_v1, %v352_v1  ;;  %vm299_vm11 = vcmask 254976   ;;  %vm3555_vm12 = vcmask 785408   ;;  %s4564_s27 = sshll.u32 %s8235_s19, 7 }
  0x33   : > { %258 = vst.msk [vmem:[#allocation2 + $0x80] sm:$0xff] %vm240_vm0, %v8024_v0  ;;  %260 = vst.msk [vmem:[#allocation2 + $0x90] sm:$0xff] %vm240_vm0, %v8024_v0  ;;  %359 = vxpose.xlu0.b32.start.end [1/1] (short) %v357_v2, 128  ;;  %s7995_s30 = scalar_lea.vmem %s8021_s5, %s4564_s27 }
  0x34   : > { %261 = vst.msk [vmem:[#allocation2 + $0x98] sm:$0xff] %vm240_vm0, %v8024_v0  ;;  %263 = vst.msk [vmem:[#allocation2 + $0xa8] sm:$0xff] %vm240_vm0, %v8024_v0  ;;  %v358_v6 = vsel %vm356_vm1, %v354_v5, 0.0 }
  0x35   : > { %264 = vst.msk [vmem:[#allocation2 + $0xb0] sm:$0xff] %vm240_vm0, %v8024_v0  ;;  %266 = vst.msk [vmem:[#allocation2 + $0xc0] sm:$0xff] %vm240_vm0, %v8024_v0 }
  0x36   : > { %267 = vst.msk [vmem:[#allocation2 + $0xc8] sm:$0xff] %vm240_vm0, %v8024_v0  ;;  %269 = vst.msk [vmem:[#allocation2 + $0xd8] sm:$0xff] %vm240_vm0, %v8024_v0  ;;  %v488_v3 = vld [vmem:[#allocation2 + $0x1] sm:$0xff] }
  0x37   : > { %270 = vst.msk [vmem:[#allocation2 + $0xe0] sm:$0xff] %vm240_vm0, %v8024_v0  ;;  %272 = vst.msk [vmem:[#allocation2 + $0xf0] sm:$0xff] %vm240_vm0, %v8024_v0  ;;  %777 = vrot.lane.b32.xlu1 %v488_v3, %s5450_s15 }
  0x38   : > { %273 = vst.msk [vmem:[#allocation2 + $0xf8] sm:$0xff] %vm240_vm0, %v8024_v0  ;;  %275 = vst.msk [vmem:[#allocation2 + $0x108] sm:$0xff] %vm240_vm0, %v8024_v0 }
  0x39   : > { %276 = vst.msk [vmem:[#allocation2 + $0x110] sm:$0xff] %vm240_vm0, %v8024_v0  ;;  %278 = vst.msk [vmem:[#allocation2 + $0x120] sm:$0xff] %vm240_vm0, %v8024_v0 }
  0x3a   : > { %279 = vst.msk [vmem:[#allocation2 + $0x128] sm:$0xff] %vm240_vm0, %v8024_v0  ;;  %281 = vst.msk [vmem:[#allocation2 + $0x138] sm:$0xff] %vm240_vm0, %v8024_v0 }
  0x3b   : > { %282 = vst.msk [vmem:[#allocation2 + $0x140] sm:$0xff] %vm240_vm0, %v8024_v0  ;;  %284 = vst.msk [vmem:[#allocation2 + $0x150] sm:$0xff] %vm240_vm0, %v8024_v0 }
  0x3c   : > { %285 = vst.msk [vmem:[#allocation2 + $0x158] sm:$0xff] %vm240_vm0, %v8024_v0  ;;  %287 = vst.msk [vmem:[#allocation2 + $0x168] sm:$0xff] %vm240_vm0, %v8024_v0 }
  0x3d   : > { %288 = vst.msk [vmem:[#allocation2 + $0x170] sm:$0xff] %vm240_vm0, %v8024_v0  ;;  %290 = vst.msk [vmem:[#allocation2 + $0x180] sm:$0xff] %vm240_vm0, %v8024_v0 }
  0x3e   : > { %291 = vst.msk [vmem:[#allocation2 + $0x188] sm:$0xff] %vm240_vm0, %v8024_v0  ;;  %293 = vst.msk [vmem:[#allocation2 + $0x198] sm:$0xff] %vm240_vm0, %v8024_v0 }
  0x3f   : > { %294 = vst.msk [vmem:[#allocation2 + $0x1a0] sm:$0xff] %vm240_vm0, %v8024_v0 }
  0x40   : > { %247 = vst.msk [vmem:[#allocation2 + $0x28] sm:$0x3] %vm243_vm2, %v8024_v0  ;;  %244 = vst.msk [vmem:[#allocation2 + $0x10] sm:$0x3] %vm243_vm2, %v8024_v0 }
  0x41   : > { %250 = vst.msk [vmem:[#allocation2 + $0x40] sm:$0x3] %vm243_vm2, %v8024_v0  ;;  %253 = vst.msk [vmem:[#allocation2 + $0x58] sm:$0x3] %vm243_vm2, %v8024_v0 }
  0x42   : > { %256 = vst.msk [vmem:[#allocation2 + $0x70] sm:$0x3] %vm243_vm2, %v8024_v0  ;;  %259 = vst.msk [vmem:[#allocation2 + $0x88] sm:$0x3] %vm243_vm2, %v8024_v0 }
  0x43   : > { %262 = vst.msk [vmem:[#allocation2 + $0xa0] sm:$0x3] %vm243_vm2, %v8024_v0  ;;  %265 = vst.msk [vmem:[#allocation2 + $0xb8] sm:$0x3] %vm243_vm2, %v8024_v0 }
  0x44   : > { %268 = vst.msk [vmem:[#allocation2 + $0xd0] sm:$0x3] %vm243_vm2, %v8024_v0  ;;  %271 = vst.msk [vmem:[#allocation2 + $0xe8] sm:$0x3] %vm243_vm2, %v8024_v0 }
  0x45   : > { %274 = vst.msk [vmem:[#allocation2 + $0x100] sm:$0x3] %vm243_vm2, %v8024_v0  ;;  %277 = vst.msk [vmem:[#allocation2 + $0x118] sm:$0x3] %vm243_vm2, %v8024_v0 }
  0x46   : > { %280 = vst.msk [vmem:[#allocation2 + $0x130] sm:$0x3] %vm243_vm2, %v8024_v0  ;;  %283 = vst.msk [vmem:[#allocation2 + $0x148] sm:$0x3] %vm243_vm2, %v8024_v0 }
  0x47   : > { %286 = vst.msk [vmem:[#allocation2 + $0x160] sm:$0x3] %vm243_vm2, %v8024_v0  ;;  %289 = vst.msk [vmem:[#allocation2 + $0x178] sm:$0x3] %vm243_vm2, %v8024_v0  ;;  %v489_v4 = vld [vmem:[#allocation2 + $0x9] sm:$0xff] }
  0x48   : > { %292 = vst.msk [vmem:[#allocation2 + $0x190] sm:$0x3] %vm243_vm2, %v8024_v0  ;;  %295 = vst.msk [vmem:[#allocation2 + $0x1a8] sm:$0x3] %vm243_vm2, %v8024_v0  ;;  %779 = vrot.lane.b32.xlu1 %v489_v4, %s5450_s15 }
  0x70   : > { %391 = vxpose.xlu0.b32.start.end [1/1] (short) %v358_v6, 128 }
  0xb3   : > { %v375_v7 = vpop.trf.xlu0 }
  0xb4   : > { %424 = vst.msk [vmem:[#allocation2 + $0x19] sm:$0xff] %vm240_vm0, %v375_v7  ;;  %v5798_v7 = vpop.permute.xlu1 %777 }
  0xb7   : > { %v376_v8 = vpop.trf.xlu0 }
  0xb8   : > { %425 = vst.msk [vmem:[#allocation2 + $0x21] sm:$0xff] %vm240_vm0, %v376_v8 }
  0xbb   : > { %v377_v9 = vpop.trf.xlu0  ;;  %v5659_v10 = vld [vmem:[#allocation2 + $0x19] sm:$0xff] }
  0xbc   : > { %426 = vst.msk [vmem:[#allocation2 + $0x31] sm:$0xff] %vm240_vm0, %v377_v9  ;;  %781 = vrot.lane.b32.xlu1 %v5659_v10, %s5450_s15 }
  0xbf   : > { %v378_v11 = vpop.trf.xlu0  ;;  %v5664_v12 = vld [vmem:[#allocation2 + $0x21] sm:$0xff] }
  0xc0   : > { %427 = vst.msk [vmem:[#allocation2 + $0x39] sm:$0xff] %vm240_vm0, %v378_v11  ;;  %783 = vrot.lane.b32.xlu1 %v5664_v12, %s5450_s15 }
  0xc3   : > { %v379_v13 = vpop.trf.xlu0  ;;  %v5669_v14 = vld [vmem:[#allocation2 + $0x31] sm:$0xff] }
  0xc4   : > { %428 = vst.msk [vmem:[#allocation2 + $0x49] sm:$0xff] %vm240_vm0, %v379_v13  ;;  %785 = vrot.lane.b32.xlu1 %v5669_v14, %s5450_s15 }
  0xc7   : > { %v380_v15 = vpop.trf.xlu0  ;;  %v5674_v16 = vld [vmem:[#allocation2 + $0x39] sm:$0xff] }
  0xc8   : > { %429 = vst.msk [vmem:[#allocation2 + $0x51] sm:$0xff] %vm240_vm0, %v380_v15  ;;  %787 = vrot.lane.b32.xlu1 %v5674_v16, %s5450_s15 }
  0xcb   : > { %v381_v17 = vpop.trf.xlu0  ;;  %v5679_v18 = vld [vmem:[#allocation2 + $0x49] sm:$0xff] }
  0xcc   : > { %430 = vst.msk [vmem:[#allocation2 + $0x61] sm:$0xff] %vm240_vm0, %v381_v17  ;;  %789 = vrot.lane.b32.xlu1 %v5679_v18, %s5450_s15  ;;  %v5805_v17 = vpop.permute.xlu1 %779 }
  0xcf   : > { %v382_v19 = vpop.trf.xlu0  ;;  %v5684_v20 = vld [vmem:[#allocation2 + $0x51] sm:$0xff] }
  0xd0   : > { %431 = vst.msk [vmem:[#allocation2 + $0x69] sm:$0xff] %vm240_vm0, %v382_v19  ;;  %791 = vrot.lane.b32.xlu1 %v5684_v20, %s5450_s15 }
  0xd3   : > { %v383_v21 = vpop.trf.xlu0  ;;  %v5689_v22 = vld [vmem:[#allocation2 + $0x61] sm:$0xff] }
  0xd4   : > { %432 = vst.msk [vmem:[#allocation2 + $0x79] sm:$0xff] %vm240_vm0, %v383_v21  ;;  %793 = vrot.lane.b32.xlu1 %v5689_v22, %s5450_s15 }
  0xd7   : > { %v384_v23 = vpop.trf.xlu0  ;;  %v5694_v24 = vld [vmem:[#allocation2 + $0x69] sm:$0xff] }
  0xd8   : > { %433 = vst.msk [vmem:[#allocation2 + $0x81] sm:$0xff] %vm240_vm0, %v384_v23  ;;  %795 = vrot.lane.b32.xlu1 %v5694_v24, %s5450_s15 }
  0xdb   : > { %v385_v25 = vpop.trf.xlu0  ;;  %v5699_v26 = vld [vmem:[#allocation2 + $0x79] sm:$0xff] }
  0xdc   : > { %434 = vst.msk [vmem:[#allocation2 + $0x91] sm:$0xff] %vm240_vm0, %v385_v25  ;;  %797 = vrot.lane.b32.xlu1 %v5699_v26, %s5450_s15 }
  0xdf   : > { %v386_v27 = vpop.trf.xlu0  ;;  %v5704_v28 = vld [vmem:[#allocation2 + $0x81] sm:$0xff] }
  0xe0   : > { %435 = vst.msk [vmem:[#allocation2 + $0x99] sm:$0xff] %vm240_vm0, %v386_v27  ;;  %799 = vrot.lane.b32.xlu1 %v5704_v28, %s5450_s15  ;;  %v5739_v42 = vld [vmem:[#allocation2 + $0x82] sm:$0xff] }
  0xe3   : > { %v387_v29 = vpop.trf.xlu0  ;;  %v5709_v30 = vld [vmem:[#allocation2 + $0x91] sm:$0xff] }
  0xe4   : > { %436 = vst.msk [vmem:[#allocation2 + $0xa9] sm:$0xff] %vm240_vm0, %v387_v29  ;;  %801 = vrot.lane.b32.xlu1 %v5709_v30, %s5450_s15 }
  0xe7   : > { %v388_v31 = vpop.trf.xlu0  ;;  %v5714_v32 = vld [vmem:[#allocation2 + $0x99] sm:$0xff] }
  0xe8   : > { %437 = vst.msk [vmem:[#allocation2 + $0xb1] sm:$0xff] %vm240_vm0, %v388_v31  ;;  %803 = vrot.lane.b32.xlu1 %v5714_v32, %s5450_s15  ;;  %v5748_v45 = vld [vmem:[#allocation2 + $0x9a] sm:$0xff]  ;;  %v520_v31 = vld [vmem:[#allocation2 + $0x2] sm:$0xff] }
  0xeb   : > { %v389_v33 = vpop.trf.xlu0  ;;  %v5719_v34 = vld [vmem:[#allocation2 + $0xa9] sm:$0xff] }
  0xec   : > { %438 = vst.msk [vmem:[#allocation2 + $0xc1] sm:$0xff] %vm240_vm0, %v389_v33  ;;  %805 = vrot.lane.b32.xlu1 %v5719_v34, %s5450_s15 }
  0xef   : > { %v390_v35 = vpop.trf.xlu0  ;;  %v5724_v36 = vld [vmem:[#allocation2 + $0xb1] sm:$0xff] }
  0xf0   : > { %439 = vst.msk [vmem:[#allocation2 + $0xc9] sm:$0xff] %vm240_vm0, %v390_v35  ;;  %807 = vrot.lane.b32.xlu1 %v5724_v36, %s5450_s15  ;;  %v535_v48 = vld [vmem:[#allocation2 + $0xb2] sm:$0xff]  ;;  %v5816_v35 = vld [vmem:[#allocation2 + $0x20] sm:$0xff] }
  0xf3   : > { %v407_v37 = vpop.trf.xlu0  ;;  %v5729_v38 = vld [vmem:[#allocation2 + $0xc1] sm:$0xff] }
  0xf4   : > { %440 = vst.msk [vmem:[#allocation2 + $0xd9] sm:$0xff] %vm240_vm0, %v407_v37  ;;  %809 = vrot.lane.b32.xlu1 %v5729_v38, %s5450_s15  ;;  %v521_v37 = vld [vmem:[#allocation2 + $0xa] sm:$0xff] }
  0xf7   : > { %v408_v39 = vpop.trf.xlu0  ;;  %v5734_v40 = vld [vmem:[#allocation2 + $0xc9] sm:$0xff] }
  0xf8   : > { %441 = vst.msk [vmem:[#allocation2 + $0xe1] sm:$0xff] %vm240_vm0, %v408_v39  ;;  %811 = vrot.lane.b32.xlu0 %v5734_v40, %s5450_s15  ;;  %v537_v51 = vld [vmem:[#allocation2 + $0xca] sm:$0xff] }
  0xfb   : > { %v409_v41 = vpop.trf.xlu0  ;;  %v5741_v43 = vld [vmem:[#allocation2 + $0xd9] sm:$0xff] }
  0xfc   : > { %442 = vst.msk [vmem:[#allocation2 + $0xf1] sm:$0xff] %vm240_vm0, %v409_v41  ;;  %927 = vrot.lane.b32.xlu0 %v5739_v42, %s5451_s16  ;;  %813 = vrot.lane.b32.xlu1 %v5741_v43, %s5450_s15  ;;  %v5823_v41 = vld [vmem:[#allocation2 + $0x38] sm:$0xff] }
  0xff   : > { %v410_v44 = vpop.trf.xlu0  ;;  %v5750_v46 = vld [vmem:[#allocation2 + $0xe1] sm:$0xff] }
 0x100   : > { %443 = vst.msk [vmem:[#allocation2 + $0xf9] sm:$0xff] %vm240_vm0, %v410_v44  ;;  %931 = vrot.lane.b32.xlu0 %v5748_v45, %s5451_s16  ;;  %815 = vrot.lane.b32.xlu1 %v5750_v46, %s5450_s15  ;;  %v539_v54 = vld [vmem:[#allocation2 + $0xe2] sm:$0xff] }
 0x103   : > { %v411_v47 = vpop.trf.xlu0  ;;  %v5757_v49 = vld [vmem:[#allocation2 + $0xf1] sm:$0xff] }
 0x104   : > { %444 = vst.msk [vmem:[#allocation2 + $0x109] sm:$0xff] %vm240_vm0, %v411_v47  ;;  %935 = vrot.lane.b32.xlu0 %v535_v48, %s5451_s16  ;;  %817 = vrot.lane.b32.xlu1 %v5757_v49, %s5450_s15  ;;  %v5830_v47 = vld [vmem:[#allocation2 + $0x50] sm:$0xff]  ;;  %v5832_v48 = vld [vmem:[#allocation2 + $0x1a] sm:$0xff] }
 0x107   : > { %v412_v50 = vpop.trf.xlu0  ;;  %v5763_v52 = vld [vmem:[#allocation2 + $0xf9] sm:$0xff] }
 0x108   : > { %445 = vst.msk [vmem:[#allocation2 + $0x111] sm:$0xff] %vm240_vm0, %v412_v50  ;;  %939 = vrot.lane.b32.xlu0 %v537_v51, %s5451_s16  ;;  %819 = vrot.lane.b32.xlu1 %v5763_v52, %s5450_s15  ;;  %v541_v57 = vld [vmem:[#allocation2 + $0xfa] sm:$0xff]  ;;  %v5840_v51 = vld [vmem:[#allocation2 + $0x68] sm:$0xff] }
 0x10b   : > { %v413_v53 = vpop.trf.xlu0  ;;  %v5769_v55 = vld [vmem:[#allocation2 + $0x109] sm:$0xff] }
 0x10c   : > { %446 = vst.msk [vmem:[#allocation2 + $0x121] sm:$0xff] %vm240_vm0, %v413_v53  ;;  %943 = vrot.lane.b32.xlu0 %v539_v54, %s5451_s16  ;;  %821 = vrot.lane.b32.xlu1 %v5769_v55, %s5450_s15  ;;  %v5842_v53 = vld [vmem:[#allocation2 + $0x22] sm:$0xff] }
 0x10f   : > { %v414_v56 = vpop.trf.xlu0  ;;  %v5775_v58 = vld [vmem:[#allocation2 + $0x111] sm:$0xff] }
 0x110   : > { %447 = vst.msk [vmem:[#allocation2 + $0x129] sm:$0xff] %vm240_vm0, %v414_v56  ;;  %947 = vrot.lane.b32.xlu0 %v541_v57, %s5451_s16  ;;  %823 = vrot.lane.b32.xlu1 %v5775_v58, %s5450_s15  ;;  %v543_v60 = vld [vmem:[#allocation2 + $0x112] sm:$0xff]  ;;  %v5850_v56 = vld [vmem:[#allocation2 + $0x80] sm:$0xff] }
 0x111   : > { %v5852_v57 = vld [vmem:[#allocation2 + $0x32] sm:$0xff] }
 0x113   : > { %v415_v59 = vpop.trf.xlu0  ;;  %v5781_v61 = vld [vmem:[#allocation2 + $0x121] sm:$0xff] }
 0x114   : > { %448 = vst.msk [vmem:[#allocation2 + $0x139] sm:$0xff] %vm240_vm0, %v415_v59  ;;  %951 = vrot.lane.b32.xlu0 %v543_v60, %s5451_s16  ;;  %825 = vrot.lane.b32.xlu1 %v5781_v61, %s5450_s15  ;;  %v5860_v60 = vld [vmem:[#allocation2 + $0x98] sm:$0xff] }
 0x117   : > { %v416_v62 = vpop.trf.xlu0  ;;  %v545_v63 = vld [vmem:[#allocation2 + $0x12a] sm:$0xff] }
 0x118   : > { %v5787_v1 = vld [vmem:[#allocation2 + $0x129] sm:$0xff]  ;;  %449 = vst.msk [vmem:[#allocation2 + $0x141] sm:$0xff] %vm240_vm0, %v416_v62  ;;  %955 = vrot.lane.b32.xlu0 %v545_v63, %s5451_s16  ;;  %v5862_v62 = vld [vmem:[#allocation2 + $0x3a] sm:$0xff] }
 0x119   : > { %827 = vrot.lane.b32.xlu1 %v5787_v1, %s5450_s15 }
 0x11b   : > { %v417_v2 = vpop.trf.xlu0  ;;  %v514_v3 = vld [vmem:[#allocation2 + $0x139] sm:$0xff] }
 0x11c   : > { %450 = vst.msk [vmem:[#allocation2 + $0x151] sm:$0xff] %vm240_vm0, %v417_v2  ;;  %v5870_v2 = vld [vmem:[#allocation2 + $0xb0] sm:$0xff] }
 0x11d   : > { %829 = vrot.lane.b32.xlu1 %v514_v3, %s5450_s15  ;;  %v5872_v3 = vld [vmem:[#allocation2 + $0x4a] sm:$0xff] }
 0x11f   : > { %v418_v4 = vpop.trf.xlu0  ;;  %v547_v5 = vld [vmem:[#allocation2 + $0x142] sm:$0xff] }
 0x120   : > { %v515_v6 = vld [vmem:[#allocation2 + $0x141] sm:$0xff]  ;;  %451 = vst.msk [vmem:[#allocation2 + $0x159] sm:$0xff] %vm240_vm0, %v418_v4  ;;  %959 = vrot.lane.b32.xlu0 %v547_v5, %s5451_s16 }
 0x121   : > { %831 = vrot.lane.b32.xlu1 %v515_v6, %s5450_s15  ;;  %v5880_v5 = vld [vmem:[#allocation2 + $0xc8] sm:$0xff]  ;;  %v5882_v6 = vld [vmem:[#allocation2 + $0x52] sm:$0xff]  ;;  %v577_v0 = vld [vmem:[#allocation2 + $0x140] sm:$0xff] }
 0x123   : > { %v419_v8 = vpop.trf.xlu0  ;;  %v516_v9 = vld [vmem:[#allocation2 + $0x151] sm:$0xff] }
 0x124   : > { %452 = vst.msk [vmem:[#allocation2 + $0x169] sm:$0xff] %vm240_vm0, %v419_v8 }
 0x125   : > { %833 = vrot.lane.b32.xlu1 %v516_v9, %s5450_s15  ;;  %v5890_v9 = vld [vmem:[#allocation2 + $0xe0] sm:$0xff] }
 0x127   : > { %v420_v11 = vpop.trf.xlu0  ;;  %v549_v13 = vld [vmem:[#allocation2 + $0x15a] sm:$0xff] }
 0x128   : > { %v517_v15 = vld [vmem:[#allocation2 + $0x159] sm:$0xff]  ;;  %453 = vst.msk [vmem:[#allocation2 + $0x171] sm:$0xff] %vm240_vm0, %v420_v11  ;;  %963 = vrot.lane.b32.xlu0 %v549_v13, %s5451_s16  ;;  %v5892_v11 = vld [vmem:[#allocation2 + $0x62] sm:$0xff] }
 0x129   : > { %835 = vrot.lane.b32.xlu1 %v517_v15, %s5450_s15  ;;  %v5900_v15 = vld [vmem:[#allocation2 + $0xf8] sm:$0xff] }
 0x12b   : > { %v518_v19 = vld [vmem:[#allocation2 + $0x169] sm:$0xff]  ;;  %v421_v21 = vpop.trf.xlu0 }
 0x12c   : > { %454 = vst.msk [vmem:[#allocation2 + $0x181] sm:$0xff] %vm240_vm0, %v421_v21 }
 0x12d   : > { %837 = vrot.lane.b32.xlu1 %v518_v19, %s5450_s15  ;;  %v5902_v19 = vld [vmem:[#allocation2 + $0x6a] sm:$0xff] }
 0x12e   : > { %v5809_v23 = vpop.permute.xlu1 %781 }
 0x12f   : > { %v551_v25 = vld [vmem:[#allocation2 + $0x172] sm:$0xff]  ;;  %v422_v29 = vpop.trf.xlu0 }
 0x130   : > { %v519_v27 = vld [vmem:[#allocation2 + $0x171] sm:$0xff]  ;;  %967 = vrot.lane.b32.xlu0 %v551_v25, %s5451_s16  ;;  %455 = vst.msk [vmem:[#allocation2 + $0x189] sm:$0xff] %vm240_vm0, %v422_v29 }
 0x131   : > { %839 = vrot.lane.b32.xlu1 %v519_v27, %s5450_s15  ;;  %v5910_v25 = vld [vmem:[#allocation2 + $0x110] sm:$0xff]  ;;  %v5912_v27 = vld [vmem:[#allocation2 + $0x7a] sm:$0xff] }
 0x132   : > { %v5814_v33 = vpop.permute.xlu1 %783 }
 0x134   : > { %1035 = vrot.lane.b32.xlu0 %v5816_v35, %s5452_s17 }
 0x135   : > { %905 = vrot.lane.b32.xlu1 %v520_v31, %s5451_s16  ;;  %v575_v31 = vld [vmem:[#allocation2 + $0x128] sm:$0xff] }
 0x136   : > { %v5821_v39 = vpop.permute.xlu1 %785 }
 0x138   : > { %1039 = vrot.lane.b32.xlu0 %v5823_v41, %s5452_s17 }
 0x139   : > { %907 = vrot.lane.b32.xlu1 %v521_v37, %s5451_s16  ;;  %v5920_v37 = vld [vmem:[#allocation2 + $0x92] sm:$0xff] }
 0x13a   : > { %v5828_v44 = vpop.permute.xlu1 %787 }
 0x13c   : > { %1043 = vrot.lane.b32.xlu0 %v5830_v47, %s5452_s17 }
 0x13d   : > { %909 = vrot.lane.b32.xlu1 %v5832_v48, %s5451_s16 }
 0x13e   : > { %v5838_v50 = vpop.permute.xlu1 %789 }
 0x140   : > { %1047 = vrot.lane.b32.xlu0 %v5840_v51, %s5452_s17 }
 0x141   : > { %911 = vrot.lane.b32.xlu1 %v5842_v53, %s5451_s16 }
 0x142   : > { %v5848_v54 = vpop.permute.xlu1 %791 }
 0x143   : > { %8034 = vst [vmem:[#allocation7_spill] sm:$0xff] %v5848_v54  ;;  %v540_v54 = vld [vmem:[#allocation2 + $0xf2] sm:$0xff] }
 0x144   : > { %1051 = vrot.lane.b32.xlu0 %v5850_v56, %s5452_s17 }
 0x145   : > { %913 = vrot.lane.b32.xlu1 %v5852_v57, %s5451_s16 }
 0x146   : > { %v5858_v59 = vpop.permute.xlu1 %793 }
 0x147   : > { %8035 = vst [vmem:[#allocation8_spill] sm:$0xff] %v5858_v59  ;;  %v583_v59 = vld [vmem:[#allocation2 + $0x188] sm:$0xff] }
 0x148   : > { %1055 = vrot.lane.b32.xlu0 %v5860_v60, %s5452_s17 }
 0x149   : > { %915 = vrot.lane.b32.xlu1 %v5862_v62, %s5451_s16 }
 0x14a   : > { %v5868_v63 = vpop.permute.xlu1 %795 }
 0x14b   : > { %8036 = vst [vmem:[#allocation9_spill] sm:$0xff] %v5868_v63 }
 0x14c   : > { %1059 = vrot.lane.b32.xlu0 %v5870_v2, %s5452_s17 }
 0x14d   : > { %917 = vrot.lane.b32.xlu1 %v5872_v3, %s5451_s16 }
 0x14e   : > { %v5878_v4 = vpop.permute.xlu1 %797 }
 0x14f   : > { %8037 = vst [vmem:[#allocation10_spill] sm:$0xff] %v5878_v4  ;;  %v538_v4 = vld [vmem:[#allocation2 + $0xda] sm:$0xff] }
 0x150   : > { %1063 = vrot.lane.b32.xlu0 %v5880_v5, %s5452_s17 }
 0x151   : > { %919 = vrot.lane.b32.xlu1 %v5882_v6, %s5451_s16 }
 0x152   : > { %v5888_v8 = vpop.permute.xlu1 %799 }
 0x153   : > { %8038 = vst [vmem:[#allocation11_spill] sm:$0xff] %v5888_v8  ;;  %v8043_v8 = vmov 0.0  }
 0x154   : > { %1067 = vrot.lane.b32.xlu0 %v5890_v9, %s5452_s17  ;;  %297 = vst.msk [vmem:[#allocation3] sm:$0xff] %vm296_vm3, %v8043_v8  ;;  %298 = vst.msk [vmem:[#allocation3 + $0x8] sm:$0xff] %vm296_vm3, %v8043_v8 }
 0x155   : > { %921 = vrot.lane.b32.xlu1 %v5892_v11, %s5451_s16  ;;  %301 = vst.msk [vmem:[#allocation3 + $0x18] sm:$0xff] %vm296_vm3, %v8043_v8  ;;  %302 = vst.msk [vmem:[#allocation3 + $0x20] sm:$0xff] %vm296_vm3, %v8043_v8 }
 0x156   : > { %v5898_v13 = vpop.permute.xlu1 %801  ;;  %304 = vst.msk [vmem:[#allocation3 + $0x30] sm:$0xff] %vm296_vm3, %v8043_v8  ;;  %305 = vst.msk [vmem:[#allocation3 + $0x38] sm:$0xff] %vm296_vm3, %v8043_v8 }
 0x157   : > { %8039 = vst [vmem:[#allocation12_spill] sm:$0xff] %v5898_v13  ;;  %307 = vst.msk [vmem:[#allocation3 + $0x48] sm:$0xff] %vm296_vm3, %v8043_v8 }
 0x158   : > { %1071 = vrot.lane.b32.xlu0 %v5900_v15, %s5452_s17  ;;  %308 = vst.msk [vmem:[#allocation3 + $0x50] sm:$0xff] %vm296_vm3, %v8043_v8  ;;  %310 = vst.msk [vmem:[#allocation3 + $0x60] sm:$0xff] %vm296_vm3, %v8043_v8 }
 0x159   : > { %923 = vrot.lane.b32.xlu1 %v5902_v19, %s5451_s16  ;;  %311 = vst.msk [vmem:[#allocation3 + $0x68] sm:$0xff] %vm296_vm3, %v8043_v8  ;;  %313 = vst.msk [vmem:[#allocation3 + $0x78] sm:$0xff] %vm296_vm3, %v8043_v8 }
 0x15a   : > { %v5908_v21 = vpop.permute.xlu1 %803  ;;  %314 = vst.msk [vmem:[#allocation3 + $0x80] sm:$0xff] %vm296_vm3, %v8043_v8  ;;  %316 = vst.msk [vmem:[#allocation3 + $0x90] sm:$0xff] %vm296_vm3, %v8043_v8 }
 0x15b   : > { %8040 = vst [vmem:[#allocation13_spill] sm:$0xff] %v5908_v21  ;;  %v534_v21 = vld [vmem:[#allocation2 + $0xaa] sm:$0xff]  ;;  %317 = vst.msk [vmem:[#allocation3 + $0x98] sm:$0xff] %vm296_vm3, %v8043_v8 }
 0x15c   : > { %1075 = vrot.lane.b32.xlu0 %v5910_v25, %s5452_s17  ;;  %319 = vst.msk [vmem:[#allocation3 + $0xa8] sm:$0xff] %vm296_vm3, %v8043_v8  ;;  %320 = vst.msk [vmem:[#allocation3 + $0xb0] sm:$0xff] %vm296_vm3, %v8043_v8 }
 0x15d   : > { %925 = vrot.lane.b32.xlu1 %v5912_v27, %s5451_s16  ;;  %322 = vst.msk [vmem:[#allocation3 + $0xc0] sm:$0xff] %vm296_vm3, %v8043_v8  ;;  %323 = vst.msk [vmem:[#allocation3 + $0xc8] sm:$0xff] %vm296_vm3, %v8043_v8 }
 0x15e   : > { %v5918_v29 = vpop.permute.xlu1 %805  ;;  %325 = vst.msk [vmem:[#allocation3 + $0xd8] sm:$0xff] %vm296_vm3, %v8043_v8  ;;  %326 = vst.msk [vmem:[#allocation3 + $0xe0] sm:$0xff] %vm296_vm3, %v8043_v8 }
 0x15f   : > { %8041 = vst [vmem:[#allocation14_spill] sm:$0xff] %v5918_v29  ;;  %328 = vst.msk [vmem:[#allocation3 + $0xf0] sm:$0xff] %vm296_vm3, %v8043_v8  ;;  %v581_v29 = vld [vmem:[#allocation2 + $0x170] sm:$0xff] }
 0x160   : > { %1079 = vrot.lane.b32.xlu0 %v575_v31, %s5452_s17  ;;  %329 = vst.msk [vmem:[#allocation3 + $0xf8] sm:$0xff] %vm296_vm3, %v8043_v8  ;;  %331 = vst.msk [vmem:[#allocation3 + $0x108] sm:$0xff] %vm296_vm3, %v8043_v8 }
 0x161   : > { %929 = vrot.lane.b32.xlu1 %v5920_v37, %s5451_s16  ;;  %332 = vst.msk [vmem:[#allocation3 + $0x110] sm:$0xff] %vm296_vm3, %v8043_v8  ;;  %334 = vst.msk [vmem:[#allocation3 + $0x120] sm:$0xff] %vm296_vm3, %v8043_v8 }
 0x162   : > { %v5925_v13 = vpop.permute.xlu1 %807  ;;  %335 = vst.msk [vmem:[#allocation3 + $0x128] sm:$0xff] %vm296_vm3, %v8043_v8  ;;  %337 = vst.msk [vmem:[#allocation3 + $0x138] sm:$0xff] %vm296_vm3, %v8043_v8 }
 0x163   : > { %8042 = vst [vmem:[#allocation15_spill] sm:$0xff] %v5925_v13  ;;  %338 = vst.msk [vmem:[#allocation3 + $0x140] sm:$0xff] %vm296_vm3, %v8043_v8 }
 0x164   : > { %1083 = vrot.lane.b32.xlu0 %v577_v0, %s5452_s17  ;;  %340 = vst.msk [vmem:[#allocation3 + $0x150] sm:$0xff] %vm296_vm3, %v8043_v8  ;;  %341 = vst.msk [vmem:[#allocation3 + $0x158] sm:$0xff] %vm296_vm3, %v8043_v8  ;;  %v579_v0 = vld [vmem:[#allocation2 + $0x158] sm:$0xff] }
 0x165   : > { %933 = vrot.lane.b32.xlu1 %v534_v21, %s5451_s16  ;;  %343 = vst.msk [vmem:[#allocation3 + $0x168] sm:$0xff] %vm296_vm3, %v8043_v8  ;;  %344 = vst.msk [vmem:[#allocation3 + $0x170] sm:$0xff] %vm296_vm3, %v8043_v8  ;;  %v536_v21 = vld [vmem:[#allocation2 + $0xc2] sm:$0xff] }
 0x166   : > { %346 = vst.msk [vmem:[#allocation3 + $0x180] sm:$0xff] %vm296_vm3, %v8043_v8  ;;  %347 = vst.msk [vmem:[#allocation3 + $0x188] sm:$0xff] %vm296_vm3, %v8043_v8  ;;  %v6003_v31 = vpop.permute.xlu1 %809 }
 0x167   : > { %349 = vst.msk [vmem:[#allocation3 + $0x198] sm:$0xff] %vm296_vm3, %v8043_v8  ;;  %350 = vst.msk [vmem:[#allocation3 + $0x1a0] sm:$0xff] %vm296_vm3, %v8043_v8 }
 0x168   : > { %1087 = vrot.lane.b32.xlu0 %v579_v0, %s5452_s17  ;;  %8044 = vst [vmem:[#allocation16_spill] sm:$0xff] %v6003_v31  ;;  %v472_v31 = vld [vmem:[#allocation2 + $0xc0] sm:$0xff] }
 0x169   : > { %937 = vrot.lane.b32.xlu1 %v536_v21, %s5451_s16 }
 0x16a   : > { %v6005_v13 = vpop.permute.xlu0 %811 }
 0x16b   : > { %8045 = vst [vmem:[#allocation17_spill] sm:$0xff] %v6005_v13  ;;  %v542_v13 = vld [vmem:[#allocation2 + $0x10a] sm:$0xff] }
 0x16c   : > { %1091 = vrot.lane.b32.xlu0 %v581_v29, %s5452_s17  ;;  %v544_v29 = vld [vmem:[#allocation2 + $0x122] sm:$0xff] }
 0x16d   : > { %941 = vrot.lane.b32.xlu1 %v538_v4, %s5451_s16 }
 0x16e   : > { %v6009_v63 = vpop.permute.xlu0 %927  ;;  %v6011_v8 = vpop.permute.xlu1 %813 }
 0x16f   : > { %8046 = vst [vmem:[#allocation18_spill] sm:$0xff] %v6009_v63  ;;  %8047 = vst [vmem:[#allocation19_spill] sm:$0xff] %v6011_v8  ;;  %v484_v63 = vld [vmem:[#allocation2 + $0x150] sm:$0xff] }
 0x170   : > { %1095 = vrot.lane.b32.xlu0 %v583_v59, %s5452_s17  ;;  %v546_v59 = vld [vmem:[#allocation2 + $0x13a] sm:$0xff] }
 0x171   : > { %945 = vrot.lane.b32.xlu1 %v540_v54, %s5451_s16 }
 0x172   : > { %v6015_v0 = vpop.permute.xlu0 %931  ;;  %v6017_v21 = vpop.permute.xlu1 %815 }
 0x173   : > { %8048 = vst [vmem:[#allocation20_spill] sm:$0xff] %v6015_v0  ;;  %8049 = vst [vmem:[#allocation21_spill] sm:$0xff] %v6017_v21  ;;  %v482_v0 = vld [vmem:[#allocation2 + $0x138] sm:$0xff] }
 0x174   : > { %1163 = vrot.lane.b32.xlu0 %v5664_v12, %s5453_s20 }
 0x175   : > { %949 = vrot.lane.b32.xlu1 %v542_v13, %s5451_s16 }
 0x176   : > { %v6022_v4 = vpop.permute.xlu1 %817  ;;  %v6024_v8 = vpop.permute.xlu0 %935 }
 0x177   : > { %8050 = vst [vmem:[#allocation22_spill] sm:$0xff] %v6022_v4  ;;  %8051 = vst [vmem:[#allocation23_spill] sm:$0xff] %v6024_v8  ;;  %v548_v4 = vld [vmem:[#allocation2 + $0x152] sm:$0xff]  ;;  %v480_v8 = vld [vmem:[#allocation2 + $0x120] sm:$0xff] }
 0x178   : > { %1167 = vrot.lane.b32.xlu0 %v5674_v16, %s5453_s20 }
 0x179   : > { %953 = vrot.lane.b32.xlu1 %v544_v29, %s5451_s16  ;;  %v550_v29 = vld [vmem:[#allocation2 + $0x16a] sm:$0xff] }
 0x17a   : > { %v6029_v54 = vpop.permute.xlu1 %819  ;;  %v6034_v12 = vpop.permute.xlu0 %939 }
 0x17b   : > { %8052 = vst [vmem:[#allocation24_spill] sm:$0xff] %v6029_v54  ;;  %8053 = vst [vmem:[#allocation25_spill] sm:$0xff] %v6034_v12  ;;  %v6050_v12 = vld [vmem:[#allocation2 + $0x18] sm:$0xff] }
 0x17c   : > { %1171 = vrot.lane.b32.xlu0 %v5684_v20, %s5453_s20 }
 0x17d   : > { %957 = vrot.lane.b32.xlu1 %v546_v59, %s5451_s16 }
 0x17e   : > { %v6036_v13 = vpop.permute.xlu1 %821  ;;  %v6043_v54 = vpop.permute.xlu0 %943 }
 0x17f   : > { %8054 = vst [vmem:[#allocation26_spill] sm:$0xff] %v6036_v13  ;;  %8056 = vst [vmem:[#allocation28_spill] sm:$0xff] %v6043_v54  ;;  %v6060_v13 = vld [vmem:[#allocation2 + $0x30] sm:$0xff] }
 0x180   : > { %1175 = vrot.lane.b32.xlu0 %v5694_v24, %s5453_s20 }
 0x181   : > { %961 = vrot.lane.b32.xlu1 %v548_v4, %s5451_s16 }
 0x182   : > { %v6041_v21 = vpop.permute.xlu1 %823  ;;  %v6056_v4 = vpop.permute.xlu0 %947 }
 0x183   : > { %8055 = vst [vmem:[#allocation27_spill] sm:$0xff] %v6041_v21  ;;  %8058 = vst [vmem:[#allocation30_spill] sm:$0xff] %v6056_v4  ;;  %v6078_v4 = vld [vmem:[#allocation2 + $0x60] sm:$0xff] }
 0x184   : > { %1179 = vrot.lane.b32.xlu0 %v5704_v28, %s5453_s20 }
 0x185   : > { %965 = vrot.lane.b32.xlu1 %v550_v29, %s5451_s16 }
 0x186   : > { %v6048_v59 = vpop.permute.xlu1 %825  ;;  %v6070_v54 = vpop.permute.xlu0 %951 }
 0x187   : > { %8057 = vst [vmem:[#allocation29_spill] sm:$0xff] %v6048_v59  ;;  %v6068_v59 = vld [vmem:[#allocation2 + $0x48] sm:$0xff]  ;;  %8061 = vst [vmem:[#allocation33_spill] sm:$0xff] %v6070_v54  ;;  %v6088_v54 = vld [vmem:[#allocation2 + $0x78] sm:$0xff] }
 0x188   : > { %1183 = vrot.lane.b32.xlu0 %v5714_v32, %s5453_s20  ;;  %8065 = vst [vmem:[#allocation37_spill] sm:$0xff] %v6088_v54 }
 0x189   : > { %1033 = vrot.lane.b32.xlu1 %v6050_v12, %s5452_s17 }
 0x18b   : > { %v6058_v21 = vpop.permute.xlu1 %827 }
 0x18c   : > { %8059 = vst [vmem:[#allocation31_spill] sm:$0xff] %v6058_v21  ;;  %1187 = vrot.lane.b32.xlu0 %v5724_v36, %s5453_s20  ;;  %v6084_v36 = vpop.permute.xlu0 %955 }
 0x18d   : > { %1037 = vrot.lane.b32.xlu1 %v6060_v13, %s5452_s17  ;;  %8063 = vst [vmem:[#allocation35_spill] sm:$0xff] %v6084_v36 }
 0x18f   : > { %v6066_v29 = vpop.permute.xlu1 %829 }
 0x190   : > { %8060 = vst [vmem:[#allocation32_spill] sm:$0xff] %v6066_v29  ;;  %1191 = vrot.lane.b32.xlu0 %v5734_v40, %s5453_s20 }
 0x191   : > { %1041 = vrot.lane.b32.xlu1 %v6068_v59, %s5452_s17 }
 0x192   : > { %v6094_v40 = vpop.permute.xlu0 %959 }
 0x193   : > { %v6076_v21 = vpop.permute.xlu1 %831  ;;  %8066 = vst [vmem:[#allocation38_spill] sm:$0xff] %v6094_v40 }
 0x194   : > { %8062 = vst [vmem:[#allocation34_spill] sm:$0xff] %v6076_v21  ;;  %1195 = vrot.lane.b32.xlu0 %v5750_v46, %s5453_s20  ;;  %v6098_v46 = vld [vmem:[#allocation2 + $0x90] sm:$0xff] }
 0x195   : > { %1045 = vrot.lane.b32.xlu1 %v6078_v4, %s5452_s17  ;;  %8068 = vst [vmem:[#allocation40_spill] sm:$0xff] %v6098_v46 }
 0x197   : > { %v6086_v29 = vpop.permute.xlu1 %833 }
 0x198   : > { %8064 = vst [vmem:[#allocation36_spill] sm:$0xff] %v6086_v29  ;;  %1199 = vrot.lane.b32.xlu0 %v5763_v52, %s5453_s20  ;;  %v470_v52 = vld [vmem:[#allocation2 + $0xa8] sm:$0xff] }
 0x199   : > { %1049 = vrot.lane.b32.xlu1 %v6088_v54, %s5452_s17 }
 0x19a   : > { %v6104_v29 = vpop.permute.xlu0 %963 }
 0x19b   : > { %v6096_v21 = vpop.permute.xlu1 %835  ;;  %8069 = vst [vmem:[#allocation41_spill] sm:$0xff] %v6104_v29  ;;  %v474_v29 = vld [vmem:[#allocation2 + $0xd8] sm:$0xff] }
 0x19c   : > { %8067 = vst [vmem:[#allocation39_spill] sm:$0xff] %v6096_v21  ;;  %1203 = vrot.lane.b32.xlu0 %v5775_v58, %s5453_s20 }
 0x19d   : > { %1053 = vrot.lane.b32.xlu1 %v6098_v46, %s5452_s17 }
 0x19f   : > { %v6106_v36 = vpop.permute.xlu1 %837 }
 0x1a0   : > { %8070 = vst [vmem:[#allocation42_spill] sm:$0xff] %v6106_v36  ;;  %1207 = vrot.lane.b32.xlu0 %v5787_v1, %s5453_s20 }
 0x1a1   : > { %1057 = vrot.lane.b32.xlu1 %v470_v52, %s5452_s17 }
 0x1a2   : > { %v6111_v40 = vpop.permute.xlu0 %967 }
 0x1a3   : > { %8071 = vst [vmem:[#allocation43_spill] sm:$0xff] %v6111_v40  ;;  %v6113_v21 = vpop.permute.xlu1 %839  ;;  %v476_v40 = vld [vmem:[#allocation2 + $0xf0] sm:$0xff] }
 0x1a4   : > { %8072 = vst [vmem:[#allocation44_spill] sm:$0xff] %v6113_v21  ;;  %1291 = vrot.lane.b32.xlu0 %v5842_v53, %s5454_s21  ;;  %v478_v21 = vld [vmem:[#allocation2 + $0x108] sm:$0xff] }
 0x1a5   : > { %1061 = vrot.lane.b32.xlu1 %v472_v31, %s5452_s17 }
 0x1a6   : > { %v6118_v58 = vpop.permute.xlu0 %1035 }
 0x1a7   : > { %v6120_v36 = vpop.permute.xlu1 %905 }
 0x1a8   : > { %1419 = vrot.lane.b32.xlu0 %v5823_v41, %s5455_s22 }
 0x1a9   : > { %1065 = vrot.lane.b32.xlu1 %v474_v29, %s5452_s17 }
 0x1aa   : > { %v6125_v1 = vpop.permute.xlu0 %1039 }
 0x1ab   : > { %v6127_v52 = vpop.permute.xlu1 %907 }
 0x1ac   : > { %1547 = vrot.lane.b32.xlu0 %v5674_v16, %s5456_s23 }
 0x1ad   : > { %1069 = vrot.lane.b32.xlu1 %v476_v40, %s5452_s17 }
 0x1ae   : > { %v6132_v53 = vpop.permute.xlu0 %1043 }
 0x1af   : > { %v6134_v31 = vpop.permute.xlu1 %909 }
 0x1b0   : > { %1293 = vrot.lane.b32.xlu0 %v5852_v57, %s5454_s21 }
 0x1b1   : > { %1073 = vrot.lane.b32.xlu1 %v478_v21, %s5452_s17 }
 0x1b2   : > { %v6139_v41 = vpop.permute.xlu0 %1047 }
 0x1b3   : > { %8073 = vst [vmem:[#allocation45_spill] sm:$0xff] %v6139_v41  ;;  %v6141_v29 = vpop.permute.xlu1 %911  ;;  %v486_v41 = vld [vmem:[#allocation2 + $0x168] sm:$0xff] }
 0x1b4   : > { %1295 = vrot.lane.b32.xlu0 %v5862_v62, %s5454_s21 }
 0x1b5   : > { %1077 = vrot.lane.b32.xlu1 %v480_v8, %s5452_s17 }
 0x1b6   : > { %v6146_v16 = vpop.permute.xlu0 %1051 }
 0x1b7   : > { %8074 = vst [vmem:[#allocation46_spill] sm:$0xff] %v6146_v16  ;;  %v6148_v40 = vpop.permute.xlu1 %913 }
 0x1b8   : > { %1423 = vrot.lane.b32.xlu0 %v5830_v47, %s5455_s22 }
 0x1b9   : > { %1081 = vrot.lane.b32.xlu1 %v482_v0, %s5452_s17 }
 0x1ba   : > { %v6153_v21 = vpop.permute.xlu0 %1055 }
 0x1bb   : > { %8075 = vst [vmem:[#allocation47_spill] sm:$0xff] %v6153_v21  ;;  %v6155_v46 = vpop.permute.xlu1 %915  ;;  %v582_v21 = vld [vmem:[#allocation2 + $0x180] sm:$0xff] }
 0x1bc   : > { %1551 = vrot.lane.b32.xlu0 %v5684_v20, %s5456_s23 }
 0x1bd   : > { %1085 = vrot.lane.b32.xlu1 %v484_v63, %s5452_s17 }
 0x1be   : > { %v6160_v8 = vpop.permute.xlu0 %1059 }
 0x1bf   : > { %8076 = vst [vmem:[#allocation48_spill] sm:$0xff] %v6160_v8  ;;  %v6162_v16 = vpop.permute.xlu1 %917 }
 0x1c0   : > { %1297 = vrot.lane.b32.xlu0 %v5872_v3, %s5454_s21 }
 0x1c1   : > { %1089 = vrot.lane.b32.xlu1 %v486_v41, %s5452_s17 }
 0x1c2   : > { %v6167_v47 = vpop.permute.xlu0 %1063 }
 0x1c3   : > { %8077 = vst [vmem:[#allocation49_spill] sm:$0xff] %v6167_v47  ;;  %v6169_v0 = vpop.permute.xlu1 %919 }
 0x1c4   : > { %1299 = vrot.lane.b32.xlu0 %v5882_v6, %s5454_s21 }
 0x1c5   : > { %1093 = vrot.lane.b32.xlu1 %v582_v21, %s5452_s17 }
 0x1c6   : > { %v6174_v20 = vpop.permute.xlu0 %1067 }
 0x1c7   : > { %8078 = vst [vmem:[#allocation50_spill] sm:$0xff] %v6174_v20  ;;  %v6176_v63 = vpop.permute.xlu1 %921 }
 0x1c8   : > { %8079 = vst [vmem:[#allocation51_spill] sm:$0xff] %v6176_v63  ;;  %1427 = vrot.lane.b32.xlu0 %v5840_v51, %s5455_s22  ;;  %v727_v63 = vld [vmem:[#allocation2 + $0xda] sm:$0xff] }
 0x1c9   : > { %1161 = vrot.lane.b32.xlu1 %v5659_v10, %s5453_s20 }
 0x1ca   : > { %v6182_v41 = vpop.permute.xlu0 %1071 }
 0x1cb   : > { %8080 = vst [vmem:[#allocation52_spill] sm:$0xff] %v6182_v41  ;;  %v6184_v47 = vpop.permute.xlu1 %923  ;;  %v728_v41 = vld [vmem:[#allocation2 + $0xe2] sm:$0xff] }
 0x1cc   : > { %1555 = vrot.lane.b32.xlu0 %v5694_v24, %s5456_s23 }
 0x1cd   : > { %1165 = vrot.lane.b32.xlu1 %v5669_v14, %s5453_s20 }
 0x1ce   : > { %v6190_v21 = vpop.permute.xlu0 %1075 }
 0x1cf   : > { %8081 = vst [vmem:[#allocation53_spill] sm:$0xff] %v6190_v21  ;;  %v6192_v20 = vpop.permute.xlu1 %925  ;;  %v726_v21 = vld [vmem:[#allocation2 + $0xca] sm:$0xff] }
 0x1d0   : > { %8082 = vst [vmem:[#allocation54_spill] sm:$0xff] %v6192_v20  ;;  %1301 = vrot.lane.b32.xlu0 %v5892_v11, %s5454_s21  ;;  %v723_v20 = vld [vmem:[#allocation2 + $0xaa] sm:$0xff] }
 0x1d1   : > { %1169 = vrot.lane.b32.xlu1 %v5679_v18, %s5453_s20 }
 0x1d2   : > { %v6198_v10 = vpop.permute.xlu0 %1079 }
 0x1d3   : > { %8083 = vst [vmem:[#allocation55_spill] sm:$0xff] %v6198_v10  ;;  %v6200_v51 = vpop.permute.xlu1 %929 }
 0x1d4   : > { %8084 = vst [vmem:[#allocation56_spill] sm:$0xff] %v6200_v51  ;;  %1303 = vrot.lane.b32.xlu0 %v5902_v19, %s5454_s21  ;;  %v659_v51 = vld [vmem:[#allocation2 + $0xa8] sm:$0xff] }
 0x1d5   : > { %1173 = vrot.lane.b32.xlu1 %v5689_v22, %s5453_s20 }
 0x1d6   : > { %v6206_v14 = vpop.permute.xlu0 %1083 }
 0x1d7   : > { %8085 = vst [vmem:[#allocation57_spill] sm:$0xff] %v6206_v14  ;;  %v6208_v24 = vpop.permute.xlu1 %933 }
 0x1d8   : > { %8086 = vst [vmem:[#allocation58_spill] sm:$0xff] %v6208_v24  ;;  %1431 = vrot.lane.b32.xlu0 %v5850_v56, %s5455_s22  ;;  %v670_v24 = vld [vmem:[#allocation2 + $0x128] sm:$0xff] }
 0x1d9   : > { %1177 = vrot.lane.b32.xlu1 %v5699_v26, %s5453_s20 }
 0x1da   : > { %v6214_v18 = vpop.permute.xlu0 %1087 }
 0x1db   : > { %8087 = vst [vmem:[#allocation59_spill] sm:$0xff] %v6214_v18  ;;  %v6216_v10 = vpop.permute.xlu1 %937 }
 0x1dc   : > { %8088 = vst [vmem:[#allocation60_spill] sm:$0xff] %v6216_v10  ;;  %1559 = vrot.lane.b32.xlu0 %v5704_v28, %s5456_s23 }
 0x1dd   : > { %1181 = vrot.lane.b32.xlu1 %v5709_v30, %s5453_s20 }
 0x1de   : > { %v6222_v22 = vpop.permute.xlu0 %1091 }
 0x1df   : > { %8089 = vst [vmem:[#allocation61_spill] sm:$0xff] %v6222_v22  ;;  %v6224_v14 = vpop.permute.xlu1 %941 }
 0x1e0   : > { %8090 = vst [vmem:[#allocation62_spill] sm:$0xff] %v6224_v14  ;;  %1305 = vrot.lane.b32.xlu0 %v5912_v27, %s5454_s21  ;;  %v685_v14 = vld [vmem:[#allocation2 + $0x61] sm:$0xff] }
 0x1e1   : > { %1185 = vrot.lane.b32.xlu1 %v5719_v34, %s5453_s20  ;;  %v2031_v34 = vld [vmem:[%s8017_s1] sm:$0xff] }
 0x1e2   : > { %v6230_v26 = vpop.permute.xlu0 %1095 }
 0x1e3   : > { %8091 = vst [vmem:[#allocation63_spill] sm:$0xff] %v6230_v26  ;;  %v6232_v56 = vpop.permute.xlu1 %945 }
 0x1e4   : > { %8092 = vst [vmem:[#allocation64_spill] sm:$0xff] %v6232_v56  ;;  %1307 = vrot.lane.b32.xlu0 %v5739_v42, %s5454_s21  ;;  %v2032_v42 = vld [vmem:[%s8017_s1 + $0x8] sm:$0xff] }
 0x1e5   : > { %1189 = vrot.lane.b32.xlu1 %v5729_v38, %s5453_s20  ;;  %v4764_v26 = vpack.c.bf16 %v2032_v42, %v2031_v34  ;;  %v683_v56 = vld [vmem:[#allocation2 + $0x49] sm:$0xff] }
 0x1e6   : > { %v6238_v28 = vpop.permute.xlu0 %1163 }
 0x1e7   : > { %v6240_v30 = vpop.permute.xlu1 %949  ;;  %4765 = vmatprep.subr.bf16.mxu0 %v4764_v26 }
 0x1e8   : > { %8093 = vst [vmem:[#allocation65_spill] sm:$0xff] %v6240_v30  ;;  %1435 = vrot.lane.b32.xlu0 %v5860_v60, %s5455_s22  ;;  %v2034_v60 = vld [vmem:[%s8017_s1 + $0x18] sm:$0xff]  ;;  %4767 = vmatpush3.bf16.msra.mxu0 %v4764_v26  ;;  %v694_v30 = vld [vmem:[#allocation2 + $0xc9] sm:$0xff] }
 0x1e9   : > { %1193 = vrot.lane.b32.xlu1 %v5741_v43, %s5453_s20  ;;  %v2033_v43 = vld [vmem:[%s8017_s1 + $0x10] sm:$0xff] }
 0x1ea   : > { %v6252_v38 = vpop.permute.xlu0 %1167  ;;  %v4768_v34 = vpack.c.bf16 %v2034_v60, %v2033_v43 }
 0x1eb   : > { %v6254_v22 = vpop.permute.xlu1 %953 }
 0x1ec   : > { %8094 = vst [vmem:[#allocation66_spill] sm:$0xff] %v6254_v22  ;;  %1563 = vrot.lane.b32.xlu0 %v5714_v32, %s5456_s23  ;;  %4769 = vmatprep.subr.bf16.mxu0 %v4768_v34  ;;  %v2035_v32 = vld [vmem:[%s8017_s1 + $0x20] sm:$0xff] }
 0x1ed   : > { %1197 = vrot.lane.b32.xlu1 %v5757_v49, %s5453_s20  ;;  %v2036_v49 = vld [vmem:[%s8017_s1 + $0x28] sm:$0xff]  ;;  %4771 = vmatpush3.bf16.msra.mxu0 %v4768_v34  ;;  %v2038_v34 = vld [vmem:[%s8017_s1 + $0x38] sm:$0xff] }
 0x1ee   : > { %v6266_v42 = vpop.permute.xlu0 %1171  ;;  %v4772_v26 = vpack.c.bf16 %v2036_v49, %v2035_v32 }
 0x1ef   : > { %v6268_v18 = vpop.permute.xlu1 %957 }
 0x1f0   : > { %8095 = vst [vmem:[#allocation67_spill] sm:$0xff] %v6268_v18  ;;  %1691 = vrot.lane.b32.xlu0 %v5748_v45, %s5457_s7  ;;  %4773 = vmatprep.subr.bf16.mxu0 %v4772_v26 }
 0x1f1   : > { %1201 = vrot.lane.b32.xlu1 %v5769_v55, %s5453_s20  ;;  %v2037_v55 = vld [vmem:[%s8017_s1 + $0x30] sm:$0xff]  ;;  %4775 = vmatpush3.bf16.msra.mxu0 %v4772_v26 }
 0x1f2   : > { %v6280_v43 = vpop.permute.xlu0 %1175  ;;  %v4776_v32 = vpack.c.bf16 %v2038_v34, %v2037_v55  ;;  %v692_v55 = vld [vmem:[#allocation2 + $0xb1] sm:$0xff] }
 0x1f3   : > { %v6282_v60 = vpop.permute.xlu1 %961  ;;  %v724_v34 = vld [vmem:[#allocation2 + $0xb2] sm:$0xff] }
 0x1f4   : > { %8096 = vst [vmem:[#allocation68_spill] sm:$0xff] %v6282_v60  ;;  %1311 = vrot.lane.b32.xlu0 %v5748_v45, %s5454_s21  ;;  %4777 = vmatprep.subr.bf16.mxu0 %v4776_v32  ;;  %v2039_v45 = vld [vmem:[%s8017_s1 + $0x40] sm:$0xff] }
 0x1f5   : > { %1205 = vrot.lane.b32.xlu1 %v5781_v61, %s5453_s20  ;;  %4779 = vmatpush3.bf16.msra.mxu0 %v4776_v32  ;;  %v681_v32 = vld [vmem:[#allocation2 + $0x31] sm:$0xff] }
 0x1f6   : > { %v6294_v49 = vpop.permute.xlu0 %1179  ;;  %4658 = vmatprep.subr.mxu0 %v2039_v45 }
 0x1f7   : > { %8097 = vst [vmem:[#allocation69_spill] sm:$0xff] %v6294_v49  ;;  %v6296_v60 = vpop.permute.xlu1 %965  ;;  %v693_v49 = vld [vmem:[#allocation2 + $0xc1] sm:$0xff] }
 0x1f8   : > { %8098 = vst [vmem:[#allocation70_spill] sm:$0xff] %v6296_v60  ;;  %1439 = vrot.lane.b32.xlu0 %v5870_v2, %s5455_s22 }
 0x1f9   : > { %1289 = vrot.lane.b32.xlu1 %v5832_v48, %s5454_s21  ;;  %4659 = vmatpush3.msra.mxu0 %v2039_v45 }
 0x1fa   : > { %v6305_v61 = vpop.permute.xlu0 %1183 }
 0x1fb   : > { %8099 = vst [vmem:[#allocation71_spill] sm:$0xff] %v6305_v61  ;;  %v6307_v26 = vpop.permute.xlu1 %1033  ;;  %v734_v61 = vld [vmem:[#allocation2 + $0x12a] sm:$0xff] }
 0x1fc   : > { %1567 = vrot.lane.b32.xlu0 %v692_v55, %s5456_s23 }
 0x1fd   : > { %1417 = vrot.lane.b32.xlu1 %v6060_v13, %s5455_s22 }
 0x1fe   : > { %v6312_v2 = vpop.permute.xlu0 %1187 }
 0x1ff   : > { %8100 = vst [vmem:[#allocation72_spill] sm:$0xff] %v6312_v2  ;;  %v6314_v48 = vpop.permute.xlu1 %1037  ;;  %v626_v2 = vld [vmem:[#allocation2 + $0x92] sm:$0xff] }
 0x200   : > { %1695 = vrot.lane.b32.xlu0 %v724_v34, %s5457_s7 }
 0x201   : > { %1545 = vrot.lane.b32.xlu1 %v681_v32, %s5456_s23 }
 0x202   : > { %v6318_v60 = vpop.permute.xlu0 %1191 }
 0x203   : > { %8101 = vst [vmem:[#allocation73_spill] sm:$0xff] %v6318_v60  ;;  %v6320_v18 = vpop.permute.xlu1 %1041  ;;  %v657_v60 = vld [vmem:[#allocation2 + $0x90] sm:$0xff] }
 0x204   : > { %1315 = vrot.lane.b32.xlu0 %v724_v34, %s5454_s21 }
 0x205   : > { %1673 = vrot.lane.b32.xlu1 %v5852_v57, %s5457_s7 }
 0x206   : > { %v6325_v45 = vpop.permute.xlu0 %1195 }
 0x207   : > { %8102 = vst [vmem:[#allocation74_spill] sm:$0xff] %v6325_v45  ;;  %v6327_v55 = vpop.permute.xlu1 %1045 }
 0x208   : > { %1443 = vrot.lane.b32.xlu0 %v5880_v5, %s5455_s22 }
 0x209   : > { %1675 = vrot.lane.b32.xlu1 %v5862_v62, %s5457_s7 }
 0x20a   : > { %v6333_v32 = vpop.permute.xlu0 %1199 }
 0x20b   : > { %8103 = vst [vmem:[#allocation75_spill] sm:$0xff] %v6333_v32  ;;  %v6335_v22 = vpop.permute.xlu1 %1049  ;;  %v696_v32 = vld [vmem:[#allocation2 + $0xe1] sm:$0xff] }
 0x20c   : > { %8104 = vst [vmem:[#allocation76_spill] sm:$0xff] %v6335_v22  ;;  %1571 = vrot.lane.b32.xlu0 %v694_v30, %s5456_s23  ;;  %v706_v22 = vld [vmem:[#allocation2 + $0x159] sm:$0xff] }
 0x20d   : > { %1421 = vrot.lane.b32.xlu1 %v6068_v59, %s5455_s22 }
 0x20e   : > { %v6340_v57 = vpop.permute.xlu0 %1203 }
 0x20f   : > { %8105 = vst [vmem:[#allocation77_spill] sm:$0xff] %v6340_v57  ;;  %v6342_v34 = vpop.permute.xlu1 %1053 }
 0x210   : > { %8106 = vst [vmem:[#allocation78_spill] sm:$0xff] %v6342_v34  ;;  %1699 = vrot.lane.b32.xlu0 %v726_v21, %s5457_s7  ;;  %v691_v34 = vld [vmem:[#allocation2 + $0xa9] sm:$0xff] }
 0x211   : > { %1549 = vrot.lane.b32.xlu1 %v683_v56, %s5456_s23 }
 0x212   : > { %v6346_v62 = vpop.permute.xlu0 %1207 }
 0x213   : > { %8107 = vst [vmem:[#allocation79_spill] sm:$0xff] %v6346_v62  ;;  %v6348_v5 = vpop.permute.xlu1 %1057 }
 0x214   : > { %8108 = vst [vmem:[#allocation80_spill] sm:$0xff] %v6348_v5  ;;  %1319 = vrot.lane.b32.xlu0 %v726_v21, %s5454_s21  ;;  %v702_v5 = vld [vmem:[#allocation2 + $0x129] sm:$0xff] }
 0x215   : > { %1677 = vrot.lane.b32.xlu1 %v5872_v3, %s5457_s7 }
 0x216   : > { %v6353_v30 = vpop.permute.xlu0 %1291 }
 0x217   : > { %v6355_v57 = vpop.permute.xlu1 %1061 }
 0x218   : > { %8109 = vst [vmem:[#allocation81_spill] sm:$0xff] %v6355_v57  ;;  %1447 = vrot.lane.b32.xlu0 %v5890_v9, %s5455_s22  ;;  %v689_v57 = vld [vmem:[#allocation2 + $0x91] sm:$0xff] }
 0x219   : > { %1679 = vrot.lane.b32.xlu1 %v5882_v6, %s5457_s7 }
 0x21a   : > { %v6361_v56 = vpop.permute.xlu0 %1419 }
 0x21b   : > { %v6363_v62 = vpop.permute.xlu1 %1065 }
 0x21c   : > { %8110 = vst [vmem:[#allocation82_spill] sm:$0xff] %v6363_v62  ;;  %1575 = vrot.lane.b32.xlu0 %v696_v32, %s5456_s23  ;;  %v687_v62 = vld [vmem:[#allocation2 + $0x79] sm:$0xff] }
 0x21d   : > { %1425 = vrot.lane.b32.xlu1 %v6078_v4, %s5455_s22 }
 0x21e   : > { %v6368_v3 = vpop.permute.xlu0 %1547 }
 0x21f   : > { %v6370_v21 = vpop.permute.xlu1 %1069 }
 0x220   : > { %8111 = vst [vmem:[#allocation83_spill] sm:$0xff] %v6370_v21  ;;  %1703 = vrot.lane.b32.xlu0 %v728_v41, %s5457_s7 }
 0x221   : > { %1553 = vrot.lane.b32.xlu1 %v685_v14, %s5456_s23 }
 0x222   : > { %v6374_v6 = vpop.permute.xlu0 %1293 }
 0x223   : > { %v6376_v9 = vpop.permute.xlu1 %1073 }
 0x224   : > { %8112 = vst [vmem:[#allocation84_spill] sm:$0xff] %v6376_v9  ;;  %1323 = vrot.lane.b32.xlu0 %v728_v41, %s5454_s21  ;;  %v698_v9 = vld [vmem:[#allocation2 + $0xf9] sm:$0xff] }
 0x225   : > { %1681 = vrot.lane.b32.xlu1 %v5892_v11, %s5457_s7 }
 0x226   : > { %v6381_v32 = vpop.permute.xlu0 %1295 }
 0x227   : > { %v6383_v45 = vpop.permute.xlu1 %1077 }
 0x228   : > { %8113 = vst [vmem:[#allocation85_spill] sm:$0xff] %v6383_v45  ;;  %1451 = vrot.lane.b32.xlu0 %v5900_v15, %s5455_s22  ;;  %v730_v45 = vld [vmem:[#allocation2 + $0xfa] sm:$0xff] }
 0x229   : > { %1683 = vrot.lane.b32.xlu1 %v5902_v19, %s5457_s7 }
 0x22a   : > { %v6389_v14 = vpop.permute.xlu0 %1423 }
 0x22b   : > { %v6391_v21 = vpop.permute.xlu1 %1081 }
 0x22c   : > { %8114 = vst [vmem:[#allocation86_spill] sm:$0xff] %v6391_v21  ;;  %1579 = vrot.lane.b32.xlu0 %v698_v9, %s5456_s23 }
 0x22d   : > { %1429 = vrot.lane.b32.xlu1 %v6088_v54, %s5455_s22 }
 0x22e   : > { %v6396_v11 = vpop.permute.xlu0 %1551 }
 0x22f   : > { %v6398_v41 = vpop.permute.xlu1 %1085 }
 0x230   : > { %8115 = vst [vmem:[#allocation87_spill] sm:$0xff] %v6398_v41  ;;  %1707 = vrot.lane.b32.xlu0 %v730_v45, %s5457_s7  ;;  %v720_v41 = vld [vmem:[#allocation2 + $0x82] sm:$0xff] }
 0x231   : > { %1557 = vrot.lane.b32.xlu1 %v687_v62, %s5456_s23 }
 0x232   : > { %v6402_v15 = vpop.permute.xlu0 %1297 }
 0x233   : > { %v6404_v19 = vpop.permute.xlu1 %1089 }
 0x234   : > { %8116 = vst [vmem:[#allocation88_spill] sm:$0xff] %v6404_v19  ;;  %1327 = vrot.lane.b32.xlu0 %v730_v45, %s5454_s21  ;;  %v700_v19 = vld [vmem:[#allocation2 + $0x111] sm:$0xff] }
 0x235   : > { %1685 = vrot.lane.b32.xlu1 %v5912_v27, %s5457_s7 }
 0x236   : > { %v6409_v9 = vpop.permute.xlu0 %1299 }
 0x237   : > { %v6411_v21 = vpop.permute.xlu1 %1093 }
 0x238   : > { %8117 = vst [vmem:[#allocation89_spill] sm:$0xff] %v6411_v21  ;;  %1455 = vrot.lane.b32.xlu0 %v5910_v25, %s5455_s22  ;;  %v732_v21 = vld [vmem:[#allocation2 + $0x112] sm:$0xff] }
 0x239   : > { %1687 = vrot.lane.b32.xlu1 %v720_v41, %s5457_s7 }
 0x23a   : > { %v6416_v62 = vpop.permute.xlu0 %1427 }
 0x23b   : > { %v6418_v10 = vpop.permute.xlu1 %1161 }
 0x23c   : > { %1583 = vrot.lane.b32.xlu0 %v700_v19, %s5456_s23 }
 0x23d   : > { %1433 = vrot.lane.b32.xlu1 %v657_v60, %s5455_s22 }
 0x23e   : > { %v6422_v27 = vpop.permute.xlu0 %1555 }
 0x23f   : > { %v6424_v45 = vpop.permute.xlu1 %1165 }
 0x240   : > { %1711 = vrot.lane.b32.xlu0 %v732_v21, %s5457_s7 }
 0x241   : > { %1561 = vrot.lane.b32.xlu1 %v689_v57, %s5456_s23 }
 0x242   : > { %v6428_v25 = vpop.permute.xlu0 %1301 }
 0x243   : > { %v6430_v41 = vpop.permute.xlu1 %1169 }
 0x244   : > { %1331 = vrot.lane.b32.xlu0 %v732_v21, %s5454_s21 }
 0x245   : > { %1689 = vrot.lane.b32.xlu1 %v5920_v37, %s5457_s7 }
 0x246   : > { %v6435_v60 = vpop.permute.xlu0 %1303 }
 0x247   : > { %v6437_v19 = vpop.permute.xlu1 %1173 }
 0x248   : > { %1459 = vrot.lane.b32.xlu0 %v670_v24, %s5455_s22 }
 0x249   : > { %1309 = vrot.lane.b32.xlu1 %v626_v2, %s5454_s21 }
 0x24a   : > { %v6441_v57 = vpop.permute.xlu0 %1431 }
 0x24b   : > { %v6443_v8 = vpop.permute.xlu1 %1177 }
 0x24c   : > { %8118 = vst [vmem:[#allocation90_spill] sm:$0xff] %v6443_v8  ;;  %1587 = vrot.lane.b32.xlu0 %v702_v5, %s5456_s23 }
 0x24d   : > { %1437 = vrot.lane.b32.xlu1 %v659_v51, %s5455_s22 }
 0x24e   : > { %v6447_v37 = vpop.permute.xlu0 %1559 }
 0x24f   : > { %v6449_v21 = vpop.permute.xlu1 %1181 }
 0x250   : > { %8119 = vst [vmem:[#allocation91_spill] sm:$0xff] %v6449_v21  ;;  %1715 = vrot.lane.b32.xlu0 %v734_v61, %s5457_s7  ;;  %v672_v21 = vld [vmem:[#allocation2 + $0x140] sm:$0xff] }
 0x251   : > { %1565 = vrot.lane.b32.xlu1 %v691_v34, %s5456_s23 }
 0x252   : > { %v6453_v24 = vpop.permute.xlu0 %1305 }
 0x253   : > { %8120 = vst [vmem:[#allocation92_spill] sm:$0xff] %v6453_v24  ;;  %v6455_v2 = vpop.permute.xlu1 %1185  ;;  %v704_v24 = vld [vmem:[#allocation2 + $0x141] sm:$0xff] }
 0x254   : > { %8121 = vst [vmem:[#allocation93_spill] sm:$0xff] %v6455_v2  ;;  %1335 = vrot.lane.b32.xlu0 %v734_v61, %s5454_s21  ;;  %v661_v2 = vld [vmem:[#allocation2 + $0xc0] sm:$0xff] }
 0x255   : > { %1693 = vrot.lane.b32.xlu1 %v723_v20, %s5457_s7 }
 0x256   : > { %v6459_v51 = vpop.permute.xlu0 %1307 }
 0x257   : > { %8122 = vst [vmem:[#allocation94_spill] sm:$0xff] %v6459_v51  ;;  %v6461_v5 = vpop.permute.xlu1 %1189 }
 0x258   : > { %8123 = vst [vmem:[#allocation95_spill] sm:$0xff] %v6461_v5  ;;  %1463 = vrot.lane.b32.xlu0 %v672_v21, %s5455_s22  ;;  %v736_v5 = vld [vmem:[#allocation2 + $0x142] sm:$0xff] }
 0x259   : > { %1313 = vrot.lane.b32.xlu1 %v723_v20, %s5454_s21 }
 0x25a   : > { %v6465_v54 = vpop.permute.xlu0 %1435 }
 0x25b   : > { %8124 = vst [vmem:[#allocation96_spill] sm:$0xff] %v6465_v54  ;;  %v6467_v34 = vpop.permute.xlu1 %1193  ;;  %v674_v54 = vld [vmem:[#allocation2 + $0x158] sm:$0xff] }
 0x25c   : > { %8125 = vst [vmem:[#allocation97_spill] sm:$0xff] %v6467_v34  ;;  %1591 = vrot.lane.b32.xlu0 %v704_v24, %s5456_s23  ;;  %v725_v34 = vld [vmem:[#allocation2 + $0xc2] sm:$0xff] }
 0x25d   : > { %1441 = vrot.lane.b32.xlu1 %v661_v2, %s5455_s22 }
 0x25e   : > { %v6471_v61 = vpop.permute.xlu0 %1563 }
 0x25f   : > { %8126 = vst [vmem:[#allocation98_spill] sm:$0xff] %v6471_v61  ;;  %v6473_v51 = vpop.permute.xlu1 %1197 }
 0x260   : > { %8127 = vst [vmem:[#allocation99_spill] sm:$0xff] %v6473_v51  ;;  %1719 = vrot.lane.b32.xlu0 %v736_v5, %s5457_s7 }
 0x261   : > { %1569 = vrot.lane.b32.xlu1 %v693_v49, %s5456_s23 }
 0x262   : > { %v6477_v20 = vpop.permute.xlu0 %1691 }
 0x263   : > { %8128 = vst [vmem:[#allocation100_spill] sm:$0xff] %v6477_v20  ;;  %v6479_v21 = vpop.permute.xlu1 %1201  ;;  %v663_v20 = vld [vmem:[#allocation2 + $0xd8] sm:$0xff] }
 0x264   : > { %8129 = vst [vmem:[#allocation101_spill] sm:$0xff] %v6479_v21  ;;  %1211 = vrot.lane.b32.xlu0 %v704_v24, %s5453_s20  ;;  %v456_v24 = vld [vmem:[#allocation2] sm:$0xff] }
 0x265   : > { %1697 = vrot.lane.b32.xlu1 %v725_v34, %s5457_s7 }
 0x266   : > { %v6483_v2 = vpop.permute.xlu0 %1311 }
 0x267   : > { %8130 = vst [vmem:[#allocation102_spill] sm:$0xff] %v6483_v2  ;;  %v6485_v61 = vpop.permute.xlu1 %1205  ;;  %v457_v2 = vld [vmem:[#allocation2 + $0x8] sm:$0xff] }
 0x268   : > { %8131 = vst [vmem:[#allocation103_spill] sm:$0xff] %v6485_v61  ;;  %1339 = vrot.lane.b32.xlu0 %v736_v5, %s5454_s21  ;;  %v695_v61 = vld [vmem:[#allocation2 + $0xd9] sm:$0xff]  ;;  %v1769_v5 = vsel %vm240_vm0, %v456_v24, %v5798_v7 }
 0x269   : > { %1317 = vrot.lane.b32.xlu1 %v725_v34, %s5454_s21  ;;  %v1770_v34 = vsel %vm240_vm0, %v457_v2, %v5805_v17  ;;  %v738_v24 = vld [vmem:[#allocation2 + $0x15a] sm:$0xff] }
 0x26a   : > { %v6489_v51 = vpop.permute.xlu0 %1439  ;;  %v1803_v7 = vsel %vm1801_vm4, %v1770_v34, %v6127_v52 }
 0x26b   : > { %8132 = vst [vmem:[#allocation104_spill] sm:$0xff] %v6489_v51  ;;  %v1290_v49 = vpop.permute.xlu1 %1289 }
 0x26c   : > { %1467 = vrot.lane.b32.xlu0 %v674_v54, %s5455_s22  ;;  %v1802_v54 = vsel %vm1801_vm4, %v1769_v5, %v6120_v36 }
 0x26d   : > { %1445 = vrot.lane.b32.xlu1 %v663_v20, %s5455_s22  ;;  %v1835_v20 = vsel %vm1834_vm5, %v1802_v54, %v6307_v26  ;;  %v1836_v26 = vsel %vm1834_vm5, %v1803_v7, %v6118_v58  ;;  %v697_v7 = vld [vmem:[#allocation2 + $0xf1] sm:$0xff] }
 0x26e   : > { %v6493_v21 = vpop.permute.xlu0 %1567 }
 0x26f   : > { %8133 = vst [vmem:[#allocation105_spill] sm:$0xff] %v6493_v21  ;;  %v1418_v8 = vpop.permute.xlu1 %1417 }
 0x270   : > { %1595 = vrot.lane.b32.xlu0 %v706_v22, %s5456_s23 }
 0x271   : > { %1573 = vrot.lane.b32.xlu1 %v695_v61, %s5456_s23  ;;  %v1867_v61 = vsel %vm296_vm3, %v1835_v20, %v6418_v10  ;;  %v665_v20 = vld [vmem:[#allocation2 + $0xf0] sm:$0xff] }
 0x272   : > { %v6505_v21 = vpop.permute.xlu0 %1695  ;;  %v1900_v36 = vsel %vm1899_vm6, %v1867_v61, %v1290_v49  ;;  %v1868_v49 = vsel %vm296_vm3, %v1836_v26, %v6238_v28 }
 0x273   : > { %v1546_v51 = vpop.permute.xlu1 %1545  ;;  %v1933_v17 = vsel %vm1932_vm7, %v1900_v36, %v1418_v8  ;;  %v1901_v54 = vsel %vm1899_vm6, %v1868_v49, %v6353_v30  ;;  %v708_v36 = vld [vmem:[#allocation2 + $0x171] sm:$0xff] }
 0x274   : > { %1723 = vrot.lane.b32.xlu0 %v738_v24, %s5457_s7  ;;  %v1966_v52 = vsel %vm1965_vm8, %v1933_v17, %v1546_v51  ;;  %v1934_v58 = vsel %vm1932_vm7, %v1901_v54, %v6361_v56  ;;  %v729_v17 = vld [vmem:[#allocation2 + $0xf2] sm:$0xff] }
 0x275   : > { %1701 = vrot.lane.b32.xlu1 %v727_v63, %s5457_s7  ;;  %v1967_v8 = vsel %vm1965_vm8, %v1934_v58, %v6368_v3  ;;  %v676_v3 = vld [vmem:[#allocation2 + $0x170] sm:$0xff] }
 0x276   : > { %v6518_v2 = vpop.permute.xlu0 %1315 }
 0x277   : > { %v1674_v10 = vpop.permute.xlu1 %1673 }
 0x278   : > { %v1999_v5 = vsel %vm1998_vm9, %v1966_v52, %v1674_v10  ;;  %1215 = vrot.lane.b32.xlu0 %v706_v22, %s5453_s20 }
 0x279   : > { %1321 = vrot.lane.b32.xlu1 %v727_v63, %s5454_s21  ;;  %4660 = vmatprep.mubr.msk.f32.mxu0 %vm2047_vm10, %v1999_v5  ;;  %v1771_v63 = vsel %vm240_vm0, %v6050_v12, %v5809_v23  ;;  %v1772_v23 = vsel %vm240_vm0, %v5816_v35, %v5814_v33 }
 0x27a   : > { %v6532_v51 = vpop.permute.xlu0 %1443  ;;  %v1804_v30 = vsel %vm1801_vm4, %v1771_v63, %v6134_v31  ;;  %v1805_v31 = vsel %vm1801_vm4, %v1772_v23, %v6141_v29 }
 0x27b   : > { %v1676_v28 = vpop.permute.xlu1 %1675  ;;  %v1837_v61 = vsel %vm1834_vm5, %v1804_v30, %v6314_v48  ;;  %v1838_v33 = vsel %vm1834_vm5, %v1805_v31, %v6125_v1  ;;  %v678_v30 = vld [vmem:[#allocation2 + $0x188] sm:$0xff] }
 0x27c   : > { %v2000_v34 = vsel %vm1998_vm9, %v1967_v8, %v1676_v28  ;;  %1343 = vrot.lane.b32.xlu0 %v738_v24, %s5454_s21  ;;  %v1869_v24 = vsel %vm296_vm3, %v1837_v61, %v6424_v45  ;;  %v1870_v29 = vsel %vm296_vm3, %v1838_v33, %v6252_v38  ;;  %v667_v8 = vld [vmem:[#allocation2 + $0x108] sm:$0xff] }
 0x27d   : > { %1449 = vrot.lane.b32.xlu1 %v665_v20, %s5455_s22  ;;  %4661 = vmatmul.mubr.msk.f32.vlgmr.msra.gmra.mrb[0].mxu0 %vm2047_vm10, %v2000_v34  ;;  %v1902_v48 = vsel %vm1899_vm6, %v1869_v24, %v6374_v6  ;;  %v740_v6 = vld [vmem:[#allocation2 + $0x172] sm:$0xff]  ;;  %v1903_v49 = vsel %vm1899_vm6, %v1870_v29, %v6381_v32  ;;  %v1773_v32 = vsel %vm240_vm0, %v6060_v13, %v5821_v39  ;;  %v699_v28 = vld [vmem:[#allocation2 + $0x109] sm:$0xff]  ;;  %v701_v33 = vld [vmem:[#allocation2 + $0x121] sm:$0xff] }
 0x27e   : > { %v6543_v56 = vpop.permute.xlu0 %1571  ;;  %v1936_v5 = vsel %vm1932_vm7, %v1903_v49, %v6389_v14  ;;  %v5382_v29 = vld [vmem:[#allocation2 + $0x50] sm:$0xff]  ;;  %v733_v49 = vld [vmem:[#allocation2 + $0x122] sm:$0xff] }
 0x27f   : > { %v1422_v22 = vpop.permute.xlu1 %1421  ;;  %v1969_v1 = vsel %vm1965_vm8, %v1936_v5, %v6396_v11  ;;  %v1806_v11 = vsel %vm1801_vm4, %v1773_v32, %v6148_v40  ;;  %v680_v5 = vld [vmem:[#allocation2 + $0x1a0] sm:$0xff] }
 0x280   : > { %1471 = vrot.lane.b32.xlu0 %v676_v3, %s5455_s22  ;;  %v1935_v26 = vsel %vm1932_vm7, %v1902_v48, %v1422_v22  ;;  %v1839_v34 = vsel %vm1834_vm5, %v1806_v11, %v6320_v18  ;;  %v5381_v22 = vld [vmem:[#allocation2 + $0x38] sm:$0xff]  ;;  %v731_v3 = vld [vmem:[#allocation2 + $0x10a] sm:$0xff]  ;;  %v669_v48 = vld [vmem:[#allocation2 + $0x120] sm:$0xff] }
 0x281   : > { %1577 = vrot.lane.b32.xlu1 %v697_v7, %s5456_s23  ;;  %v1871_v20 = vsel %vm296_vm3, %v1839_v34, %v6430_v41  ;;  %v1774_v39 = vsel %vm240_vm0, %v5381_v22, %v5828_v44  ;;  %v671_v22 = vld [vmem:[#allocation2 + $0x138] sm:$0xff] }
 0x282   : > { %v6561_v45 = vpop.permute.xlu0 %1699  ;;  %v1807_v40 = vsel %vm1801_vm4, %v1774_v39, %v6155_v46  ;;  %v1904_v18 = vsel %vm1899_vm6, %v1871_v20, %v6402_v15  ;;  %v710_v15 = vld [vmem:[#allocation2 + $0x189] sm:$0xff] }
 0x283   : > { %v1550_v12 = vpop.permute.xlu1 %1549  ;;  %v1840_v7 = vsel %vm1834_vm5, %v1807_v40, %v6132_v53  ;;  %v5383_v39 = vld [vmem:[#allocation2 + $0x68] sm:$0xff] }
 0x284   : > { %1599 = vrot.lane.b32.xlu0 %v708_v36, %s5456_s23  ;;  %v1968_v35 = vsel %vm1965_vm8, %v1935_v26, %v1550_v12  ;;  %v1872_v46 = vsel %vm296_vm3, %v1840_v7, %v6266_v42  ;;  %v8138_v7 = vld [vmem:[#allocation51_spill] sm:$0xff] }
 0x285   : > { %1705 = vrot.lane.b32.xlu1 %v729_v17, %s5457_s7  ;;  %v1905_v12 = vsel %vm1899_vm6, %v1872_v46, %v6409_v9 }
 0x286   : > { %v6578_v38 = vpop.permute.xlu0 %1319  ;;  %v1938_v53 = vsel %vm1932_vm7, %v1905_v12, %v6416_v62  ;;  %v1775_v62 = vsel %vm240_vm0, %v6068_v59, %v5838_v50 }
 0x287   : > { %v1678_v52 = vpop.permute.xlu1 %1677  ;;  %v1971_v42 = vsel %vm1965_vm8, %v1938_v53, %v6422_v27  ;;  %v1808_v27 = vsel %vm1801_vm4, %v1775_v62, %v6162_v16  ;;  %v8141_v53 = vld [vmem:[#allocation90_spill] sm:$0xff] }
 0x288   : > { %v2001_v10 = vsel %vm1998_vm9, %v1968_v35, %v1678_v52  ;;  %1727 = vrot.lane.b32.xlu0 %v740_v6, %s5457_s7  ;;  %v1841_v35 = vsel %vm1834_vm5, %v1808_v27, %v6327_v55 }
 0x289   : > { %1325 = vrot.lane.b32.xlu1 %v729_v17, %s5454_s21  ;;  %4663 = vmatprep.mubr.msk.f32.mxu0 %vm2047_vm10, %v2001_v10  ;;  %v742_v17 = vld [vmem:[#allocation2 + $0x18a] sm:$0xff]  ;;  %v1873_v52 = vsel %vm296_vm3, %v1841_v35, %v6437_v19  ;;  %v8134_v10 = vld [vmem:[#allocation7_spill] sm:$0xff] }
 0x28a   : > { %v6595_v63 = vpop.permute.xlu0 %1447  ;;  %v1906_v55 = vsel %vm1899_vm6, %v1873_v52, %v6428_v25 }
 0x28b   : > { %v1680_v54 = vpop.permute.xlu1 %1679 }
 0x28c   : > { %v2002_v58 = vsel %vm1998_vm9, %v1969_v1, %v1680_v54  ;;  %1219 = vrot.lane.b32.xlu0 %v708_v36, %s5453_s20  ;;  %v8135_v1 = vld [vmem:[#allocation45_spill] sm:$0xff] }
 0x28d   : > { %1453 = vrot.lane.b32.xlu1 %v667_v8, %s5455_s22  ;;  %4664 = vmatmul.mubr.msk.f32.gmra.mrb[2].mxu0 %vm2047_vm10, %v2002_v58 }
 0x28e   : > { %v6611_v24 = vpop.permute.xlu0 %1575 }
 0x28f   : > { %v1426_v14 = vpop.permute.xlu1 %1425 }
 0x290   : > { %1347 = vrot.lane.b32.xlu0 %v740_v6, %s5454_s21  ;;  %v1937_v41 = vsel %vm1932_vm7, %v1904_v18, %v1426_v14  ;;  %v1776_v6 = vsel %vm240_vm0, %v5382_v29, %v8134_v10  ;;  %v8146_v10 = vld [vmem:[#allocation98_spill] sm:$0xff] }
 0x291   : > { %1581 = vrot.lane.b32.xlu1 %v699_v28, %s5456_s23  ;;  %v1809_v59 = vsel %vm1801_vm4, %v1776_v6, %v6169_v0  ;;  %v712_v28 = vld [vmem:[#allocation2 + $0x1a1] sm:$0xff] }
 0x292   : > { %v6626_v9 = vpop.permute.xlu0 %1703  ;;  %v1842_v54 = vsel %vm1834_vm5, %v1809_v59, %v8135_v1  ;;  %v8147_v59 = vld [vmem:[#allocation100_spill] sm:$0xff]  ;;  %v673_v1 = vld [vmem:[#allocation2 + $0x150] sm:$0xff] }
 0x293   : > { %v1554_v13 = vpop.permute.xlu1 %1553  ;;  %v1874_v0 = vsel %vm296_vm3, %v1842_v54, %v6280_v43  ;;  %v8148_v54 = vld [vmem:[#allocation10_spill] sm:$0xff] }
 0x294   : > { %1475 = vrot.lane.b32.xlu0 %v678_v30, %s5455_s22  ;;  %v1970_v44 = vsel %vm1965_vm8, %v1937_v41, %v1554_v13  ;;  %v1907_v25 = vsel %vm1899_vm6, %v1874_v0, %v6435_v60  ;;  %v744_v60 = vld [vmem:[#allocation2 + $0x1a2] sm:$0xff]  ;;  %v8136_v13 = vld [vmem:[#allocation9_spill] sm:$0xff] }
 0x295   : > { %1709 = vrot.lane.b32.xlu1 %v731_v3, %s5457_s7  ;;  %v1940_v14 = vsel %vm1932_vm7, %v1907_v25, %v6441_v57  ;;  %v1778_v40 = vsel %vm240_vm0, %v5383_v39, %v8136_v13  ;;  %v5384_v0 = vld [vmem:[#allocation2 + $0x80] sm:$0xff] }
 0x296   : > { %v6644_v16 = vpop.permute.xlu0 %1323  ;;  %v1973_v43 = vsel %vm1965_vm8, %v1940_v14, %v6447_v37  ;;  %v8137_v37 = vld [vmem:[#allocation8_spill] sm:$0xff]  ;;  %v1811_v41 = vsel %vm1801_vm4, %v1778_v40, %v6184_v47  ;;  %v8151_v14 = vld [vmem:[#allocation54_spill] sm:$0xff]  ;;  %v8154_v39 = vld [vmem:[#allocation47_spill] sm:$0xff] }
 0x297   : > { %v1682_v61 = vpop.permute.xlu1 %1681  ;;  %v1777_v18 = vsel %vm240_vm0, %v6078_v4, %v8137_v37  ;;  %v8155_v40 = vld [vmem:[#allocation91_spill] sm:$0xff]  ;;  %v705_v37 = vld [vmem:[#allocation2 + $0x151] sm:$0xff] }
 0x298   : > { %v2003_v23 = vsel %vm1998_vm9, %v1970_v44, %v1682_v61  ;;  %1603 = vrot.lane.b32.xlu0 %v710_v15, %s5456_s23  ;;  %v1810_v44 = vsel %vm1801_vm4, %v1777_v18, %v8138_v7  ;;  %v8139_v61 = vld [vmem:[#allocation76_spill] sm:$0xff]  ;;  %v8156_v18 = vld [vmem:[#allocation71_spill] sm:$0xff] }
 0x299   : > { %1329 = vrot.lane.b32.xlu1 %v731_v3, %s5454_s21  ;;  %4666 = vmatprep.mubr.msk.f32.mxu0 %vm2047_vm10, %v2003_v23  ;;  %v703_v3 = vld [vmem:[#allocation2 + $0x139] sm:$0xff]  ;;  %v1843_v46 = vsel %vm1834_vm5, %v1810_v44, %v8139_v61 }
 0x29a   : > { %v6663_v11 = vpop.permute.xlu0 %1451  ;;  %v1875_v4 = vsel %vm296_vm3, %v1843_v46, %v8141_v53  ;;  %v8157_v44 = vld [vmem:[#allocation102_spill] sm:$0xff] }
 0x29b   : > { %v1684_v31 = vpop.permute.xlu1 %1683 }
 0x29c   : > { %v2004_v36 = vsel %vm1998_vm9, %v1971_v42, %v1684_v31  ;;  %1731 = vrot.lane.b32.xlu0 %v742_v17, %s5457_s7  ;;  %v735_v42 = vld [vmem:[#allocation2 + $0x13a] sm:$0xff]  ;;  %v8142_v31 = vld [vmem:[#allocation69_spill] sm:$0xff] }
 0x29d   : > { %1457 = vrot.lane.b32.xlu1 %v669_v48, %s5455_s22  ;;  %4667 = vmatmul.mubr.msk.f32.gmra.mrb[4].mxu0 %vm2047_vm10, %v2004_v36  ;;  %v8143_v36 = vld [vmem:[#allocation92_spill] sm:$0xff]  ;;  %v8144_v48 = vld [vmem:[#allocation94_spill] sm:$0xff] }
 0x29e   : > { %v6674_v30 = vpop.permute.xlu0 %1579 }
 0x29f   : > { %v1430_v26 = vpop.permute.xlu1 %1429 }
 0x2a0   : > { %1223 = vrot.lane.b32.xlu0 %v710_v15, %s5453_s20  ;;  %v1939_v19 = vsel %vm1932_vm7, %v1906_v55, %v1430_v26  ;;  %v8140_v15 = vld [vmem:[#allocation46_spill] sm:$0xff] }
 0x2a1   : > { %1585 = vrot.lane.b32.xlu1 %v701_v33, %s5456_s23  ;;  %v1844_v12 = vsel %vm1834_vm5, %v1811_v41, %v8140_v15  ;;  %v8145_v33 = vld [vmem:[#allocation96_spill] sm:$0xff] }
 0x2a2   : > { %v1876_v47 = vsel %vm296_vm3, %v1844_v12, %v8142_v31  ;;  %v6698_v26 = vpop.permute.xlu0 %1707 }
 0x2a3   : > { %v1558_v50 = vpop.permute.xlu1 %1557  ;;  %v1909_v62 = vsel %vm1899_vm6, %v1876_v47, %v8144_v48 }
 0x2a4   : > { %1351 = vrot.lane.b32.xlu0 %v742_v17, %s5454_s21  ;;  %v1972_v58 = vsel %vm1965_vm8, %v1939_v19, %v1558_v50  ;;  %v1908_v17 = vsel %vm1899_vm6, %v1875_v4, %v8143_v36  ;;  %v1942_v35 = vsel %vm1932_vm7, %v1909_v62, %v8145_v33  ;;  %v8159_v4 = vld [vmem:[#allocation105_spill] sm:$0xff]  ;;  %v8160_v33 = vld [vmem:[#allocation12_spill] sm:$0xff] }
 0x2a5   : > { %1713 = vrot.lane.b32.xlu1 %v733_v49, %s5457_s7  ;;  %v1975_v6 = vsel %vm1965_vm8, %v1942_v35, %v8146_v10  ;;  %v737_v36 = vld [vmem:[#allocation2 + $0x152] sm:$0xff]  ;;  %v8161_v35 = vld [vmem:[#allocation40_spill] sm:$0xff] }
 0x2a6   : > { %v6712_v19 = vpop.permute.xlu0 %1327  ;;  %v8163_v10 = vld [vmem:[#allocation13_spill] sm:$0xff] }
 0x2a7   : > { %v1686_v8 = vpop.permute.xlu1 %1685 }
 0x2a8   : > { %v2005_v32 = vsel %vm1998_vm9, %v1972_v58, %v1686_v8  ;;  %1479 = vrot.lane.b32.xlu0 %v680_v5, %s5455_s22  ;;  %v8149_v58 = vld [vmem:[#allocation37_spill] sm:$0xff] }
 0x2a9   : > { %1333 = vrot.lane.b32.xlu1 %v733_v49, %s5454_s21  ;;  %4669 = vmatprep.mubr.msk.f32.mxu0 %vm2047_vm10, %v2005_v32  ;;  %v2008_v49 = vsel %vm1998_vm9, %v1975_v6, %v8147_v59  ;;  %v1779_v8 = vsel %vm240_vm0, %v8149_v58, %v8148_v54  ;;  %v8150_v32 = vld [vmem:[#allocation11_spill] sm:$0xff]  ;;  %v8167_v58 = vld [vmem:[#allocation48_spill] sm:$0xff] }
 0x2aa   : > { %v1780_v25 = vsel %vm240_vm0, %v5384_v0, %v8150_v32  ;;  %v8168_v0 = vld [vmem:[#allocation93_spill] sm:$0xff] }
 0x2ab   : > { %v1688_v34 = vpop.permute.xlu1 %1687 }
 0x2ac   : > { %v2006_v20 = vsel %vm1998_vm9, %v1973_v43, %v1688_v34  ;;  %1607 = vrot.lane.b32.xlu0 %v712_v28, %s5456_s23  ;;  %v1812_v28 = vsel %vm1801_vm4, %v1779_v8, %v8151_v14  ;;  %v6723_v43 = vpop.permute.xlu0 %1455  ;;  %v8152_v34 = vld [vmem:[#allocation18_spill] sm:$0xff]  ;;  %v675_v14 = vld [vmem:[#allocation2 + $0x168] sm:$0xff] }
 0x2ad   : > { %1461 = vrot.lane.b32.xlu1 %v671_v22, %s5455_s22  ;;  %4670 = vmatmul.mubr.msk.f32.gmra.mrb[6].mxu0 %vm2047_vm10, %v2006_v20  ;;  %v1813_v20 = vsel %vm1801_vm4, %v1780_v25, %v8152_v34  ;;  %v8153_v22 = vld [vmem:[#allocation78_spill] sm:$0xff] }
 0x2ae   : > { %v1846_v13 = vsel %vm1834_vm5, %v1813_v20, %v8154_v39 }
 0x2af   : > { %v1434_v57 = vpop.permute.xlu1 %1433  ;;  %v1878_v41 = vsel %vm296_vm3, %v1846_v13, %v8156_v18 }
 0x2b0   : > { %1735 = vrot.lane.b32.xlu0 %v744_v60, %s5457_s7  ;;  %v1941_v27 = vsel %vm1932_vm7, %v1908_v17, %v1434_v57  ;;  %v1845_v60 = vsel %vm1834_vm5, %v1812_v28, %v8153_v22  ;;  %v1911_v61 = vsel %vm1899_vm6, %v1878_v41, %v8157_v44  ;;  %v6745_v31 = vpop.permute.xlu0 %1583  ;;  %v8169_v28 = vld [vmem:[#allocation72_spill] sm:$0xff] }
 0x2b1   : > { %1589 = vrot.lane.b32.xlu1 %v703_v3, %s5456_s23  ;;  %v739_v41 = vld [vmem:[#allocation2 + $0x16a] sm:$0xff] }
 0x2b2   : > { %v5386_v44 = vld [vmem:[#allocation2 + $0xa8] sm:$0xff] }
 0x2b3   : > { %v1562_v23 = vpop.permute.xlu1 %1561 }
 0x2b4   : > { %v1974_v52 = vsel %vm1965_vm8, %v1941_v27, %v1562_v23  ;;  %v8158_v23 = vld [vmem:[#allocation104_spill] sm:$0xff]  ;;  %v6754_v62 = vpop.permute.xlu0 %1711 }
 0x2b5   : > { %1717 = vrot.lane.b32.xlu1 %v735_v42, %s5457_s7  ;;  %v1944_v15 = vsel %vm1932_vm7, %v1911_v61, %v8158_v23  ;;  %v8170_v61 = vld [vmem:[#allocation14_spill] sm:$0xff]  ;;  %v8171_v23 = vld [vmem:[#allocation15_spill] sm:$0xff] }
 0x2b7   : > { %v1690_v29 = vpop.permute.xlu1 %1689 }
 0x2b8   : > { %v2007_v50 = vsel %vm1998_vm9, %v1974_v52, %v1690_v29  ;;  %v1781_v52 = vsel %vm240_vm0, %v8161_v35, %v8160_v33  ;;  %v5385_v29 = vld [vmem:[#allocation2 + $0x98] sm:$0xff]  ;;  %v6808_v25 = vpop.permute.xlu0 %1331  ;;  %v8176_v33 = vld [vmem:[#allocation95_spill] sm:$0xff] }
 0x2b9   : > { %1209 = vrot.lane.b32.xlu1 %v703_v3, %s5453_s20  ;;  %4672 = vmatprep.mubr.msk.f32.mxu0 %vm2047_vm10, %v2007_v50  ;;  %v1877_v3 = vsel %vm296_vm3, %v1845_v60, %v8155_v40  ;;  %v1782_v6 = vsel %vm240_vm0, %v5385_v29, %v8163_v10  ;;  %v8164_v50 = vld [vmem:[#allocation56_spill] sm:$0xff] }
 0x2ba   : > { %4673 = vmatmul.mubr.msk.f32.gmra.mrb[8].mxu0 %vm2047_vm10, %v2008_v49  ;;  %v1814_v59 = vsel %vm1801_vm4, %v1781_v52, %v8164_v50  ;;  %v8165_v49 = vld [vmem:[#allocation20_spill] sm:$0xff]  ;;  %v8177_v52 = vld [vmem:[#allocation73_spill] sm:$0xff] }
 0x2bb   : > { %v1310_v55 = vpop.permute.xlu1 %1309 }
 0x2bc   : > { %v1910_v7 = vsel %vm1899_vm6, %v1877_v3, %v1310_v55  ;;  %v1815_v55 = vsel %vm1801_vm4, %v1782_v6, %v8165_v49 }
 0x2bd   : > { %1337 = vrot.lane.b32.xlu1 %v735_v42, %s5454_s21  ;;  %v1977_v42 = vsel %vm1965_vm8, %v1944_v15, %v8159_v4  ;;  %v1848_v8 = vsel %vm1834_vm5, %v1815_v55, %v8167_v58  ;;  %v8173_v4 = vld [vmem:[#allocation23_spill] sm:$0xff] }
 0x2be   : > { %v2010_v17 = vsel %vm1998_vm9, %v1977_v42, %v6505_v21  ;;  %v8162_v21 = vmov 0.0   ;;  %v1880_v34 = vsel %vm296_vm3, %v1848_v8, %v8169_v28  ;;  %v709_v8 = vld [vmem:[#allocation2 + $0x181] sm:$0xff] }
 0x2bf   : > { %v1438_v5 = vpop.permute.xlu1 %1437  ;;  %303 = vst.msk [vmem:[#allocation3 + $0x28] sm:$0x3] %vm299_vm11, %v8162_v21  ;;  %300 = vst.msk [vmem:[#allocation3 + $0x10] sm:$0x3] %vm299_vm11, %v8162_v21  ;;  %v1913_v22 = vsel %vm1899_vm6, %v1880_v34, %v6518_v2  ;;  %v6827_v2 = vpop.permute.xlu0 %1459  ;;  %v8179_v34 = vld [vmem:[#allocation17_spill] sm:$0xff] }
 0x2c0   : > { %v1943_v46 = vsel %vm1932_vm7, %v1910_v7, %v1438_v5  ;;  %306 = vst.msk [vmem:[#allocation3 + $0x40] sm:$0x3] %vm299_vm11, %v8162_v21  ;;  %309 = vst.msk [vmem:[#allocation3 + $0x58] sm:$0x3] %vm299_vm11, %v8162_v21  ;;  %v8166_v5 = vld [vmem:[#allocation80_spill] sm:$0xff] }
 0x2c1   : > { %1465 = vrot.lane.b32.xlu1 %v673_v1, %s5455_s22  ;;  %312 = vst.msk [vmem:[#allocation3 + $0x70] sm:$0x3] %vm299_vm11, %v8162_v21  ;;  %315 = vst.msk [vmem:[#allocation3 + $0x88] sm:$0x3] %vm299_vm11, %v8162_v21  ;;  %v1847_v1 = vsel %vm1834_vm5, %v1814_v59, %v8166_v5 }
 0x2c2   : > { %318 = vst.msk [vmem:[#allocation3 + $0xa0] sm:$0x3] %vm299_vm11, %v8162_v21  ;;  %321 = vst.msk [vmem:[#allocation3 + $0xb8] sm:$0x3] %vm299_vm11, %v8162_v21  ;;  %v1879_v32 = vsel %vm296_vm3, %v1847_v1, %v8168_v0 }
 0x2c3   : > { %v1566_v57 = vpop.permute.xlu1 %1565  ;;  %324 = vst.msk [vmem:[#allocation3 + $0xd0] sm:$0x3] %vm299_vm11, %v8162_v21  ;;  %327 = vst.msk [vmem:[#allocation3 + $0xe8] sm:$0x3] %vm299_vm11, %v8162_v21 }
 0x2c4   : > { %v1976_v12 = vsel %vm1965_vm8, %v1943_v46, %v1566_v57  ;;  %330 = vst.msk [vmem:[#allocation3 + $0x100] sm:$0x3] %vm299_vm11, %v8162_v21  ;;  %333 = vst.msk [vmem:[#allocation3 + $0x118] sm:$0x3] %vm299_vm11, %v8162_v21  ;;  %v1946_v57 = vsel %vm1932_vm7, %v1913_v22, %v6532_v51  ;;  %v1783_v46 = vsel %vm240_vm0, %v5386_v44, %v8170_v61  ;;  %v8180_v22 = vld [vmem:[#allocation60_spill] sm:$0xff]  ;;  %v8185_v44 = vld [vmem:[#allocation74_spill] sm:$0xff] }
 0x2c5   : > { %1593 = vrot.lane.b32.xlu1 %v705_v37, %s5456_s23  ;;  %336 = vst.msk [vmem:[#allocation3 + $0x130] sm:$0x3] %vm299_vm11, %v8162_v21  ;;  %339 = vst.msk [vmem:[#allocation3 + $0x148] sm:$0x3] %vm299_vm11, %v8162_v21  ;;  %v1979_v40 = vsel %vm1965_vm8, %v1946_v57, %v6543_v56  ;;  %v6831_v56 = vpop.permute.xlu0 %1587 }
 0x2c6   : > { %342 = vst.msk [vmem:[#allocation3 + $0x160] sm:$0x3] %vm299_vm11, %v8162_v21  ;;  %345 = vst.msk [vmem:[#allocation3 + $0x178] sm:$0x3] %vm299_vm11, %v8162_v21  ;;  %v2012_v18 = vsel %vm1998_vm9, %v1979_v40, %v6561_v45  ;;  %v5387_v45 = vld [vmem:[#allocation2 + $0xb0] sm:$0xff]  ;;  %v8182_v40 = vld [vmem:[#allocation82_spill] sm:$0xff] }
 0x2c7   : > { %v1694_v53 = vpop.permute.xlu1 %1693  ;;  %348 = vst.msk [vmem:[#allocation3 + $0x190] sm:$0x3] %vm299_vm11, %v8162_v21  ;;  %351 = vst.msk [vmem:[#allocation3 + $0x1a8] sm:$0x3] %vm299_vm11, %v8162_v21  ;;  %v1784_v15 = vsel %vm240_vm0, %v5387_v45, %v8171_v23 }
 0x2c8   : > { %v2009_v47 = vsel %vm1998_vm9, %v1976_v12, %v1694_v53  ;;  %v8172_v12 = vld [vmem:[#allocation58_spill] sm:$0xff]  ;;  %v1817_v42 = vsel %vm1801_vm4, %v1784_v15, %v8173_v4 }
 0x2c9   : > { %1721 = vrot.lane.b32.xlu1 %v737_v36, %s5457_s7  ;;  %4675 = vmatprep.mubr.msk.f32.mxu0 %vm2047_vm10, %v2009_v47  ;;  %v1816_v53 = vsel %vm1801_vm4, %v1783_v46, %v8172_v12  ;;  %v8174_v47 = vld [vmem:[#allocation81_spill] sm:$0xff]  ;;  %v6854_v6 = vpop.permute.xlu0 %1715 }
 0x2ca   : > { %4676 = vmatmul.mubr.msk.f32.gmra.mrb[10].mxu0 %vm2047_vm10, %v2010_v17 }
 0x2cb   : > { %v1314_v48 = vpop.permute.xlu1 %1313 }
 0x2cc   : > { %v1912_v20 = vsel %vm1899_vm6, %v1879_v32, %v1314_v48  ;;  %v8175_v48 = vld [vmem:[#allocation49_spill] sm:$0xff]  ;;  %v5388_v32 = vld [vmem:[#allocation2 + $0xc0] sm:$0xff] }
 0x2cd   : > { %1213 = vrot.lane.b32.xlu1 %v705_v37, %s5453_s20  ;;  %v707_v37 = vld [vmem:[#allocation2 + $0x169] sm:$0xff] }
 0x2cf   : > { %v1442_v27 = vpop.permute.xlu1 %1441 }
 0x2d0   : > { %v1945_v60 = vsel %vm1932_vm7, %v1912_v20, %v1442_v27  ;;  %v1850_v27 = vsel %vm1834_vm5, %v1817_v42, %v8175_v48 }
 0x2d1   : > { %1341 = vrot.lane.b32.xlu1 %v737_v36, %s5454_s21  ;;  %v1849_v36 = vsel %vm1834_vm5, %v1816_v53, %v8174_v47  ;;  %v1882_v21 = vsel %vm296_vm3, %v1850_v27, %v8177_v52  ;;  %v5390_v27 = vld [vmem:[#allocation2 + $0xd8] sm:$0xff]  ;;  %v8187_v52 = vld [vmem:[#allocation21_spill] sm:$0xff] }
 0x2d2   : > { %v1881_v35 = vsel %vm296_vm3, %v1849_v36, %v8176_v33  ;;  %v1915_v10 = vsel %vm1899_vm6, %v1882_v21, %v6578_v38  ;;  %v8186_v33 = vld [vmem:[#allocation19_spill] sm:$0xff] }
 0x2d3   : > { %v1570_v54 = vpop.permute.xlu1 %1569  ;;  %v1948_v59 = vsel %vm1932_vm7, %v1915_v10, %v6595_v63  ;;  %v6868_v63 = vpop.permute.xlu0 %1335 }
 0x2d4   : > { %v1978_v39 = vsel %vm1965_vm8, %v1945_v60, %v1570_v54  ;;  %v1981_v5 = vsel %vm1965_vm8, %v1948_v59, %v6611_v24  ;;  %v677_v54 = vld [vmem:[#allocation2 + $0x180] sm:$0xff]  ;;  %v2466_v59 = vld [vmem:[#allocation3 + $0x1] sm:$0xff] }
 0x2d5   : > { %1469 = vrot.lane.b32.xlu1 %v675_v14, %s5455_s22  ;;  %v2014_v58 = vsel %vm1998_vm9, %v1981_v5, %v6626_v9  ;;  %v741_v24 = vld [vmem:[#allocation2 + $0x182] sm:$0xff] }
 0x2d6   : > { %v8178_v14 = vld [vmem:[#allocation16_spill] sm:$0xff] }
 0x2d7   : > { %v1698_v13 = vpop.permute.xlu1 %1697  ;;  %v1785_v28 = vsel %vm240_vm0, %v5388_v32, %v8178_v14  ;;  %v5389_v9 = vld [vmem:[#allocation2 + $0xc8] sm:$0xff]  ;;  %v6878_v57 = vpop.permute.xlu0 %1463  ;;  %v8193_v14 = vld [vmem:[#allocation75_spill] sm:$0xff] }
 0x2d8   : > { %v2011_v3 = vsel %vm1998_vm9, %v1978_v39, %v1698_v13  ;;  %v1786_v20 = vsel %vm240_vm0, %v5389_v9, %v8179_v34  ;;  %v1818_v60 = vsel %vm1801_vm4, %v1785_v28, %v8180_v22  ;;  %v8181_v39 = vld [vmem:[#allocation25_spill] sm:$0xff] }
 0x2d9   : > { %1597 = vrot.lane.b32.xlu1 %v707_v37, %s5456_s23  ;;  %4678 = vmatprep.mubr.msk.f32.mxu0 %vm2047_vm10, %v2011_v3  ;;  %v1819_v13 = vsel %vm1801_vm4, %v1786_v20, %v8181_v39  ;;  %v1851_v3 = vsel %vm1834_vm5, %v1818_v60, %v8182_v40 }
 0x2da   : > { %4679 = vmatmul.mubr.msk.f32.gmra.mrb[12].mxu0 %vm2047_vm10, %v2012_v18  ;;  %v8183_v18 = vld [vmem:[#allocation50_spill] sm:$0xff] }
 0x2db   : > { %v1318_v51 = vpop.permute.xlu1 %1317  ;;  %v6900_v42 = vpop.permute.xlu0 %1591 }
 0x2dc   : > { %v1914_v29 = vsel %vm1899_vm6, %v1881_v35, %v1318_v51  ;;  %v1852_v51 = vsel %vm1834_vm5, %v1819_v13, %v8183_v18  ;;  %v1787_v35 = vsel %vm240_vm0, %v5390_v27, %v8186_v33 }
 0x2dd   : > { %1725 = vrot.lane.b32.xlu1 %v739_v41, %s5457_s7  ;;  %v1884_v61 = vsel %vm296_vm3, %v1852_v51, %v8185_v44  ;;  %v5393_v44 = vld [vmem:[#allocation2 + $0xf8] sm:$0xff] }
 0x2de   : > { %v1917_v45 = vsel %vm1899_vm6, %v1884_v61, %v6644_v16  ;;  %v679_v16 = vld [vmem:[#allocation2 + $0x198] sm:$0xff]  ;;  %v8195_v61 = vld [vmem:[#allocation24_spill] sm:$0xff] }
 0x2df   : > { %v1446_v7 = vpop.permute.xlu1 %1445  ;;  %v1950_v15 = vsel %vm1932_vm7, %v1917_v45, %v6663_v11 }
 0x2e0   : > { %v1947_v50 = vsel %vm1932_vm7, %v1914_v29, %v1446_v7  ;;  %v1983_v4 = vsel %vm1965_vm8, %v1950_v15, %v6674_v30  ;;  %v711_v30 = vld [vmem:[#allocation2 + $0x199] sm:$0xff] }
 0x2e1   : > { %1217 = vrot.lane.b32.xlu1 %v707_v37, %s5453_s20  ;;  %v2016_v36 = vsel %vm1998_vm9, %v1983_v4, %v6698_v26  ;;  %v5391_v26 = vld [vmem:[#allocation2 + $0xe0] sm:$0xff]  ;;  %v8188_v29 = vld [vmem:[#allocation62_spill] sm:$0xff] }
 0x2e2   : > { %v1788_v21 = vsel %vm240_vm0, %v5391_v26, %v8187_v52  ;;  %v1820_v10 = vsel %vm1801_vm4, %v1787_v35, %v8188_v29 }
 0x2e3   : > { %v1574_v17 = vpop.permute.xlu1 %1573 }
 0x2e4   : > { %v1980_v49 = vsel %vm1965_vm8, %v1947_v50, %v1574_v17  ;;  %v6909_v17 = vpop.permute.xlu0 %1719  ;;  %v743_v50 = vld [vmem:[#allocation2 + $0x19a] sm:$0xff] }
 0x2e5   : > { %1345 = vrot.lane.b32.xlu1 %v739_v41, %s5454_s21  ;;  %v8184_v41 = vld [vmem:[#allocation97_spill] sm:$0xff] }
 0x2e6   : > { %v1883_v7 = vsel %vm296_vm3, %v1851_v3, %v8184_v41  ;;  %v5392_v41 = vld [vmem:[#allocation2 + $0xf0] sm:$0xff] }
 0x2e7   : > { %v1702_v55 = vpop.permute.xlu1 %1701 }
 0x2e8   : > { %v2013_v1 = vsel %vm1998_vm9, %v1980_v49, %v1702_v55  ;;  %v2467_v49 = vld [vmem:[#allocation3 + $0x9] sm:$0xff]  ;;  %v8189_v55 = vld [vmem:[#allocation28_spill] sm:$0xff]  ;;  %v6926_v32 = vpop.permute.xlu0 %1211 }
 0x2e9   : > { %1473 = vrot.lane.b32.xlu1 %v677_v54, %s5455_s22  ;;  %4681 = vmatprep.mubr.msk.f32.mxu0 %vm2047_vm10, %v2013_v1  ;;  %v1821_v5 = vsel %vm1801_vm4, %v1788_v21, %v8189_v55  ;;  %v8190_v1 = vld [vmem:[#allocation83_spill] sm:$0xff]  ;;  %v4900_v34 = vpack.i.bf16 %v2467_v49, %v2466_v59 }
 0x2ea   : > { %4682 = vmatmul.mubr.msk.f32.gmra.mrb[14].mxu0 %vm2047_vm10, %v2014_v58  ;;  %v1853_v54 = vsel %vm1834_vm5, %v1820_v10, %v8190_v1 }
 0x2eb   : > { %v1322_v38 = vpop.permute.xlu1 %1321 }
 0x2ec   : > { %v1916_v46 = vsel %vm1899_vm6, %v1883_v7, %v1322_v38  ;;  %v8191_v38 = vld [vmem:[#allocation52_spill] sm:$0xff]  ;;  %v8194_v7 = vld [vmem:[#allocation22_spill] sm:$0xff] }
 0x2ed   : > { %1601 = vrot.lane.b32.xlu1 %v709_v8, %s5456_s23 }
 0x2ef   : > { %v1450_v0 = vpop.permute.xlu1 %1449 }
 0x2f0   : > { %v1949_v23 = vsel %vm1932_vm7, %v1916_v46, %v1450_v0  ;;  %v8192_v0 = vld [vmem:[#allocation99_spill] sm:$0xff]  ;;  %v8196_v46 = vld [vmem:[#allocation64_spill] sm:$0xff] }
 0x2f1   : > { %1729 = vrot.lane.b32.xlu1 %v741_v24, %s5457_s7 }
 0x2f3   : > { %v1578_v37 = vpop.permute.xlu1 %1577 }
 0x2f4   : > { %v1982_v12 = vsel %vm1965_vm8, %v1949_v23, %v1578_v37  ;;  %v8197_v23 = vld [vmem:[#allocation30_spill] sm:$0xff] }
 0x2f5   : > { %1221 = vrot.lane.b32.xlu1 %v709_v8, %s5453_s20  ;;  %v1854_v8 = vsel %vm1834_vm5, %v1821_v5, %v8191_v38  ;;  %v5394_v5 = vld [vmem:[#allocation2 + $0x108] sm:$0xff]  ;;  %v8204_v38 = vld [vmem:[#allocation65_spill] sm:$0xff] }
 0x2f6   : > { %v1886_v28 = vsel %vm296_vm3, %v1854_v8, %v8193_v14  ;;  %v8206_v14 = vld [vmem:[#allocation85_spill] sm:$0xff] }
 0x2f7   : > { %v1706_v53 = vpop.permute.xlu1 %1705  ;;  %v1919_v20 = vsel %vm1899_vm6, %v1886_v28, %v6712_v19  ;;  %v6945_v19 = vpop.permute.xlu0 %1339 }
 0x2f8   : > { %v2015_v47 = vsel %vm1998_vm9, %v1982_v12, %v1706_v53  ;;  %v1952_v60 = vsel %vm1932_vm7, %v1919_v20, %v6723_v43  ;;  %v8198_v12 = vld [vmem:[#allocation84_spill] sm:$0xff] }
 0x2f9   : > { %1349 = vrot.lane.b32.xlu1 %v741_v24, %s5454_s21  ;;  %4684 = vmatprep.mubr.msk.f32.mxu0 %vm2047_vm10, %v2015_v47  ;;  %v1885_v24 = vsel %vm296_vm3, %v1853_v54, %v8192_v0  ;;  %v1985_v40 = vsel %vm1965_vm8, %v1952_v60, %v6745_v31  ;;  %v1789_v31 = vsel %vm240_vm0, %v5392_v41, %v8194_v7  ;;  %v8199_v47 = vld [vmem:[#allocation53_spill] sm:$0xff] }
 0x2fa   : > { %4685 = vmatmul.mubr.msk.f32.gmra.mrb[16].mxu0 %vm2047_vm10, %v2016_v36  ;;  %v2018_v37 = vsel %vm1998_vm9, %v1985_v40, %v6754_v62  ;;  %v1790_v62 = vsel %vm240_vm0, %v5393_v44, %v8195_v61  ;;  %v1822_v45 = vsel %vm1801_vm4, %v1789_v31, %v8196_v46  ;;  %v5395_v54 = vld [vmem:[#allocation2 + $0x110] sm:$0xff] }
 0x2fb   : > { %v1326_v11 = vpop.permute.xlu1 %1325  ;;  %v6948_v51 = vpop.permute.xlu0 %1467  ;;  %v1823_v15 = vsel %vm1801_vm4, %v1790_v62, %v8197_v23  ;;  %v1855_v53 = vsel %vm1834_vm5, %v1822_v45, %v8198_v12  ;;  %v5396_v45 = vld [vmem:[#allocation2 + $0x128] sm:$0xff]  ;;  %v8210_v23 = vld [vmem:[#allocation31_spill] sm:$0xff] }
 0x2fc   : > { %v1918_v9 = vsel %vm1899_vm6, %v1885_v24, %v1326_v11  ;;  %v1856_v36 = vsel %vm1834_vm5, %v1823_v15, %v8199_v47  ;;  %v1794_v15 = vsel %vm240_vm0, %v5396_v45, %v8210_v23  ;;  %v8212_v47 = vld [vmem:[#allocation66_spill] sm:$0xff] }
 0x2fd   : > { %1477 = vrot.lane.b32.xlu1 %v679_v16, %s5455_s22  ;;  %v8200_v16 = vld [vmem:[#allocation101_spill] sm:$0xff] }
 0x2fe   : > { %v1887_v11 = vsel %vm296_vm3, %v1855_v53, %v8200_v16  ;;  %v8211_v53 = vld [vmem:[#allocation29_spill] sm:$0xff] }
 0x2ff   : > { %v1454_v48 = vpop.permute.xlu1 %1453  ;;  %v1596_v35 = vpop.permute.xlu0 %1595 }
 0x300   : > { %v1951_v22 = vsel %vm1932_vm7, %v1918_v9, %v1454_v48 }
 0x301   : > { %1605 = vrot.lane.b32.xlu1 %v711_v30, %s5456_s23  ;;  %v8201_v30 = vld [vmem:[#allocation77_spill] sm:$0xff]  ;;  %s5459_s23 = smov 96  }
 0x302   : > { %v1888_v48 = vsel %vm296_vm3, %v1856_v36, %v8201_v30  ;;  %v8213_v36 = vld [vmem:[#allocation35_spill] sm:$0xff] }
 0x303   : > { %v1582_v58 = vpop.permute.xlu1 %1581  ;;  %v1921_v33 = vsel %vm1899_vm6, %v1888_v48, %v6808_v25  ;;  %v1724_v49 = vpop.permute.xlu0 %1723  ;;  %v1827_v16 = vsel %vm1801_vm4, %v1794_v15, %v8213_v36  ;;  %v8222_v36 = vld [vmem:[#allocation39_spill] sm:$0xff] }
 0x304   : > { %v1984_v39 = vsel %vm1965_vm8, %v1951_v22, %v1582_v58  ;;  %v1954_v52 = vsel %vm1932_vm7, %v1921_v33, %v6827_v2  ;;  %v8202_v2 = vld [vmem:[#allocation26_spill] sm:$0xff]  ;;  %v8203_v58 = vld [vmem:[#allocation27_spill] sm:$0xff] }
 0x305   : > { %1733 = vrot.lane.b32.xlu1 %v743_v50, %s5457_s7  ;;  %v1987_v10 = vsel %vm1965_vm8, %v1954_v52, %v6831_v56  ;;  %v1791_v1 = vsel %vm240_vm0, %v5394_v5, %v8202_v2  ;;  %v1792_v56 = vsel %vm240_vm0, %v5395_v54, %v8203_v58  ;;  %v8208_v22 = vld [vmem:[#allocation103_spill] sm:$0xff] }
 0x306   : > { %v2020_v59 = vsel %vm1998_vm9, %v1987_v10, %v6854_v6  ;;  %v1824_v8 = vsel %vm1801_vm4, %v1791_v1, %v8204_v38  ;;  %v8205_v6 = vld [vmem:[#allocation33_spill] sm:$0xff]  ;;  %v5398_v38 = vld [vmem:[#allocation2 + $0x140] sm:$0xff] }
 0x307   : > { %v1710_v13 = vpop.permute.xlu1 %1709  ;;  %v6986_v0 = vpop.permute.xlu0 %1215  ;;  %v1825_v24 = vsel %vm1801_vm4, %v1792_v56, %v8205_v6  ;;  %v1857_v28 = vsel %vm1834_vm5, %v1824_v8, %v8206_v14  ;;  %v5399_v6 = vld [vmem:[#allocation2 + $0x138] sm:$0xff]  ;;  %v8218_v14 = vld [vmem:[#allocation67_spill] sm:$0xff] }
 0x308   : > { %v2017_v3 = vsel %vm1998_vm9, %v1984_v39, %v1710_v13  ;;  %v1889_v60 = vsel %vm296_vm3, %v1857_v28, %v8208_v22  ;;  %v8209_v39 = vld [vmem:[#allocation79_spill] sm:$0xff]  ;;  %v8219_v28 = vld [vmem:[#allocation38_spill] sm:$0xff] }
 0x309   : > { %4687 = vmatprep.mubr.msk.f32.mxu0 %vm2047_vm10, %v2017_v3  ;;  %4901 = vrot.lane.b32.xlu1 %v4900_v34, %s5453_s20  ;;  %v8207_v34 = vld [vmem:[#allocation55_spill] sm:$0xff] }
 0x30a   : > { %4688 = vmatmul.mubr.msk.f32.gmra.mrb[18].mxu0 %vm2047_vm10, %v2018_v37  ;;  %v1858_v20 = vsel %vm1834_vm5, %v1825_v24, %v8207_v34  ;;  %v8217_v24 = vld [vmem:[#allocation32_spill] sm:$0xff]  ;;  %v8220_v34 = vld [vmem:[#allocation87_spill] sm:$0xff] }
 0x30b   : > { %v1330_v43 = vpop.permute.xlu1 %1329  ;;  %v1890_v13 = vsel %vm296_vm3, %v1858_v20, %v8209_v39  ;;  %v1344_v31 = vpop.permute.xlu0 %1343 }
 0x30c   : > { %v1920_v27 = vsel %vm1899_vm6, %v1887_v11, %v1330_v43  ;;  %v1923_v3 = vsel %vm1899_vm6, %v1890_v13, %v6868_v63  ;;  %v8214_v11 = vld [vmem:[#allocation86_spill] sm:$0xff] }
 0x30d   : > { %v1956_v43 = vsel %vm1932_vm7, %v1923_v3, %v6878_v57 }
 0x30e   : > { %v1989_v7 = vsel %vm1965_vm8, %v1956_v43, %v6900_v42  ;;  %v5397_v42 = vld [vmem:[#allocation2 + $0x120] sm:$0xff] }
 0x30f   : > { %v1458_v18 = vpop.permute.xlu1 %1457  ;;  %v2022_v61 = vsel %vm1998_vm9, %v1989_v7, %v6909_v17  ;;  %v1472_v62 = vpop.permute.xlu0 %1471 }
 0x310   : > { %v1953_v26 = vsel %vm1932_vm7, %v1920_v27, %v1458_v18  ;;  %v8215_v27 = vld [vmem:[#allocation57_spill] sm:$0xff] }
 0x311   : > { %v1860_v33 = vsel %vm1834_vm5, %v1827_v16, %v8215_v27 }
 0x312   : > { %v1892_v52 = vsel %vm296_vm3, %v1860_v33, %v6926_v32  ;;  %v8224_v33 = vld [vmem:[#allocation68_spill] sm:$0xff] }
 0x313   : > { %v1586_v4 = vpop.permute.xlu1 %1585  ;;  %v1600_v12 = vpop.permute.xlu0 %1599 }
 0x314   : > { %v1986_v21 = vsel %vm1965_vm8, %v1953_v26, %v1586_v4  ;;  %v1793_v4 = vsel %vm240_vm0, %v5397_v42, %v8211_v53 }
 0x315   : > { %v1826_v17 = vsel %vm1801_vm4, %v1793_v4, %v8212_v47 }
 0x316   : > { %v1859_v30 = vsel %vm1834_vm5, %v1826_v17, %v8214_v11  ;;  %v5400_v17 = vld [vmem:[#allocation2 + $0x158] sm:$0xff]  ;;  %v5401_v11 = vld [vmem:[#allocation2 + $0x150] sm:$0xff] }
 0x317   : > { %v1714_v29 = vpop.permute.xlu1 %1713  ;;  %v1728_v10 = vpop.permute.xlu0 %1727  ;;  %v1798_v16 = vsel %vm240_vm0, %v5400_v17, %v8222_v36 }
 0x318   : > { %v2019_v50 = vsel %vm1998_vm9, %v1986_v21, %v1714_v29  ;;  %v1925_v29 = vsel %vm1899_vm6, %v1892_v52, %v6945_v19 }
 0x319   : > { %4690 = vmatprep.mubr.msk.f32.mxu0 %vm2047_vm10, %v2019_v50 }
 0x31a   : > { %4691 = vmatmul.mubr.msk.f32.gmra.mrb[20].mxu0 %vm2047_vm10, %v2020_v59  ;;  %v1958_v59 = vsel %vm1932_vm7, %v1925_v29, %v6948_v51  ;;  %v8216_v51 = vld [vmem:[#allocation34_spill] sm:$0xff]  ;;  %v8225_v29 = vld [vmem:[#allocation41_spill] sm:$0xff] }
 0x31b   : > { %v1334_v25 = vpop.permute.xlu1 %1333  ;;  %v1991_v5 = vsel %vm1965_vm8, %v1958_v59, %v1596_v35  ;;  %v1220_v1 = vpop.permute.xlu0 %1219  ;;  %v1796_v8 = vsel %vm240_vm0, %v5398_v38, %v8216_v51  ;;  %v1795_v35 = vsel %vm240_vm0, %v5399_v6, %v8217_v24 }
 0x31c   : > { %v1922_v40 = vsel %vm1899_vm6, %v1889_v60, %v1334_v25  ;;  %v2024_v32 = vsel %vm1998_vm9, %v1991_v5, %v1724_v49  ;;  %v1828_v49 = vsel %vm1801_vm4, %v1795_v35, %v8218_v14  ;;  %v8221_v60 = vld [vmem:[#allocation59_spill] sm:$0xff]  ;;  %v8227_v5 = vld [vmem:[#allocation61_spill] sm:$0xff] }
 0x31d   : > { %v1861_v20 = vsel %vm1834_vm5, %v1828_v49, %v8220_v34 }
 0x31f   : > { %v1462_v55 = vpop.permute.xlu1 %1461  ;;  %v1348_v58 = vpop.permute.xlu0 %1347 }
 0x320   : > { %v1955_v37 = vsel %vm1932_vm7, %v1922_v40, %v1462_v55 }
 0x323   : > { %v1590_v9 = vpop.permute.xlu1 %1589  ;;  %v1476_v13 = vpop.permute.xlu0 %1475 }
 0x324   : > { %v1988_v18 = vsel %vm1965_vm8, %v1955_v37, %v1590_v9  ;;  %v1829_v9 = vsel %vm1801_vm4, %v1796_v8, %v8219_v28 }
 0x325   : > { %v1862_v39 = vsel %vm1834_vm5, %v1829_v9, %v8221_v60  ;;  %v3685_v60 = vld [vmem:[#allocation4 + $0x8] sm:$0xff] }
 0x326   : > { %v1894_v3 = vsel %vm296_vm3, %v1862_v39, %v6986_v0  ;;  %v5458_v39 = vmov 0.0|0.0  }
 0x327   : > { %v1718_v41 = vpop.permute.xlu1 %1717  ;;  %v1927_v43 = vsel %vm1899_vm6, %v1894_v3, %v1344_v31  ;;  %v1604_v31 = vpop.permute.xlu0 %1603  ;;  %4836 = vmatprep.subr.bf16.mxu1 %v5458_v39  ;;  %4780 = vmatprep.subr.bf16.mxu0 %v5458_v39 }
 0x328   : > { %v2021_v44 = vsel %vm1998_vm9, %v1988_v18, %v1718_v41  ;;  %v1960_v41 = vsel %vm1932_vm7, %v1927_v43, %v1472_v62  ;;  %v3686_v43 = vld [vmem:[#allocation4 + $0x10] sm:$0xff] }
 0x329   : > { %4693 = vmatprep.mubr.msk.f32.mxu0 %vm2047_vm10, %v2021_v44 }
 0x32a   : > { %4694 = vmatmul.mubr.msk.f32.gmra.mrb[22].mxu0 %vm2047_vm10, %v2022_v61  ;;  %v7062_v61 = vld [vmem:[%s8018_s2] ss:$0 sm:$0xff] }
 0x32b   : > { %v1210_v63 = vpop.permute.xlu1 %1209  ;;  %v1732_v4 = vpop.permute.xlu0 %1731 }
 0x32c   : > { %v1891_v26 = vsel %vm296_vm3, %v1859_v30, %v1210_v63  ;;  %v1993_v63 = vsel %vm1965_vm8, %v1960_v41, %v1600_v12  ;;  %v8223_v30 = vld [vmem:[#allocation36_spill] sm:$0xff] }
 0x32f   : > { %v1338_v46 = vpop.permute.xlu1 %1337  ;;  %v7079_v52 = vpop.permute.xlu0 %1223 }
 0x330   : > { %v1924_v21 = vsel %vm1899_vm6, %v1891_v26, %v1338_v46  ;;  %v2026_v46 = vsel %vm1998_vm9, %v1993_v63, %v1728_v10  ;;  %v1831_v10 = vsel %vm1801_vm4, %v1798_v16, %v8225_v29 }
 0x333   : > { %v1466_v57 = vpop.permute.xlu1 %1465  ;;  %v7098_v28 = vpop.permute.xlu0 %1351 }
 0x334   : > { %v1957_v50 = vsel %vm1932_vm7, %v1924_v21, %v1466_v57 }
 0x337   : > { %v1594_v48 = vpop.permute.xlu1 %1593  ;;  %v1480_v3 = vpop.permute.xlu0 %1479 }
 0x338   : > { %v1990_v25 = vsel %vm1965_vm8, %v1957_v50, %v1594_v48  ;;  %v1797_v48 = vsel %vm240_vm0, %v5401_v11, %v8223_v30  ;;  %v8226_v50 = vld [vmem:[#allocation88_spill] sm:$0xff]  ;;  %v8231_v11 = vld [vmem:[#allocation43_spill] sm:$0xff] }
 0x339   : > { %v1830_v26 = vsel %vm1801_vm4, %v1797_v48, %v8224_v33  ;;  %v8232_v48 = vld [vmem:[#allocation89_spill] sm:$0xff] }
 0x33a   : > { %v1863_v59 = vsel %vm1834_vm5, %v1830_v26, %v8226_v50 }
 0x33b   : > { %v1722_v55 = vpop.permute.xlu1 %1721 }
 0x33c   : > { %v2023_v2 = vsel %vm1998_vm9, %v1990_v25, %v1722_v55 }
 0x33d   : > { %4696 = vmatprep.mubr.msk.f32.mxu0 %vm2047_vm10, %v2023_v2  ;;  %v1864_v2 = vsel %vm1834_vm5, %v1831_v10, %v8227_v5 }
 0x33e   : > { %4697 = vmatmul.mubr.msk.f32.gmra.mrb[24].mxu0 %vm2047_vm10, %v2024_v32 }
 0x33f   : > { %v1214_v19 = vpop.permute.xlu1 %1213 }
 0x340   : > { %v1893_v40 = vsel %vm296_vm3, %v1861_v20, %v1214_v19  ;;  %v1896_v19 = vsel %vm296_vm3, %v1864_v2, %v1220_v1 }
 0x341   : > { %v1929_v38 = vsel %vm1899_vm6, %v1896_v19, %v1348_v58  ;;  %v3692_v19 = vld [vmem:[#allocation4 + $0x40] sm:$0xff] }
 0x342   : > { %v1962_v24 = vsel %vm1932_vm7, %v1929_v38, %v1476_v13 }
 0x343   : > { %v1342_v54 = vpop.permute.xlu1 %1341  ;;  %v1995_v1 = vsel %vm1965_vm8, %v1962_v24, %v1604_v31 }
 0x344   : > { %v1926_v37 = vsel %vm1899_vm6, %v1893_v40, %v1342_v54  ;;  %v2028_v58 = vsel %vm1998_vm9, %v1995_v1, %v1732_v4  ;;  %v3694_v1 = vld [vmem:[#allocation4 + $0x50] sm:$0xff] }
 0x347   : > { %v1470_v56 = vpop.permute.xlu1 %1469 }
 0x348   : > { %v1959_v18 = vsel %vm1932_vm7, %v1926_v37, %v1470_v56 }
 0x34b   : > { %v1598_v22 = vpop.permute.xlu1 %1597 }
 0x34c   : > { %v1992_v7 = vsel %vm1965_vm8, %v1959_v18, %v1598_v22  ;;  %v3684_v22 = vld [vmem:[#allocation4] sm:$0xff]  ;;  %v3687_v18 = vld [vmem:[#allocation4 + $0x18] sm:$0xff] }
 0x34d   : > { %v4781_v13 = vpack.c.bf16 %v3685_v60, %v3684_v22  ;;  %v3696_v22 = vld [vmem:[#allocation4 + $0x60] sm:$0xff]  ;;  %v3697_v60 = vld [vmem:[#allocation4 + $0x68] sm:$0xff] }
 0x34f   : > { %v1726_v44 = vpop.permute.xlu1 %1725  ;;  %4852 = vmatpush1.bf16.msra.mxu1 %v4781_v13  ;;  %4782 = vmatpush1.bf16.msra.mxu0 %v4781_v13 }
 0x350   : > { %v2025_v0 = vsel %vm1998_vm9, %v1992_v7, %v1726_v44  ;;  %v4662_v57 = vpop.f32.mrb[0].mxu0  ;;  %4837 = vmatprep.subr.bf16.mxu1 %v5458_v39  ;;  %4783 = vmatprep.subr.bf16.mxu0 %v5458_v39  ;;  %v4784_v7 = vpack.c.bf16 %v3687_v18, %v3686_v43 }
 0x351   : > { %4699 = vmatprep.mubr.msk.f32.mxu0 %vm2047_vm10, %v2025_v0  ;;  %v2216_v62 = vadd.f32 %v4662_v57, %v7062_v61  ;;  %v2210_v45 = vpop.f32.mrb[1].mxu0  ;;  %v8228_v57 = vld [vmem:[#allocation44_spill] sm:$0xff] }
 0x352   : > { %4700 = vmatmul.mubr.msk.f32.gmra.mrb[26].mxu0 %vm2047_vm10, %v2026_v46  ;;  %v2211_v23 = vadd.f32 %v7062_v61, %v2210_v45  ;;  %v5402_v46 = vld [vmem:[#allocation2 + $0x170] sm:$0xff]  ;;  %v3688_v45 = vld [vmem:[#allocation4 + $0x20] sm:$0xff] }
 0x353   : > { %v1218_v15 = vpop.permute.xlu1 %1217  ;;  %v2370_v42 = vmax.f32 %v2216_v62, 0.0  ;;  %4853 = vmatpush1.bf16.msra.mxu1 %v4784_v7  ;;  %4785 = vmatpush1.bf16.msra.mxu0 %v4784_v7  ;;  %v1800_v31 = vsel %vm240_vm0, %v5402_v46, %v8228_v57  ;;  %v1608_v62 = vpop.permute.xlu0 %1607  ;;  %v3698_v7 = vld [vmem:[#allocation4 + $0x70] sm:$0xff]  ;;  %v3700_v57 = vld [vmem:[#allocation4 + $0x80] sm:$0xff] }
 0x354   : > { %v2369_v53 = vmax.f32 %v2211_v23, 0.0  ;;  %v1895_v32 = vsel %vm296_vm3, %v1863_v59, %v1218_v15  ;;  %4838 = vmatprep.subr.bf16.mxu1 %v5458_v39  ;;  %v3689_v23 = vld [vmem:[#allocation4 + $0x28] sm:$0xff]  ;;  %4786 = vmatprep.subr.bf16.mxu0 %v5458_v39  ;;  %v1833_v30 = vsel %vm1801_vm4, %v1800_v31, %v8231_v11  ;;  %v3690_v59 = vld [vmem:[#allocation4 + $0x30] sm:$0xff]  ;;  %v3704_v11 = vld [vmem:[#allocation4 + $0xa0] sm:$0xff] }
 0x355   : > { %2403 = vst.msk [vmem:[#allocation3 + $0x21] sm:$0xff] %vm296_vm3, %v2370_v42  ;;  %v5403_v15 = vld [vmem:[#allocation2 + $0x168] sm:$0xff]  ;;  %v8229_v42 = vld [vmem:[#allocation42_spill] sm:$0xff]  ;;  %v4787_v4 = vpack.c.bf16 %v3689_v23, %v3688_v45  ;;  %v3702_v45 = vld [vmem:[#allocation4 + $0x90] sm:$0xff] }
 0x356   : > { %2402 = vst.msk [vmem:[#allocation3 + $0x19] sm:$0xff] %vm296_vm3, %v2369_v53  ;;  %v1799_v53 = vsel %vm240_vm0, %v5403_v15, %v8229_v42  ;;  %v3701_v31 = vld [vmem:[#allocation4 + $0x88] sm:$0xff]  ;;  %v3703_v23 = vld [vmem:[#allocation4 + $0x98] sm:$0xff] }
 0x357   : > { %v1346_v12 = vpop.permute.xlu1 %1345  ;;  %4854 = vmatpush1.bf16.msra.mxu1 %v4787_v4  ;;  %4788 = vmatpush1.bf16.msra.mxu0 %v4787_v4  ;;  %v1736_v38 = vpop.permute.xlu0 %1735  ;;  %v4808_v15 = vpack.c.bf16 %v3703_v23, %v3702_v45 }
 0x358   : > { %v1928_v54 = vsel %vm1899_vm6, %v1895_v32, %v1346_v12  ;;  %4839 = vmatprep.subr.bf16.mxu1 %v5458_v39  ;;  %4789 = vmatprep.subr.bf16.mxu0 %v5458_v39 }
 0x35b   : > { %v1474_v47 = vpop.permute.xlu1 %1473 }
 0x35c   : > { %v2469_v27 = vld [vmem:[#allocation3 + $0x21] sm:$0xff]  ;;  %v1961_v51 = vsel %vm1932_vm7, %v1928_v54, %v1474_v47  ;;  %v3693_v54 = vld [vmem:[#allocation4 + $0x48] sm:$0xff] }
 0x35d   : > { %v2468_v21 = vld [vmem:[#allocation3 + $0x19] sm:$0xff]  ;;  %v8230_v47 = vld [vmem:[#allocation70_spill] sm:$0xff]  ;;  %v4793_v24 = vpack.c.bf16 %v3693_v54, %v3692_v19 }
 0x35e   : > { %v4905_v55 = vpack.i.bf16 %v2469_v27, %v2468_v21  ;;  %v1832_v17 = vsel %vm1801_vm4, %v1799_v53, %v8230_v47  ;;  %v8233_v21 = vld [vmem:[#allocation63_spill] sm:$0xff] }
 0x35f   : > { %v1602_v25 = vpop.permute.xlu1 %1601  ;;  %v1865_v27 = vsel %vm1834_vm5, %v1832_v17, %v8232_v48  ;;  %v1866_v29 = vsel %vm1834_vm5, %v1833_v30, %v8233_v21  ;;  %v3705_v30 = vld [vmem:[#allocation4 + $0xa8] sm:$0xff] }
 0x360   : > { %v4665_v56 = vpop.f32.mrb[2].mxu0  ;;  %4906 = vrot.lane.b32.xlu0 %v4905_v55, %s5453_s20  ;;  %v1994_v35 = vsel %vm1965_vm8, %v1961_v51, %v1602_v25  ;;  %v3691_v25 = vld [vmem:[#allocation4 + $0x38] sm:$0xff]  ;;  %v1898_v55 = vsel %vm296_vm3, %v1866_v29, %v7079_v52  ;;  %v3708_v29 = vld [vmem:[#allocation4 + $0xc0] sm:$0xff] }
 0x361   : > { %v2226_v8 = vadd.f32 %v4665_v56, %v7062_v61  ;;  %v2220_v6 = vpop.f32.mrb[3].mxu0  ;;  %v4790_v32 = vpack.c.bf16 %v3691_v25, %v3690_v59  ;;  %v1931_v56 = vsel %vm1899_vm6, %v1898_v55, %v7098_v28  ;;  %v3695_v28 = vld [vmem:[#allocation4 + $0x58] sm:$0xff] }
 0x362   : > { %v2221_v14 = vadd.f32 %v7062_v61, %v2220_v6 }
 0x363   : > { %v1730_v49 = vpop.permute.xlu1 %1729  ;;  %v2372_v9 = vmax.f32 %v2226_v8, 0.0  ;;  %v1964_v8 = vsel %vm1932_vm7, %v1931_v56, %v1480_v3  ;;  %4855 = vmatpush1.bf16.msra.mxu1 %v4790_v32  ;;  %4791 = vmatpush1.bf16.msra.mxu0 %v4790_v32  ;;  %v3711_v32 = vld [vmem:[#allocation4 + $0xd8] sm:$0xff] }
 0x364   : > { %v2027_v34 = vsel %vm1998_vm9, %v1994_v35, %v1730_v49  ;;  %v2371_v20 = vmax.f32 %v2221_v14, 0.0  ;;  %v1997_v35 = vsel %vm1965_vm8, %v1964_v8, %v1608_v62  ;;  %4840 = vmatprep.subr.bf16.mxu1 %v5458_v39  ;;  %4792 = vmatprep.subr.bf16.mxu0 %v5458_v39  ;;  %v4805_v62 = vpack.c.bf16 %v3701_v31, %v3700_v57 }
 0x365   : > { %4702 = vmatprep.mubr.msk.f32.mxu0 %vm2047_vm10, %v2027_v34  ;;  %2405 = vst.msk [vmem:[#allocation3 + $0x39] sm:$0xff] %vm296_vm3, %v2372_v9  ;;  %v2030_v49 = vsel %vm1998_vm9, %v1997_v35, %v1736_v38  ;;  %v4796_v34 = vpack.c.bf16 %v3695_v28, %v3694_v1 }
 0x366   : > { %4703 = vmatmul.mubr.msk.f32.gmra.mrb[28].mxu0 %vm2047_vm10, %v2028_v58  ;;  %2404 = vst.msk [vmem:[#allocation3 + $0x31] sm:$0xff] %vm296_vm3, %v2371_v20 }
 0x367   : > { %v1222_v40 = vpop.permute.xlu1 %1221  ;;  %4856 = vmatpush1.bf16.msra.mxu1 %v4793_v24  ;;  %4794 = vmatpush1.bf16.msra.mxu0 %v4793_v24 }
 0x368   : > { %v1897_v10 = vsel %vm296_vm3, %v1865_v27, %v1222_v40  ;;  %4841 = vmatprep.subr.bf16.mxu1 %v5458_v39  ;;  %4795 = vmatprep.subr.bf16.mxu0 %v5458_v39  ;;  %v4799_v40 = vpack.c.bf16 %v3697_v60, %v3696_v22  ;;  %v4811_v27 = vpack.c.bf16 %v3705_v30, %v3704_v11  ;;  %v3715_v22 = vld [vmem:[#allocation4 + $0xf8] sm:$0xff] }
 0x36b   : > { %v1350_v37 = vpop.permute.xlu1 %1349  ;;  %4857 = vmatpush1.bf16.msra.mxu1 %v4796_v34  ;;  %4797 = vmatpush1.bf16.msra.mxu0 %v4796_v34 }
 0x36c   : > { %v7110_v41 = vld [vmem:[#allocation3 + $0x39] sm:$0xff]  ;;  %v1930_v5 = vsel %vm1899_vm6, %v1897_v10, %v1350_v37  ;;  %4842 = vmatprep.subr.bf16.mxu1 %v5458_v39  ;;  %4798 = vmatprep.subr.bf16.mxu0 %v5458_v39 }
 0x36d   : > { %v7112_v44 = vld [vmem:[#allocation3 + $0x31] sm:$0xff] }
 0x36e   : > { %v4910_v0 = vpack.i.bf16 %v7110_v41, %v7112_v44  ;;  %v3709_v10 = vld [vmem:[#allocation4 + $0xc8] sm:$0xff] }
 0x36f   : > { %v1478_v63 = vpop.permute.xlu1 %1477  ;;  %4858 = vmatpush1.bf16.msra.mxu1 %v4799_v40  ;;  %4800 = vmatpush1.bf16.msra.mxu0 %v4799_v40  ;;  %v4817_v59 = vpack.c.bf16 %v3709_v10, %v3708_v29  ;;  %v2498_v29 = vld [vmem:[#allocation3 + $0x2] sm:$0xff]  ;;  %v2627_v10 = vld [vmem:[#allocation3 + $0x30] sm:$0xff] }
 0x370   : > { %v4668_v12 = vpop.f32.mrb[4].mxu0  ;;  %4911 = vrot.lane.b32.xlu1 %v4910_v0, %s5453_s20  ;;  %v1963_v51 = vsel %vm1932_vm7, %v1930_v5, %v1478_v63  ;;  %4843 = vmatprep.subr.bf16.mxu1 %v5458_v39  ;;  %v3699_v63 = vld [vmem:[#allocation4 + $0x78] sm:$0xff] }
 0x371   : > { %v2236_v36 = vadd.f32 %v4668_v12, %v7062_v61  ;;  %v2230_v16 = vpop.f32.mrb[5].mxu0  ;;  %4801 = vmatprep.subr.bf16.mxu0 %v5458_v39  ;;  %v4802_v46 = vpack.c.bf16 %v3699_v63, %v3698_v7 }
 0x372   : > { %v2231_v33 = vadd.f32 %v7062_v61, %v2230_v16 }
 0x373   : > { %v1606_v26 = vpop.permute.xlu1 %1605  ;;  %v2374_v50 = vmax.f32 %v2236_v36, 0.0  ;;  %4859 = vmatpush1.bf16.msra.mxu1 %v4802_v46  ;;  %4803 = vmatpush1.bf16.msra.mxu0 %v4802_v46 }
 0x374   : > { %v2373_v2 = vmax.f32 %v2231_v33, 0.0  ;;  %v1996_v52 = vsel %vm1965_vm8, %v1963_v51, %v1606_v26  ;;  %4844 = vmatprep.subr.bf16.mxu1 %v5458_v39  ;;  %4804 = vmatprep.subr.bf16.mxu0 %v5458_v39  ;;  %v3706_v33 = vld [vmem:[#allocation4 + $0xb0] sm:$0xff]  ;;  %v3707_v26 = vld [vmem:[#allocation4 + $0xb8] sm:$0xff] }
 0x375   : > { %2407 = vst.msk [vmem:[#allocation3 + $0x51] sm:$0xff] %vm296_vm3, %v2374_v50  ;;  %v4814_v21 = vpack.c.bf16 %v3707_v26, %v3706_v33  ;;  %v7195_v51 = vld [vmem:[#allocation3 + $0x3a] sm:$0xff] }
 0x376   : > { %2406 = vst.msk [vmem:[#allocation3 + $0x49] sm:$0xff] %vm296_vm3, %v2373_v2  ;;  %v3710_v2 = vld [vmem:[#allocation4 + $0xd0] sm:$0xff] }
 0x377   : > { %v1734_v6 = vpop.permute.xlu1 %1733  ;;  %4860 = vmatpush1.bf16.msra.mxu1 %v4805_v62  ;;  %4806 = vmatpush1.bf16.msra.mxu0 %v4805_v62  ;;  %v4820_v54 = vpack.c.bf16 %v3711_v32, %v3710_v2  ;;  %v5015_v2 = vpack.i.bf16 %v2498_v29, %v2627_v10 }
 0x378   : > { %v2029_v14 = vsel %vm1998_vm9, %v1996_v52, %v1734_v6  ;;  %4845 = vmatprep.subr.bf16.mxu1 %v5458_v39  ;;  %4807 = vmatprep.subr.bf16.mxu0 %v5458_v39 }
 0x379   : > { %4705 = vmatprep.mubr.msk.f32.mxu0 %vm2047_vm10, %v2029_v14  ;;  %v3712_v14 = vld [vmem:[#allocation4 + $0xe0] sm:$0xff] }
 0x37a   : > { %4706 = vmatmul.mubr.msk.f32.gmra.mrb[30].mxu0 %vm2047_vm10, %v2030_v49  ;;  %v3713_v49 = vld [vmem:[#allocation4 + $0xe8] sm:$0xff] }
 0x37b   : > { %4861 = vmatpush1.bf16.msra.mxu1 %v4808_v15  ;;  %4809 = vmatpush1.bf16.msra.mxu0 %v4808_v15  ;;  %v4823_v28 = vpack.c.bf16 %v3713_v49, %v3712_v14 }
 0x37c   : > { %v7155_v9 = vld [vmem:[#allocation3 + $0x51] sm:$0xff]  ;;  %4846 = vmatprep.subr.bf16.mxu1 %v5458_v39  ;;  %4810 = vmatprep.subr.bf16.mxu0 %v5458_v39 }
 0x37d   : > { %v7157_v58 = vld [vmem:[#allocation3 + $0x49] sm:$0xff] }
 0x37e   : > { %v4915_v20 = vpack.i.bf16 %v7155_v9, %v7157_v58  ;;  %v7214_v46 = vld [vmem:[#allocation3 + $0x50] sm:$0xff] }
 0x37f   : > { %4862 = vmatpush1.bf16.msra.mxu1 %v4811_v27  ;;  %4812 = vmatpush1.bf16.msra.mxu0 %v4811_v27 }
 0x380   : > { %v4671_v13 = vpop.f32.mrb[6].mxu0  ;;  %4916 = vrot.lane.b32.xlu0 %v4915_v20, %s5453_s20  ;;  %4847 = vmatprep.subr.bf16.mxu1 %v5458_v39  ;;  %v3714_v20 = vld [vmem:[#allocation4 + $0xf0] sm:$0xff] }
 0x381   : > { %v2246_v3 = vadd.f32 %v4671_v13, %v7062_v61  ;;  %v2240_v37 = vpop.f32.mrb[7].mxu0  ;;  %4813 = vmatprep.subr.bf16.mxu0 %v5458_v39  ;;  %v4826_v60 = vpack.c.bf16 %v3715_v22, %v3714_v20 }
 0x382   : > { %v2241_v43 = vadd.f32 %v7062_v61, %v2240_v37  ;;  %v2599_v37 = vld [vmem:[#allocation3 + $0x52] sm:$0xff] }
 0x383   : > { %v2376_v18 = vmax.f32 %v2246_v3, 0.0  ;;  %4863 = vmatpush1.bf16.msra.mxu1 %v4814_v21  ;;  %4815 = vmatpush1.bf16.msra.mxu0 %v4814_v21 }
 0x384   : > { %v2375_v0 = vmax.f32 %v2241_v43, 0.0  ;;  %4848 = vmatprep.subr.bf16.mxu1 %v5458_v39  ;;  %4816 = vmatprep.subr.bf16.mxu0 %v5458_v39 }
 0x385   : > { %2409 = vst.msk [vmem:[#allocation3 + $0x69] sm:$0xff] %vm296_vm3, %v2376_v18 }
 0x386   : > { %2408 = vst.msk [vmem:[#allocation3 + $0x61] sm:$0xff] %vm296_vm3, %v2375_v0 }
 0x387   : > { %4864 = vmatpush1.bf16.msra.mxu1 %v4817_v59  ;;  %4818 = vmatpush1.bf16.msra.mxu0 %v4817_v59 }
 0x388   : > { %4849 = vmatprep.subr.bf16.mxu1 %v5458_v39  ;;  %4819 = vmatprep.subr.bf16.mxu0 %v5458_v39 }
 0x38b   : > { %4865 = vmatpush1.bf16.msra.mxu1 %v4820_v54  ;;  %4821 = vmatpush1.bf16.msra.mxu0 %v4820_v54 }
 0x38c   : > { %v7174_v53 = vld [vmem:[#allocation3 + $0x69] sm:$0xff]  ;;  %4850 = vmatprep.subr.bf16.mxu1 %v5458_v39  ;;  %4822 = vmatprep.subr.bf16.mxu0 %v5458_v39 }
 0x38d   : > { %v4674_v42 = vpop.f32.mrb[8].mxu0  ;;  %v7177_v47 = vld [vmem:[#allocation3 + $0x61] sm:$0xff]  ;;  %v2601_v6 = vld [vmem:[#allocation3 + $0x6a] sm:$0xff]  ;;  %v4940_v31 = vpack.i.bf16 %v7214_v46, %v7174_v53 }
 0x38e   : > { %v2256_v12 = vadd.f32 %v4674_v42, %v7062_v61  ;;  %v2250_v4 = vpop.f32.mrb[9].mxu0  ;;  %v4920_v36 = vpack.i.bf16 %v7174_v53, %v7177_v47  ;;  %v2632_v5 = vld [vmem:[#allocation3 + $0x68] sm:$0xff]  ;;  %v7207_v13 = vld [vmem:[#allocation3 + $0x60] sm:$0xff] }
 0x38f   : > { %v2251_v17 = vadd.f32 %v7062_v61, %v2250_v4  ;;  %v4935_v52 = vpack.i.bf16 %v7195_v51, %v2632_v5  ;;  %v2600_v35 = vld [vmem:[#allocation3 + $0x62] sm:$0xff]  ;;  %4866 = vmatpush1.bf16.msra.mxu1 %v4823_v28  ;;  %4824 = vmatpush1.bf16.msra.mxu0 %v4823_v28 }
 0x390   : > { %v2378_v16 = vmax.f32 %v2256_v12, 0.0  ;;  %4921 = vrot.lane.b32.xlu1 %v4920_v36, %s5453_s20  ;;  %v4945_v34 = vpack.i.bf16 %v2601_v6, %v2600_v35  ;;  %4851 = vmatprep.subr.bf16.mxu1 %v5458_v39  ;;  %v7224_v12 = vld [vmem:[#allocation3 + $0x4a] sm:$0xff] }
 0x391   : > { %v2377_v48 = vmax.f32 %v2251_v17, 0.0  ;;  %4825 = vmatprep.subr.bf16.mxu0 %v5458_v39 }
 0x392   : > { %2411 = vst.msk [vmem:[#allocation3 + $0x81] sm:$0xff] %vm296_vm3, %v2378_v16  ;;  %v7231_v16 = vld [vmem:[#allocation3 + $0x1a] sm:$0xff] }
 0x393   : > { %2410 = vst.msk [vmem:[#allocation3 + $0x79] sm:$0xff] %vm296_vm3, %v2377_v48  ;;  %4867 = vmatpush1.bf16.msra.mxu1 %v4826_v60  ;;  %4827 = vmatpush1.bf16.msra.mxu0 %v4826_v60 }
 0x399   : > { %v2477_v50 = vld [vmem:[#allocation3 + $0x81] sm:$0xff] }
 0x39a   : > { %v2476_v25 = vld [vmem:[#allocation3 + $0x79] sm:$0xff]  ;;  %v4965_v18 = vpack.i.bf16 %v2632_v5, %v2477_v50  ;;  %v2603_v27 = vld [vmem:[#allocation3 + $0x82] sm:$0xff] }
 0x39b   : > { %v4925_v55 = vpack.i.bf16 %v2477_v50, %v2476_v25  ;;  %v4955_v40 = vpack.i.bf16 %v7207_v13, %v2476_v25  ;;  %v2633_v23 = vld [vmem:[#allocation3 + $0x78] sm:$0xff]  ;;  %v2634_v17 = vld [vmem:[#allocation3 + $0x80] sm:$0xff] }
 0x39c   : > { %v4950_v4 = vpack.i.bf16 %v7224_v12, %v2633_v23  ;;  %v4960_v11 = vpack.i.bf16 %v2599_v37, %v2634_v17  ;;  %v2602_v48 = vld [vmem:[#allocation3 + $0x7a] sm:$0xff] }
 0x39d   : > { %v4677_v19 = vpop.f32.mrb[10].mxu0  ;;  %4926 = vrot.lane.b32.xlu0 %v4925_v55, %s5453_s20  ;;  %v4970_v26 = vpack.i.bf16 %v2603_v27, %v2602_v48 }
 0x39e   : > { %v2266_v56 = vadd.f32 %v4677_v19, %v7062_v61  ;;  %v2260_v38 = vpop.f32.mrb[11].mxu0 }
 0x39f   : > { %v2261_v8 = vadd.f32 %v7062_v61, %v2260_v38 }
 0x3a0   : > { %v2380_v24 = vmax.f32 %v2266_v56, 0.0  ;;  %v2530_v56 = vld [vmem:[#allocation3 + $0x18] sm:$0xff] }
 0x3a1   : > { %v2379_v1 = vmax.f32 %v2261_v8, 0.0  ;;  %4936 = vrot.lane.b32.xlu0 %v4935_v52, %s5457_s7  ;;  %v5025_v8 = vpack.i.bf16 %v2530_v56, %v7112_v44 }
 0x3a2   : > { %2413 = vst.msk [vmem:[#allocation3 + $0x99] sm:$0xff] %vm296_vm3, %v2380_v24  ;;  %v7255_v24 = vld [vmem:[#allocation3 + $0x32] sm:$0xff] }
 0x3a3   : > { %2412 = vst.msk [vmem:[#allocation3 + $0x91] sm:$0xff] %vm296_vm3, %v2379_v1  ;;  %v7261_v1 = vld [vmem:[#allocation3 + $0x22] sm:$0xff] }
 0x3a5   : > { %4946 = vrot.lane.b32.xlu0 %v4945_v34, %s5453_s20 }
 0x3a9   : > { %4956 = vrot.lane.b32.xlu0 %v4955_v40, %s5459_s23  ;;  %v7243_v19 = vld [vmem:[#allocation3 + $0x99] sm:$0xff] }
 0x3aa   : > { %v2478_v3 = vld [vmem:[#allocation3 + $0x91] sm:$0xff]  ;;  %v4990_v38 = vpack.i.bf16 %v2634_v17, %v7243_v19  ;;  %v2605_v49 = vld [vmem:[#allocation3 + $0x9a] sm:$0xff] }
 0x3ab   : > { %v4930_v43 = vpack.i.bf16 %v2599_v37, %v2478_v3  ;;  %v2635_v7 = vld [vmem:[#allocation3 + $0x90] sm:$0xff]  ;;  %v7219_v15 = vld [vmem:[#allocation3 + $0x98] sm:$0xff]  ;;  %v4980_v5 = vpack.i.bf16 %v2633_v23, %v2478_v3  ;;  %v5010_v28 = vpack.i.bf16 %v7261_v1, %v2605_v49 }
 0x3ac   : > { %v4975_v62 = vpack.i.bf16 %v2600_v35, %v2635_v7  ;;  %v4985_v53 = vpack.i.bf16 %v2601_v6, %v7219_v15  ;;  %v2604_v36 = vld [vmem:[#allocation3 + $0x92] sm:$0xff] }
 0x3ad   : > { %v4680_v63 = vpop.f32.mrb[12].mxu0  ;;  %4931 = vrot.lane.b32.xlu1 %v4930_v43, %s5453_s20  ;;  %4966 = vrot.lane.b32.xlu0 %v4965_v18, %s5459_s23  ;;  %v4995_v30 = vpack.i.bf16 %v7231_v16, %v2604_v36 }
 0x3ae   : > { %v2276_v39 = vadd.f32 %v4680_v63, %v7062_v61  ;;  %v2270_v0 = vpop.f32.mrb[13].mxu0 }
 0x3af   : > { %v2271_v57 = vadd.f32 %v7062_v61, %v2270_v0 }
 0x3b0   : > { %v2382_v45 = vmax.f32 %v2276_v39, 0.0  ;;  %v7274_v39 = vld [vmem:[#allocation3 + $0x48] sm:$0xff] }
 0x3b1   : > { %v2381_v42 = vmax.f32 %v2271_v57, 0.0  ;;  %4941 = vrot.lane.b32.xlu1 %v4940_v31, %s5459_s23  ;;  %4976 = vrot.lane.b32.xlu0 %v4975_v62, %s5457_s7  ;;  %v5065_v31 = vpack.i.bf16 %v7231_v16, %v7274_v39  ;;  %v2499_v62 = vld [vmem:[#allocation3 + $0xa] sm:$0xff] }
 0x3b2   : > { %2415 = vst.msk [vmem:[#allocation3 + $0xb1] sm:$0xff] %vm296_vm3, %v2382_v45  ;;  %v7283_v45 = vld [vmem:[#allocation3 + $0x38] sm:$0xff] }
 0x3b3   : > { %2414 = vst.msk [vmem:[#allocation3 + $0xa9] sm:$0xff] %vm296_vm3, %v2381_v42  ;;  %v5040_v23 = vpack.i.bf16 %v2499_v62, %v7283_v45  ;;  %v5075_v42 = vpack.i.bf16 %v2627_v10, %v7157_v58  ;;  %v5105_v29 = vpack.i.bf16 %v7283_v45, %v7155_v9 }
 0x3b5   : > { %4951 = vrot.lane.b32.xlu1 %v4950_v4, %s5457_s7  ;;  %4986 = vrot.lane.b32.xlu0 %v4985_v53, %s5457_s7 }
 0x3b9   : > { %4961 = vrot.lane.b32.xlu1 %v4960_v11, %s5457_s7  ;;  %4996 = vrot.lane.b32.xlu0 %v4995_v30, %s5453_s20  ;;  %v2670_v63 = vld [vmem:[#allocation3 + $0xb1] sm:$0xff] }
 0x3ba   : > { %v7236_v33 = vld [vmem:[#allocation3 + $0xa9] sm:$0xff]  ;;  %v5030_v57 = vpack.i.bf16 %v7219_v15, %v2670_v63  ;;  %v2531_v15 = vld [vmem:[#allocation3 + $0x20] sm:$0xff] }
 0x3bb   : > { %v5005_v21 = vpack.i.bf16 %v2635_v7, %v7236_v33  ;;  %v2637_v52 = vld [vmem:[#allocation3 + $0xa8] sm:$0xff]  ;;  %v2638_v20 = vld [vmem:[#allocation3 + $0xb0] sm:$0xff]  ;;  %v5050_v53 = vpack.i.bf16 %v2531_v15, %v7110_v41 }
 0x3bc   : > { %v7251_v6 = vld [vmem:[#allocation3 + $0xaa] sm:$0xff]  ;;  %v5000_v35 = vpack.i.bf16 %v2602_v48, %v2637_v52  ;;  %v5020_v43 = vpack.i.bf16 %v2603_v27, %v2638_v20  ;;  %v5095_v27 = vpack.i.bf16 %v7224_v12, %v7236_v33 }
 0x3bd   : > { %v4683_v50 = vpop.f32.mrb[14].mxu0  ;;  %4971 = vrot.lane.b32.xlu1 %v4970_v26, %s5453_s20  ;;  %5006 = vrot.lane.b32.xlu0 %v5005_v21, %s5459_s23  ;;  %v5035_v14 = vpack.i.bf16 %v7255_v24, %v7251_v6 }
 0x3be   : > { %v2286_v59 = vadd.f32 %v4683_v50, %v7062_v61  ;;  %v2280_v25 = vpop.f32.mrb[15].mxu0 }
 0x3bf   : > { %v2281_v55 = vadd.f32 %v7062_v61, %v2280_v25  ;;  %v5090_v25 = vpack.i.bf16 %v7261_v1, %v7214_v46  ;;  %v3717_v1 = vld [vmem:[#allocation4 + $0x108] sm:$0xff] }
 0x3c0   : > { %v2384_v32 = vmax.f32 %v2286_v59, 0.0 }
 0x3c1   : > { %v2383_v54 = vmax.f32 %v2281_v55, 0.0  ;;  %4981 = vrot.lane.b32.xlu1 %v4980_v5, %s5459_s23  ;;  %5016 = vrot.lane.b32.xlu0 %v5015_v2, %s5457_s7 }
 0x3c2   : > { %2417 = vst.msk [vmem:[#allocation3 + $0xc9] sm:$0xff] %vm296_vm3, %v2384_v32 }
 0x3c3   : > { %2416 = vst.msk [vmem:[#allocation3 + $0xc1] sm:$0xff] %vm296_vm3, %v2383_v54 }
 0x3c5   : > { %4991 = vrot.lane.b32.xlu1 %v4990_v38, %s5459_s23  ;;  %5026 = vrot.lane.b32.xlu0 %v5025_v8, %s5459_s23 }
 0x3c9   : > { %5001 = vrot.lane.b32.xlu1 %v5000_v35, %s5457_s7  ;;  %5036 = vrot.lane.b32.xlu0 %v5035_v14, %s5453_s20  ;;  %v2672_v10 = vld [vmem:[#allocation3 + $0xc9] sm:$0xff] }
 0x3ca   : > { %v7263_v44 = vld [vmem:[#allocation3 + $0xc0] sm:$0xff]  ;;  %v2640_v41 = vld [vmem:[#allocation3 + $0xc8] sm:$0xff]  ;;  %v5080_v12 = vpack.i.bf16 %v2638_v20, %v2672_v10 }
 0x3cb   : > { %v5045_v34 = vpack.i.bf16 %v2604_v36, %v7263_v44  ;;  %v7267_v22 = vld [vmem:[#allocation3 + $0xc1] sm:$0xff]  ;;  %v2607_v36 = vld [vmem:[#allocation3 + $0xb2] sm:$0xff]  ;;  %v7306_v50 = vld [vmem:[#allocation3 + $0xca] sm:$0xff] }
 0x3cc   : > { %v5055_v18 = vpack.i.bf16 %v2637_v52, %v7267_v22  ;;  %v2608_v4 = vld [vmem:[#allocation3 + $0xc2] sm:$0xff]  ;;  %v5060_v48 = vpack.i.bf16 %v7243_v19, %v2607_v36  ;;  %v5115_v33 = vpack.i.bf16 %v2670_v63, %v7306_v50 }
 0x3cd   : > { %v4686_v60 = vpop.f32.mrb[16].mxu0  ;;  %5011 = vrot.lane.b32.xlu1 %v5010_v28, %s5453_s20  ;;  %5046 = vrot.lane.b32.xlu0 %v5045_v34, %s5457_s7  ;;  %v5085_v17 = vpack.i.bf16 %v2608_v4, %v7195_v51  ;;  %v5070_v51 = vpack.i.bf16 %v2605_v49, %v2640_v41  ;;  %v3716_v49 = vld [vmem:[#allocation4 + $0x100] sm:$0xff] }
 0x3ce   : > { %v2296_v40 = vadd.f32 %v4686_v60, %v7062_v61  ;;  %v2290_v3 = vpop.f32.mrb[17].mxu0  ;;  %v7324_v34 = vpack.c.bf16 %v3717_v1, %v3716_v49 }
 0x3cf   : > { %v2291_v37 = vadd.f32 %v7062_v61, %v2290_v3 }
 0x3d0   : > { %v2386_v7 = vmax.f32 %v2296_v40, 0.0  ;;  %4829 = vmatprep.subr.bf16.mxu0 %v7324_v34  ;;  %v5120_v40 = vpack.i.bf16 %v7255_v24, %v7207_v13 }
 0x3d1   : > { %v2385_v0 = vmax.f32 %v2291_v37, 0.0  ;;  %5021 = vrot.lane.b32.xlu1 %v5020_v43, %s5457_s7  ;;  %5056 = vrot.lane.b32.xlu0 %v5055_v18, %s5459_s23 }
 0x3d2   : > { %2419 = vst.msk [vmem:[#allocation3 + $0xe1] sm:$0xff] %vm296_vm3, %v2386_v7 }
 0x3d3   : > { %2418 = vst.msk [vmem:[#allocation3 + $0xd9] sm:$0xff] %vm296_vm3, %v2385_v0 }
 0x3d5   : > { %5031 = vrot.lane.b32.xlu1 %v5030_v57, %s5459_s23  ;;  %5066 = vrot.lane.b32.xlu0 %v5065_v31, %s5457_s7 }
 0x3d9   : > { %5041 = vrot.lane.b32.xlu1 %v5040_v23, %s5457_s7  ;;  %5076 = vrot.lane.b32.xlu0 %v5075_v42, %s5459_s23  ;;  %v2674_v2 = vld [vmem:[#allocation3 + $0xe1] sm:$0xff] }
 0x3da   : > { %v2642_v59 = vld [vmem:[#allocation3 + $0xe0] sm:$0xff]  ;;  %v2641_v5 = vld [vmem:[#allocation3 + $0xd8] sm:$0xff]  ;;  %v5135_v8 = vpack.i.bf16 %v2640_v41, %v2674_v2 }
 0x3db   : > { %v5125_v55 = vpack.i.bf16 %v2607_v36, %v2642_v59  ;;  %v5100_v38 = vpack.i.bf16 %v7251_v6, %v2641_v5  ;;  %v2673_v52 = vld [vmem:[#allocation3 + $0xd9] sm:$0xff]  ;;  %v7331_v60 = vld [vmem:[#allocation3 + $0xe2] sm:$0xff]  ;;  %v7361_v36 = vpop.permute.xlu0 %4906 }
 0x3dc   : > { %v5110_v6 = vpack.i.bf16 %v7263_v44, %v2673_v52  ;;  %v5155_v3 = vpack.i.bf16 %v2672_v10, %v7331_v60  ;;  %v5130_v44 = vpack.i.bf16 %v7274_v39, %v7177_v47  ;;  %v2610_v18 = vld [vmem:[#allocation3 + $0xda] sm:$0xff] }
 0x3dd   : > { %v4689_v16 = vpop.f32.mrb[18].mxu0  ;;  %5051 = vrot.lane.b32.xlu1 %v5050_v53, %s5459_s23  ;;  %5086 = vrot.lane.b32.xlu0 %v5085_v17, %s5453_s20  ;;  %v5140_v57 = vpack.i.bf16 %v7267_v22, %v2610_v18 }
 0x3de   : > { %v2306_v11 = vadd.f32 %v4689_v16, %v7062_v61  ;;  %v2300_v30 = vpop.f32.mrb[19].mxu0 }
 0x3df   : > { %v2301_v58 = vadd.f32 %v7062_v61, %v2300_v30 }
 0x3e0   : > { %v2388_v26 = vmax.f32 %v2306_v11, 0.0 }
 0x3e1   : > { %v2387_v21 = vmax.f32 %v2301_v58, 0.0  ;;  %5061 = vrot.lane.b32.xlu1 %v5060_v48, %s5453_s20  ;;  %5096 = vrot.lane.b32.xlu0 %v5095_v27, %s5453_s20 }
 0x3e2   : > { %2421 = vst.msk [vmem:[#allocation3 + $0xf9] sm:$0xff] %vm296_vm3, %v2388_v26 }
 0x3e3   : > { %2420 = vst.msk [vmem:[#allocation3 + $0xf1] sm:$0xff] %vm296_vm3, %v2387_v21 }
 0x3e5   : > { %5071 = vrot.lane.b32.xlu1 %v5070_v51, %s5457_s7  ;;  %5106 = vrot.lane.b32.xlu0 %v5105_v29, %s5459_s23 }
 0x3e9   : > { %5081 = vrot.lane.b32.xlu1 %v5080_v12, %s5459_s23  ;;  %5116 = vrot.lane.b32.xlu0 %v5115_v33, %s5453_s20  ;;  %v2676_v37 = vld [vmem:[#allocation3 + $0xf9] sm:$0xff]  ;;  %v7385_v33 = vpop.permute.xlu1 %4901 }
 0x3ea   : > { %v7320_v14 = vld [vmem:[#allocation3 + $0xf0] sm:$0xff]  ;;  %v5165_v43 = vpack.i.bf16 %v2642_v59, %v2676_v37  ;;  %v7350_v42 = vld [vmem:[#allocation3 + $0xfa] sm:$0xff] }
 0x3eb   : > { %v5145_v20 = vpack.i.bf16 %v2608_v4, %v7320_v14  ;;  %v2675_v23 = vld [vmem:[#allocation3 + $0xf1] sm:$0xff]  ;;  %v5185_v53 = vpack.i.bf16 %v2674_v2, %v7350_v42 }
 0x3ec   : > { %v5150_v15 = vpack.i.bf16 %v2641_v5, %v2675_v23  ;;  %v2644_v17 = vld [vmem:[#allocation3 + $0xf8] sm:$0xff] }
 0x3ed   : > { %v4692_v32 = vpop.f32.mrb[20].mxu0  ;;  %5091 = vrot.lane.b32.xlu1 %v5090_v25, %s5457_s7  ;;  %5126 = vrot.lane.b32.xlu0 %v5125_v55, %s5457_s7  ;;  %v5160_v16 = vpack.i.bf16 %v7306_v50, %v2644_v17  ;;  %v2612_v30 = vld [vmem:[#allocation3 + $0xf2] sm:$0xff] }
 0x3ee   : > { %v2316_v19 = vadd.f32 %v4692_v32, %v7062_v61  ;;  %v2310_v54 = vpop.f32.mrb[21].mxu0  ;;  %v5170_v27 = vpack.i.bf16 %v2673_v52, %v2612_v30 }
 0x3ef   : > { %v2311_v56 = vadd.f32 %v7062_v61, %v2310_v54 }
 0x3f0   : > { %v2390_v35 = vmax.f32 %v2316_v19, 0.0 }
 0x3f1   : > { %v2389_v28 = vmax.f32 %v2311_v56, 0.0  ;;  %5101 = vrot.lane.b32.xlu1 %v5100_v38, %s5457_s7  ;;  %5136 = vrot.lane.b32.xlu0 %v5135_v8, %s5459_s23  ;;  %v7396_v8 = vpop.permute.xlu1 %4911 }
 0x3f2   : > { %2423 = vst.msk [vmem:[#allocation3 + $0x111] sm:$0xff] %vm296_vm3, %v2390_v35  ;;  %v7369_v48 = vpop.permute.xlu0 %4916 }
 0x3f3   : > { %2422 = vst.msk [vmem:[#allocation3 + $0x109] sm:$0xff] %vm296_vm3, %v2389_v28 }
 0x3f5   : > { %5111 = vrot.lane.b32.xlu1 %v5110_v6, %s5459_s23  ;;  %5146 = vrot.lane.b32.xlu0 %v5145_v20, %s5457_s7 }
 0x3f9   : > { %5121 = vrot.lane.b32.xlu1 %v5120_v40, %s5457_s7  ;;  %5156 = vrot.lane.b32.xlu0 %v5155_v3, %s5453_s20  ;;  %v7357_v22 = vld [vmem:[#allocation3 + $0x111] sm:$0xff] }
 0x3fa   : > { %v7342_v7 = vld [vmem:[#allocation3 + $0x108] sm:$0xff]  ;;  %v5195_v11 = vpack.i.bf16 %v2644_v17, %v7357_v22  ;;  %v7374_v21 = vld [vmem:[#allocation3 + $0x112] sm:$0xff] }
 0x3fb   : > { %v5175_v31 = vpack.i.bf16 %v2610_v18, %v7342_v7  ;;  %v7372_v41 = vld [vmem:[#allocation3 + $0x109] sm:$0xff]  ;;  %v5215_v10 = vpack.i.bf16 %v2676_v37, %v7374_v21  ;;  %v4914_v37 = vunpack.i.h.bf16 %v7396_v8 }
 0x3fc   : > { %v5180_v29 = vpack.i.bf16 %v7320_v14, %v7372_v41  ;;  %v2646_v50 = vld [vmem:[#allocation3 + $0x110] sm:$0xff] }
 0x3fd   : > { %v4695_v63 = vpop.f32.mrb[22].mxu0  ;;  %5131 = vrot.lane.b32.xlu1 %v5130_v44, %s5459_s23  ;;  %5166 = vrot.lane.b32.xlu0 %v5165_v43, %s5459_s23  ;;  %v5190_v32 = vpack.i.bf16 %v7331_v60, %v2646_v50  ;;  %v2614_v56 = vld [vmem:[#allocation3 + $0x10a] sm:$0xff] }
 0x3fe   : > { %v2326_v13 = vadd.f32 %v4695_v63, %v7062_v61  ;;  %v2320_v24 = vpop.f32.mrb[23].mxu0 }
 0x3ff   : > { %v2321_v0 = vadd.f32 %v7062_v61, %v2320_v24 }
 0x400   : > { %v2392_v62 = vmax.f32 %v2326_v13, 0.0  ;;  %v4918_v13 = vunpack.i.l.bf16 %v7369_v48 }
 0x401   : > { %v2391_v4 = vmax.f32 %v2321_v0, 0.0  ;;  %5141 = vrot.lane.b32.xlu1 %v5140_v57, %s5453_s20  ;;  %5176 = vrot.lane.b32.xlu0 %v5175_v31, %s5457_s7 }
 0x402   : > { %2425 = vst.msk [vmem:[#allocation3 + $0x129] sm:$0xff] %vm296_vm3, %v2392_v62  ;;  %v7404_v14 = vpop.permute.xlu1 %4921 }
 0x403   : > { %2424 = vst.msk [vmem:[#allocation3 + $0x121] sm:$0xff] %vm296_vm3, %v2391_v4  ;;  %v3496_v4 = vsel %vm296_vm3, %v7283_v45, %v4914_v37  ;;  %v7451_v45 = vld [vmem:[%s8018_s2] ss:$0 sm:$0xff] }
 0x405   : > { %5151 = vrot.lane.b32.xlu1 %v5150_v15, %s5459_s23  ;;  %5186 = vrot.lane.b32.xlu0 %v5185_v53, %s5453_s20 }
 0x409   : > { %5161 = vrot.lane.b32.xlu1 %v5160_v16, %s5457_s7  ;;  %5196 = vrot.lane.b32.xlu0 %v5195_v11, %s5459_s23  ;;  %v7383_v12 = vld [vmem:[#allocation3 + $0x129] sm:$0xff]  ;;  %v4919_v11 = vunpack.i.h.bf16 %v7369_v48 }
 0x40a   : > { %v7367_v58 = vld [vmem:[#allocation3 + $0x120] sm:$0xff]  ;;  %v5225_v19 = vpack.i.bf16 %v2646_v50, %v7383_v12  ;;  %v2648_v28 = vld [vmem:[#allocation3 + $0x128] sm:$0xff] }
 0x40b   : > { %v5205_v26 = vpack.i.bf16 %v2612_v30, %v7367_v58  ;;  %v7401_v35 = vld [vmem:[#allocation3 + $0x121] sm:$0xff]  ;;  %v5220_v40 = vpack.i.bf16 %v7350_v42, %v2648_v28  ;;  %v7423_v18 = vld [vmem:[#allocation3 + $0x12a] sm:$0xff] }
 0x40c   : > { %v5210_v1 = vpack.i.bf16 %v7342_v7, %v7401_v35  ;;  %v7421_v43 = vld [vmem:[#allocation3 + $0x122] sm:$0xff]  ;;  %v5245_v62 = vpack.i.bf16 %v7357_v22, %v7423_v18 }
 0x40d   : > { %5171 = vrot.lane.b32.xlu1 %v5170_v27, %s5453_s20  ;;  %5206 = vrot.lane.b32.xlu0 %v5205_v26, %s5457_s7  ;;  %v5230_v31 = vpack.i.bf16 %v7372_v41, %v7421_v43 }
 0x40f   : > { %v7378_v51 = vpop.permute.xlu0 %4926 }
 0x411   : > { %v4698_v59 = vpop.f32.mrb[24].mxu0  ;;  %5181 = vrot.lane.b32.xlu1 %v5180_v29, %s5459_s23  ;;  %5216 = vrot.lane.b32.xlu0 %v5215_v10, %s5453_s20 }
 0x412   : > { %v2336_v25 = vadd.f32 %v4698_v59, %v7062_v61  ;;  %v2330_v55 = vpop.f32.mrb[25].mxu0 }
 0x413   : > { %v2331_v5 = vadd.f32 %v7062_v61, %v2330_v55  ;;  %v4937_v2 = vpop.permute.xlu0 %4936  ;;  %v5200_v61 = vpack.i.bf16 %v2675_v23, %v2614_v56 }
 0x414   : > { %v2394_v54 = vmax.f32 %v2336_v25, 0.0  ;;  %v4939_v7 = vunpack.i.h.bf16 %v4937_v2  ;;  %v4938_v24 = vunpack.i.l.bf16 %v4937_v2  ;;  %v3497_v25 = vsel %vm296_vm3, %v7274_v39, %v4918_v13 }
 0x415   : > { %v2393_v38 = vmax.f32 %v2331_v5, 0.0  ;;  %5191 = vrot.lane.b32.xlu1 %v5190_v32, %s5457_s7  ;;  %5226 = vrot.lane.b32.xlu0 %v5225_v19, %s5459_s23  ;;  %v4923_v13 = vunpack.i.l.bf16 %v7404_v14 }
 0x416   : > { %2427 = vst.msk [vmem:[#allocation3 + $0x141] sm:$0xff] %vm296_vm3, %v2394_v54  ;;  %v3528_v22 = vsel %vm1998_vm9, %v3496_v4, %v4939_v7  ;;  %v3718_v4 = vld [vmem:[#allocation4 + $0x110] sm:$0xff] }
 0x417   : > { %2426 = vst.msk [vmem:[#allocation3 + $0x139] sm:$0xff] %vm296_vm3, %v2393_v38  ;;  %v7399_v52 = vpop.permute.xlu0 %4946 }
 0x418   : > { %v4948_v53 = vunpack.i.l.bf16 %v7399_v52  ;;  %v4949_v55 = vunpack.i.h.bf16 %v7399_v52 }
 0x419   : > { %5201 = vrot.lane.b32.xlu1 %v5200_v61, %s5453_s20 }
 0x41a   : > { %v3594_v39 = vsel %vm296_vm3, %v7177_v47, %v4948_v53  ;;  %v4903_v47 = vunpack.i.l.bf16 %v7385_v33 }
 0x41b   : > { %v7406_v49 = vpop.permute.xlu0 %4956 }
 0x41c   : > { %v4959_v54 = vunpack.i.h.bf16 %v7406_v49 }
 0x41d   : > { %5211 = vrot.lane.b32.xlu1 %v5210_v1, %s5459_s23 }
 0x41e   : > { %v7411_v6 = vld [vmem:[#allocation3 + $0x138] sm:$0xff]  ;;  %v7465_v19 = vld [vmem:[#allocation3 + $0x140] sm:$0xff] }
 0x41f   : > { %v7413_v20 = vpop.permute.xlu1 %4931  ;;  %v7415_v60 = vpop.permute.xlu0 %4966  ;;  %v5235_v3 = vpack.i.bf16 %v2614_v56, %v7411_v6  ;;  %v7438_v15 = vld [vmem:[#allocation3 + $0x139] sm:$0xff]  ;;  %v4958_v56 = vunpack.i.l.bf16 %v7406_v49 }
 0x420   : > { %v4934_v44 = vunpack.i.h.bf16 %v7413_v20  ;;  %v5240_v48 = vpack.i.bf16 %v7367_v58, %v7438_v15  ;;  %v7484_v7 = vld [vmem:[#allocation3 + $0x13a] sm:$0xff] }
 0x421   : > { %5221 = vrot.lane.b32.xlu1 %v5220_v40, %s5457_s7  ;;  %5236 = vrot.lane.b32.xlu0 %v5235_v3, %s5457_s7 }
 0x422   : > { %v3593_v63 = vsel %vm296_vm3, %v7155_v9, %v4934_v44  ;;  %v7440_v9 = vld [vmem:[#allocation3 + $0x141] sm:$0xff]  ;;  %v2569_v44 = vld [vmem:[#allocation3 + $0x69] sm:$0xff] }
 0x423   : > { %v4942_v0 = vpop.permute.xlu1 %4941  ;;  %v7430_v57 = vpop.permute.xlu0 %4976  ;;  %v3625_v16 = vsel %vm1998_vm9, %v3593_v63, %v4938_v24  ;;  %v5255_v59 = vpack.i.bf16 %v2648_v28, %v7440_v9  ;;  %v5250_v28 = vpack.i.bf16 %v7374_v21, %v7465_v19  ;;  %v3498_v63 = vsel %vm296_vm3, %v7214_v46, %v4919_v11  ;;  %v3719_v46 = vld [vmem:[#allocation4 + $0x118] sm:$0xff] }
 0x424   : > { %v4944_v23 = vunpack.i.h.bf16 %v4942_v0  ;;  %v4943_v42 = vunpack.i.l.bf16 %v4942_v0  ;;  %v4969_v24 = vunpack.i.h.bf16 %v7415_v60  ;;  %v4968_v0 = vunpack.i.l.bf16 %v7415_v60 }
 0x425   : > { %v4701_v17 = vpop.f32.mrb[26].mxu0  ;;  %5231 = vrot.lane.b32.xlu1 %v5230_v31, %s5453_s20  ;;  %5246 = vrot.lane.b32.xlu0 %v5245_v62, %s5453_s20  ;;  %v3595_v21 = vsel %vm296_vm3, %v2569_v44, %v4949_v55  ;;  %v2434_v31 = vld [vmem:[#allocation3] sm:$0xff]  ;;  %v4924_v62 = vunpack.i.h.bf16 %v7404_v14  ;;  %v5260_v60 = vpack.i.bf16 %v7401_v35, %v7484_v7  ;;  %v4978_v35 = vunpack.i.l.bf16 %v7430_v57 }
 0x426   : > { %v2346_v30 = vadd.f32 %v7451_v45, %v4701_v17  ;;  %v2340_v27 = vpop.f32.mrb[27].mxu0  ;;  %v3657_v26 = vsel %vm3555_vm12, %v3625_v16, %v4943_v42  ;;  %v3561_v41 = vsel %vm3555_vm12, %v3528_v22, %v4944_v23  ;;  %v3491_v14 = vsel %vm296_vm3, %v2434_v31, %v4903_v47 }
 0x427   : > { %v2341_v29 = vadd.f32 %v7451_v45, %v2340_v27  ;;  %v4952_v10 = vpop.permute.xlu1 %4951  ;;  %v7457_v50 = vpop.permute.xlu0 %4986  ;;  %3912 = vmatprep.mubr.f32.mxu1 %v3657_v26  ;;  %v4979_v27 = vunpack.i.h.bf16 %v7430_v57  ;;  %v2570_v26 = vld [vmem:[#allocation3 + $0x79] sm:$0xff] }
 0x428   : > { %v2396_v5 = vmax.f32 %v2346_v30, 0.0  ;;  %v4954_v2 = vunpack.i.h.bf16 %v4952_v10  ;;  %v4953_v32 = vunpack.i.l.bf16 %v4952_v10  ;;  %3913 = vmatmul.mubr.f32.vlgmr.msra.gmra.mrb[0].mxu1 %v3561_v41  ;;  %v2442_v30 = vld [vmem:[#allocation3 + $0x60] sm:$0xff]  ;;  %v2443_v10 = vld [vmem:[#allocation3 + $0x68] sm:$0xff]  ;;  %v4988_v44 = vunpack.i.l.bf16 %v7457_v50 }
 0x429   : > { %v2395_v38 = vmax.f32 %v2341_v29, 0.0  ;;  %5241 = vrot.lane.b32.xlu1 %v5240_v48, %s5459_s23  ;;  %5256 = vrot.lane.b32.xlu0 %v5255_v59, %s5459_s23  ;;  %v3499_v41 = vsel %vm296_vm3, %v2442_v30, %v4923_v13  ;;  %v7506_v29 = vld [vmem:[#allocation3 + $0x142] sm:$0xff]  ;;  %v7508_v48 = vpack.c.bf16 %v3719_v46, %v3718_v4 }
 0x42a   : > { %2429 = vst.msk [vmem:[#allocation3 + $0x159] sm:$0xff] %vm296_vm3, %v2396_v5  ;;  %v3626_v58 = vsel %vm1998_vm9, %v3594_v39, %v4953_v32  ;;  %v3529_v52 = vsel %vm1998_vm9, %v3497_v25, %v4954_v2  ;;  %v3500_v2 = vsel %vm296_vm3, %v2443_v10, %v4924_v62  ;;  %v4989_v32 = vunpack.i.h.bf16 %v7457_v50 }
 0x42b   : > { %2428 = vst.msk [vmem:[#allocation3 + $0x151] sm:$0xff] %vm296_vm3, %v2395_v38  ;;  %v4962_v61 = vpop.permute.xlu1 %4961  ;;  %v7477_v1 = vpop.permute.xlu0 %4996  ;;  %v3658_v49 = vsel %vm3555_vm12, %v3626_v58, %v4958_v56  ;;  %v3562_v40 = vsel %vm3555_vm12, %v3529_v52, %v4959_v54  ;;  %v4928_v58 = vunpack.i.l.bf16 %v7378_v51 }
 0x42c   : > { %v4964_v3 = vunpack.i.h.bf16 %v4962_v61  ;;  %v4963_v37 = vunpack.i.l.bf16 %v4962_v61  ;;  %3917 = vmatprep.mubr.f32.mxu1 %v3658_v49  ;;  %v4999_v54 = vunpack.i.h.bf16 %v7477_v1 }
 0x42d   : > { %5251 = vrot.lane.b32.xlu1 %v5250_v28, %s5457_s7  ;;  %3918 = vmatmul.mubr.f32.gmra.mrb[2].mxu1 %v3562_v40  ;;  %v5275_v28 = vpack.i.bf16 %v7383_v12, %v7506_v29  ;;  %v2562_v12 = vld [vmem:[#allocation3 + $0x19] sm:$0xff] }
 0x42e   : > { %v3627_v23 = vsel %vm1998_vm9, %v3595_v21, %v4963_v37  ;;  %v3530_v42 = vsel %vm1998_vm9, %v3498_v63, %v4964_v3  ;;  %v2571_v37 = vld [vmem:[#allocation3 + $0x81] sm:$0xff]  ;;  %v3588_v62 = vsel %vm296_vm3, %v2562_v12, %v4999_v54 }
 0x42f   : > { %v4972_v53 = vpop.permute.xlu1 %4971  ;;  %v7496_v17 = vpop.permute.xlu0 %5006  ;;  %v3659_v16 = vsel %vm3555_vm12, %v3627_v23, %v4968_v0  ;;  %v3563_v22 = vsel %vm3555_vm12, %v3530_v42, %v4969_v24  ;;  %v3532_v23 = vsel %vm1998_vm9, %v3500_v2, %v4989_v32  ;;  %v2444_v2 = vld [vmem:[#allocation3 + $0x78] sm:$0xff]  ;;  %v2445_v12 = vld [vmem:[#allocation3 + $0x80] sm:$0xff] }
 0x430   : > { %v4973_v11 = vunpack.i.l.bf16 %v4972_v53  ;;  %3922 = vmatprep.mubr.f32.mxu1 %v3659_v16  ;;  %v4974_v59 = vunpack.i.h.bf16 %v4972_v53 }
 0x431   : > { %5261 = vrot.lane.b32.xlu1 %v5260_v60, %s5453_s20  ;;  %3923 = vmatmul.mubr.f32.gmra.mrb[4].mxu1 %v3563_v22  ;;  %v7528_v40 = vld [vmem:[#allocation3 + $0x159] sm:$0xff]  ;;  %v4998_v60 = vunpack.i.l.bf16 %v7477_v1 }
 0x432   : > { %v7511_v25 = vld [vmem:[#allocation3 + $0x151] sm:$0xff]  ;;  %v3596_v5 = vsel %vm296_vm3, %v2570_v26, %v4973_v11  ;;  %v3597_v24 = vsel %vm296_vm3, %v2571_v37, %v4974_v59  ;;  %v5285_v50 = vpack.i.bf16 %v7465_v19, %v7528_v40 }
 0x433   : > { %v7513_v55 = vld [vmem:[#allocation3 + $0x150] sm:$0xff]  ;;  %v4982_v56 = vpop.permute.xlu1 %4981  ;;  %v5017_v38 = vpop.permute.xlu0 %5016  ;;  %v5270_v39 = vpack.i.bf16 %v7411_v6, %v7511_v25  ;;  %v7524_v49 = vld [vmem:[#allocation3 + $0x158] sm:$0xff]  ;;  %v3628_v6 = vsel %vm1998_vm9, %v3596_v5, %v4978_v35  ;;  %v3629_v19 = vsel %vm1998_vm9, %v3597_v24, %v4988_v44  ;;  %v4904_v24 = vunpack.i.h.bf16 %v7385_v33 }
 0x434   : > { %v5265_v57 = vpack.i.bf16 %v7421_v43, %v7513_v55  ;;  %v4984_v52 = vunpack.i.h.bf16 %v4982_v56  ;;  %v4983_v61 = vunpack.i.l.bf16 %v4982_v56  ;;  %v5019_v47 = vunpack.i.h.bf16 %v5017_v38  ;;  %v7544_v16 = vld [vmem:[#allocation3 + $0x152] sm:$0xff] }
 0x435   : > { %v5018_v3 = vunpack.i.l.bf16 %v5017_v38  ;;  %5271 = vrot.lane.b32.xlu1 %v5270_v39, %s5459_s23  ;;  %v3531_v43 = vsel %vm1998_vm9, %v3499_v41, %v4979_v27  ;;  %v5280_v31 = vpack.i.bf16 %v7423_v18, %v7524_v49  ;;  %v5290_v5 = vpack.i.bf16 %v7438_v15, %v7544_v16  ;;  %v2572_v38 = vld [vmem:[#allocation3 + $0x91] sm:$0xff]  ;;  %v2573_v33 = vld [vmem:[#allocation3 + $0x99] sm:$0xff] }
 0x436   : > { %5266 = vrot.lane.b32.xlu0 %v5265_v57, %s5457_s7  ;;  %v3660_v63 = vsel %vm3555_vm12, %v3628_v6, %v4983_v61  ;;  %v3564_v13 = vsel %vm3555_vm12, %v3531_v43, %v4984_v52  ;;  %v3523_v22 = vsel %vm1998_vm9, %v3491_v14, %v5019_v47  ;;  %v3501_v39 = vsel %vm296_vm3, %v2444_v2, %v4928_v58 }
 0x437   : > { %v4992_v0 = vpop.permute.xlu1 %4991  ;;  %v5027_v21 = vpop.permute.xlu0 %5026  ;;  %3927 = vmatprep.mubr.f32.mxu1 %v3660_v63  ;;  %v3620_v18 = vsel %vm1998_vm9, %v3588_v62, %v5018_v3  ;;  %v5009_v57 = vunpack.i.h.bf16 %v7496_v17  ;;  %v5008_v52 = vunpack.i.l.bf16 %v7496_v17  ;;  %v3598_v15 = vsel %vm296_vm3, %v2572_v38, %v4998_v60 }
 0x438   : > { %v4994_v42 = vunpack.i.h.bf16 %v4992_v0  ;;  %v4993_v4 = vunpack.i.l.bf16 %v4992_v0  ;;  %v5029_v46 = vunpack.i.h.bf16 %v5027_v21  ;;  %v5028_v53 = vunpack.i.l.bf16 %v5027_v21  ;;  %3928 = vmatmul.mubr.f32.gmra.mrb[6].mxu1 %v3564_v13 }
 0x439   : > { %v4704_v11 = vpop.f32.mrb[28].mxu0  ;;  %5281 = vrot.lane.b32.xlu1 %v5280_v31, %s5457_s7  ;;  %v4929_v43 = vunpack.i.h.bf16 %v7378_v51  ;;  %v4933_v62 = vunpack.i.l.bf16 %v7413_v20  ;;  %v7601_v20 = vld [vmem:[#allocation3 + $0x15a] sm:$0xff] }
 0x43a   : > { %5276 = vrot.lane.b32.xlu0 %v5275_v28, %s5453_s20  ;;  %v2356_v30 = vadd.f32 %v7451_v45, %v4704_v11  ;;  %v2350_v27 = vpop.f32.mrb[29].mxu0  ;;  %v3652_v26 = vsel %vm3555_vm12, %v3620_v18, %v5028_v53  ;;  %v3661_v41 = vsel %vm3555_vm12, %v3629_v19, %v4993_v4  ;;  %v3556_v1 = vsel %vm3555_vm12, %v3523_v22, %v5029_v46  ;;  %v2435_v19 = vld [vmem:[#allocation3 + $0x8] sm:$0xff] }
 0x43b   : > { %v2351_v14 = vadd.f32 %v7451_v45, %v2350_v27  ;;  %v5002_v10 = vpop.permute.xlu1 %5001  ;;  %v7557_v35 = vpop.permute.xlu0 %5036  ;;  %3887 = vmatprep.mubr.f32.mxu0 %v3652_v26  ;;  %3932 = vmatprep.mubr.f32.mxu1 %v3661_v41  ;;  %v3565_v59 = vsel %vm3555_vm12, %v3532_v23, %v4994_v42  ;;  %v3502_v31 = vsel %vm296_vm3, %v2445_v12, %v4929_v43 }
 0x43c   : > { %v2398_v32 = vmax.f32 %v2356_v30, 0.0  ;;  %v5004_v54 = vunpack.i.h.bf16 %v5002_v10  ;;  %v5003_v56 = vunpack.i.l.bf16 %v5002_v10  ;;  %3888 = vmatmul.mubr.f32.vlgmr.msra.gmra.mrb[32].mxu0 %v3556_v1  ;;  %3933 = vmatmul.mubr.f32.gmra.mrb[8].mxu1 %v3565_v59  ;;  %v5038_v51 = vunpack.i.l.bf16 %v7557_v35  ;;  %v2574_v1 = vld [vmem:[#allocation3 + $0xa9] sm:$0xff] }
 0x43d   : > { %v2397_v61 = vmax.f32 %v2351_v14, 0.0  ;;  %5291 = vrot.lane.b32.xlu1 %v5290_v5, %s5453_s20  ;;  %4831 = vmatpush3.bf16.msra.mxu0 %v7324_v34  ;;  %v5305_v5 = vpack.i.bf16 %v7440_v9, %v7601_v20 }
 0x43e   : > { %5286 = vrot.lane.b32.xlu0 %v5285_v50, %s5459_s23  ;;  %2431 = vst.msk [vmem:[#allocation3 + $0x171] sm:$0xff] %vm296_vm3, %v2398_v32  ;;  %v3630_v28 = vsel %vm1998_vm9, %v3598_v15, %v5003_v56  ;;  %v3533_v47 = vsel %vm1998_vm9, %v3501_v39, %v5004_v54  ;;  %4833 = vmatprep.subr.bf16.mxu0 %v7508_v48  ;;  %v2446_v32 = vld [vmem:[#allocation3 + $0x90] sm:$0xff] }
 0x43f   : > { %2430 = vst.msk [vmem:[#allocation3 + $0x169] sm:$0xff] %vm296_vm3, %v2397_v61  ;;  %v7573_v58 = vpop.permute.xlu1 %5011  ;;  %v7575_v17 = vpop.permute.xlu0 %5046  ;;  %v3662_v3 = vsel %vm3555_vm12, %v3630_v28, %v5008_v52  ;;  %v3566_v6 = vsel %vm3555_vm12, %v3533_v47, %v5009_v57  ;;  %v3600_v2 = vsel %vm296_vm3, %v2574_v1, %v5038_v51  ;;  %v3503_v56 = vsel %vm296_vm3, %v2446_v32, %v4933_v62  ;;  %v2563_v28 = vld [vmem:[#allocation3 + $0x21] sm:$0xff] }
 0x440   : > { %3937 = vmatprep.mubr.f32.mxu1 %v3662_v3  ;;  %v5013_v44 = vunpack.i.l.bf16 %v7573_v58  ;;  %v5048_v4 = vunpack.i.l.bf16 %v7575_v17  ;;  %v5049_v11 = vunpack.i.h.bf16 %v7575_v17  ;;  %v5014_v30 = vunpack.i.h.bf16 %v7573_v58 }
 0x441   : > { %3938 = vmatmul.mubr.f32.gmra.mrb[10].mxu1 %v3566_v6  ;;  %4835 = vmatpush3.bf16.msra.mxu0 %v7508_v48  ;;  %v3492_v57 = vsel %vm296_vm3, %v2435_v19, %v4904_v24  ;;  %v5039_v47 = vunpack.i.h.bf16 %v7557_v35  ;;  %v4908_v62 = vunpack.i.l.bf16 %v7361_v36 }
 0x442   : > { %v3599_v60 = vsel %vm296_vm3, %v2573_v33, %v5013_v44  ;;  %v3632_v54 = vsel %vm1998_vm9, %v3600_v2, %v5048_v4  ;;  %v3535_v15 = vsel %vm1998_vm9, %v3503_v56, %v5049_v11  ;;  %v3589_v6 = vsel %vm296_vm3, %v2563_v28, %v5014_v30  ;;  %v2436_v11 = vld [vmem:[#allocation3 + $0x18] sm:$0xff] }
 0x443   : > { %v5022_v37 = vpop.permute.xlu1 %5021  ;;  %v5057_v34 = vpop.permute.xlu0 %5056  ;;  %v2447_v56 = vld [vmem:[#allocation3 + $0x98] sm:$0xff]  ;;  %v4909_v28 = vunpack.i.h.bf16 %v7361_v36 }
 0x444   : > { %v5024_v63 = vunpack.i.h.bf16 %v5022_v37  ;;  %v5023_v13 = vunpack.i.l.bf16 %v5022_v37  ;;  %v5058_v18 = vunpack.i.l.bf16 %v5057_v34  ;;  %v5059_v27 = vunpack.i.h.bf16 %v5057_v34 }
 0x445   : > { %v7622_v39 = vld [vmem:[#allocation3 + $0x171] sm:$0xff] }
 0x446   : > { %v7584_v0 = vld [vmem:[#allocation3 + $0x169] sm:$0xff]  ;;  %v3664_v9 = vsel %vm3555_vm12, %v3632_v54, %v5058_v18  ;;  %v3568_v3 = vsel %vm3555_vm12, %v3535_v15, %v5059_v27  ;;  %v5315_v35 = vpack.i.bf16 %v7524_v49, %v7622_v39  ;;  %v3493_v18 = vsel %vm296_vm3, %v2436_v11, %v4908_v62  ;;  %v2575_v54 = vld [vmem:[#allocation3 + $0xb1] sm:$0xff] }
 0x447   : > { %v7586_v21 = vld [vmem:[#allocation3 + $0x168] sm:$0xff]  ;;  %v5032_v48 = vpop.permute.xlu1 %5031  ;;  %v7591_v23 = vpop.permute.xlu0 %5066  ;;  %v5300_v50 = vpack.i.bf16 %v7513_v55, %v7584_v0  ;;  %v7599_v22 = vld [vmem:[#allocation3 + $0x170] sm:$0xff]  ;;  %v3534_v55 = vsel %vm1998_vm9, %v3502_v31, %v5024_v63 }
 0x448   : > { %v5295_v42 = vpack.i.bf16 %v7484_v7, %v7586_v21  ;;  %v5034_v46 = vunpack.i.h.bf16 %v5032_v48  ;;  %v5033_v53 = vunpack.i.l.bf16 %v5032_v48  ;;  %v3631_v7 = vsel %vm1998_vm9, %v3599_v60, %v5023_v13  ;;  %v7620_v38 = vld [vmem:[#allocation3 + $0x16a] sm:$0xff]  ;;  %v7675_v15 = vld [vmem:[#allocation3 + $0x172] sm:$0xff] }
 0x449   : > { %5301 = vrot.lane.b32.xlu1 %v5300_v50, %s5459_s23  ;;  %v5310_v59 = vpack.i.bf16 %v7506_v29, %v7599_v22  ;;  %v5068_v43 = vunpack.i.l.bf16 %v7591_v23  ;;  %v5320_v63 = vpack.i.bf16 %v7511_v25, %v7620_v38  ;;  %v2564_v48 = vld [vmem:[#allocation3 + $0x31] sm:$0xff]  ;;  %v5069_v49 = vunpack.i.h.bf16 %v7591_v23 }
 0x44a   : > { %5296 = vrot.lane.b32.xlu0 %v5295_v42, %s5457_s7  ;;  %v3663_v26 = vsel %vm3555_vm12, %v3631_v7, %v5033_v53  ;;  %v3567_v41 = vsel %vm3555_vm12, %v3534_v55, %v5034_v46  ;;  %v3590_v33 = vsel %vm296_vm3, %v2564_v48, %v5039_v47 }
 0x44b   : > { %v5042_v14 = vpop.permute.xlu1 %5041  ;;  %v7611_v10 = vpop.permute.xlu0 %5076  ;;  %3942 = vmatprep.mubr.f32.mxu1 %v3663_v26  ;;  %v3622_v60 = vsel %vm1998_vm9, %v3590_v33, %v5068_v43  ;;  %v3525_v7 = vsel %vm1998_vm9, %v3493_v18, %v5069_v49 }
 0x44c   : > { %3943 = vmatmul.mubr.f32.gmra.mrb[12].mxu1 %v3567_v41  ;;  %v5044_v52 = vunpack.i.h.bf16 %v5042_v14  ;;  %v5043_v61 = vunpack.i.l.bf16 %v5042_v14  ;;  %v5078_v13 = vunpack.i.l.bf16 %v7611_v10  ;;  %v5079_v4 = vunpack.i.h.bf16 %v7611_v10 }
 0x44d   : > { %v4707_v29 = vpop.f32.mrb[30].mxu0  ;;  %5311 = vrot.lane.b32.xlu1 %v5310_v59, %s5457_s7  ;;  %3947 = vmatprep.mubr.f32.mxu1 %v3664_v9 }
 0x44e   : > { %5306 = vrot.lane.b32.xlu0 %v5305_v5, %s5453_s20  ;;  %v2366_v58 = vadd.f32 %v7451_v45, %v4707_v29  ;;  %v2360_v17 = vpop.f32.mrb[31].mxu0  ;;  %v3524_v25 = vsel %vm1998_vm9, %v3492_v57, %v5044_v52  ;;  %v3654_v23 = vsel %vm3555_vm12, %v3622_v60, %v5078_v13  ;;  %v3558_v30 = vsel %vm3555_vm12, %v3525_v7, %v5079_v4  ;;  %v2565_v13 = vld [vmem:[#allocation3 + $0x39] sm:$0xff]  ;;  %v2576_v7 = vld [vmem:[#allocation3 + $0xc1] sm:$0xff] }
 0x44f   : > { %v2361_v37 = vadd.f32 %v7451_v45, %v2360_v17  ;;  %v5052_v34 = vpop.permute.xlu1 %5051  ;;  %v7635_v44 = vpop.permute.xlu0 %5086  ;;  %v3621_v45 = vsel %vm1998_vm9, %v3589_v6, %v5043_v61 }
 0x450   : > { %v2400_v12 = vmax.f32 %v2366_v58, 0.0  ;;  %v5054_v24 = vunpack.i.h.bf16 %v5052_v34  ;;  %v5053_v31 = vunpack.i.l.bf16 %v5052_v34  ;;  %3948 = vmatmul.mubr.f32.gmra.mrb[14].mxu1 %v3568_v3  ;;  %v5088_v47 = vunpack.i.l.bf16 %v7635_v44  ;;  %v2437_v34 = vld [vmem:[#allocation3 + $0x20] sm:$0xff] }
 0x451   : > { %v2399_v51 = vmax.f32 %v2361_v37, 0.0  ;;  %5321 = vrot.lane.b32.xlu1 %v5320_v63, %s5453_s20  ;;  %v5335_v37 = vpack.i.bf16 %v7528_v40, %v7675_v15  ;;  %v5089_v40 = vunpack.i.h.bf16 %v7635_v44  ;;  %v2689_v44 = vld [vmem:[#allocation3 + $0x199] sm:$0xff] }
 0x452   : > { %5316 = vrot.lane.b32.xlu0 %v5315_v35, %s5459_s23  ;;  %2433 = vst.msk [vmem:[#allocation3 + $0x189] sm:$0xff] %vm296_vm3, %v2400_v12  ;;  %v3653_v50 = vsel %vm3555_vm12, %v3621_v45, %v5053_v31  ;;  %v3557_v42 = vsel %vm3555_vm12, %v3524_v25, %v5054_v24  ;;  %v3494_v45 = vsel %vm296_vm3, %v2437_v34, %v4909_v28  ;;  %v2449_v34 = vld [vmem:[#allocation3 + $0xb0] sm:$0xff] }
 0x453   : > { %2432 = vst.msk [vmem:[#allocation3 + $0x181] sm:$0xff] %vm296_vm3, %v2399_v51  ;;  %v5062_v46 = vpop.permute.xlu1 %5061  ;;  %v7654_v53 = vpop.permute.xlu0 %5096  ;;  %3892 = vmatprep.mubr.f32.mxu0 %v3653_v50  ;;  %v3591_v51 = vsel %vm296_vm3, %v2565_v13, %v5088_v47  ;;  %v2577_v47 = vld [vmem:[#allocation3 + $0xc9] sm:$0xff] }
 0x454   : > { %3893 = vmatmul.mubr.f32.gmra.mrb[34].mxu0 %v3557_v42  ;;  %v5064_v27 = vunpack.i.h.bf16 %v5062_v46  ;;  %v5063_v26 = vunpack.i.l.bf16 %v5062_v46  ;;  %v5098_v60 = vunpack.i.l.bf16 %v7654_v53 }
 0x455   : > { %3897 = vmatprep.mubr.f32.mxu0 %v3654_v23  ;;  %v2657_v23 = vld [vmem:[#allocation3 + $0x198] sm:$0xff] }
 0x456   : > { %v3601_v61 = vsel %vm296_vm3, %v2575_v54, %v5063_v26  ;;  %v3504_v29 = vsel %vm296_vm3, %v2447_v56, %v5064_v27  ;;  %v3602_v27 = vsel %vm296_vm3, %v2576_v7, %v5089_v40  ;;  %v2448_v26 = vld [vmem:[#allocation3 + $0xa8] sm:$0xff]  ;;  %v2691_v7 = vld [vmem:[#allocation3 + $0x32] sm:$0xff] }
 0x457   : > { %v5072_v55 = vpop.permute.xlu1 %5071  ;;  %v5107_v19 = vpop.permute.xlu0 %5106 }
 0x458   : > { %3898 = vmatmul.mubr.f32.gmra.mrb[36].mxu0 %v3558_v30  ;;  %v5074_v41 = vunpack.i.h.bf16 %v5072_v55  ;;  %v5073_v1 = vunpack.i.l.bf16 %v5072_v55  ;;  %v5109_v31 = vunpack.i.h.bf16 %v5107_v19  ;;  %v5108_v62 = vunpack.i.l.bf16 %v5107_v19 }
 0x459   : > { %v7693_v24 = vld [vmem:[#allocation3 + $0x189] sm:$0xff]  ;;  %v5355_v30 = vpack.i.bf16 %v7620_v38, %v2657_v23 }
 0x45a   : > { %v7661_v14 = vld [vmem:[#allocation3 + $0x181] sm:$0xff]  ;;  %v3536_v58 = vsel %vm1998_vm9, %v3504_v29, %v5074_v41  ;;  %v5345_v4 = vpack.i.bf16 %v7599_v22, %v7693_v24  ;;  %v7721_v54 = vld [vmem:[#allocation3 + $0x18a] sm:$0xff] }
 0x45b   : > { %v7663_v10 = vld [vmem:[#allocation3 + $0x180] sm:$0xff]  ;;  %v5082_v59 = vpop.permute.xlu1 %5081  ;;  %v7665_v5 = vpop.permute.xlu0 %5116  ;;  %v5330_v2 = vpack.i.bf16 %v7586_v21, %v7661_v14  ;;  %v7673_v9 = vld [vmem:[#allocation3 + $0x188] sm:$0xff]  ;;  %v3633_v21 = vsel %vm1998_vm9, %v3601_v61, %v5073_v1 }
 0x45c   : > { %v5325_v32 = vpack.i.bf16 %v7544_v16, %v7663_v10  ;;  %v5084_v57 = vunpack.i.h.bf16 %v5082_v59  ;;  %v5083_v52 = vunpack.i.l.bf16 %v5082_v59  ;;  %v5340_v36 = vpack.i.bf16 %v7601_v20, %v7673_v9  ;;  %v7691_v12 = vld [vmem:[#allocation3 + $0x182] sm:$0xff] }
 0x45d   : > { %5331 = vrot.lane.b32.xlu1 %v5330_v2, %s5459_s23  ;;  %v5350_v33 = vpack.i.bf16 %v7584_v0, %v7691_v12  ;;  %v5118_v0 = vunpack.i.l.bf16 %v7665_v5  ;;  %v5360_v22 = vpack.i.bf16 %v7663_v10, %v2689_v44  ;;  %v3505_v2 = vsel %vm296_vm3, %v2448_v26, %v5098_v60 }
 0x45e   : > { %5326 = vrot.lane.b32.xlu0 %v5325_v32, %s5457_s7  ;;  %v3665_v17 = vsel %vm3555_vm12, %v3633_v21, %v5083_v52  ;;  %v3569_v3 = vsel %vm3555_vm12, %v3536_v58, %v5084_v57  ;;  %v2658_v32 = vld [vmem:[#allocation3 + $0x1a0] sm:$0xff]  ;;  %v5119_v56 = vunpack.i.h.bf16 %v7665_v5 }
 0x45f   : > { %v5092_v6 = vpop.permute.xlu1 %5091  ;;  %v7685_v43 = vpop.permute.xlu0 %5126  ;;  %3952 = vmatprep.mubr.f32.mxu1 %v3665_v17  ;;  %v5370_v17 = vpack.i.bf16 %v7675_v15, %v2658_v32 }
 0x460   : > { %v5094_v63 = vunpack.i.h.bf16 %v5092_v6  ;;  %v5093_v35 = vunpack.i.l.bf16 %v5092_v6  ;;  %3953 = vmatmul.mubr.f32.gmra.mrb[16].mxu1 %v3569_v3  ;;  %v5128_v41 = vunpack.i.l.bf16 %v7685_v43  ;;  %v5129_v61 = vunpack.i.h.bf16 %v7685_v43 }
 0x461   : > { %5341 = vrot.lane.b32.xlu1 %v5340_v36, %s5457_s7  ;;  %v5365_v3 = vpack.i.bf16 %v7622_v39, %v7721_v54  ;;  %v3603_v6 = vsel %vm296_vm3, %v2577_v47, %v5118_v0  ;;  %v4913_v43 = vunpack.i.l.bf16 %v7396_v8  ;;  %v5099_v36 = vunpack.i.h.bf16 %v7654_v53  ;;  %v2578_v0 = vld [vmem:[#allocation3 + $0xd9] sm:$0xff] }
 0x462   : > { %5336 = vrot.lane.b32.xlu0 %v5335_v37, %s5453_s20  ;;  %v3623_v25 = vsel %vm1998_vm9, %v3591_v51, %v5093_v35  ;;  %v3526_v48 = vsel %vm1998_vm9, %v3494_v45, %v5094_v63  ;;  %v3635_v37 = vsel %vm1998_vm9, %v3603_v6, %v5128_v41  ;;  %v2690_v63 = vld [vmem:[#allocation3 + $0x1a1] sm:$0xff]  ;;  %v2694_v47 = vld [vmem:[#allocation3 + $0x52] sm:$0xff] }
 0x463   : > { %v5102_v49 = vpop.permute.xlu1 %5101  ;;  %v7702_v50 = vpop.permute.xlu0 %5136  ;;  %v3655_v42 = vsel %vm3555_vm12, %v3623_v25, %v5108_v62  ;;  %v3559_v46 = vsel %vm3555_vm12, %v3526_v48, %v5109_v31  ;;  %v3506_v62 = vsel %vm296_vm3, %v2449_v34, %v5119_v56  ;;  %v5375_v40 = vpack.i.bf16 %v7673_v9, %v2690_v63  ;;  %v2566_v25 = vld [vmem:[#allocation3 + $0x49] sm:$0xff] }
 0x464   : > { %3902 = vmatprep.mubr.f32.mxu0 %v3655_v42  ;;  %v5104_v11 = vunpack.i.h.bf16 %v5102_v49  ;;  %v5103_v18 = vunpack.i.l.bf16 %v5102_v49  ;;  %v5138_v57 = vunpack.i.l.bf16 %v7702_v50  ;;  %v5139_v21 = vunpack.i.h.bf16 %v7702_v50  ;;  %v2438_v48 = vld [vmem:[#allocation3 + $0x30] sm:$0xff] }
 0x465   : > { %5351 = vrot.lane.b32.xlu1 %v5350_v33, %s5453_s20  ;;  %3903 = vmatmul.mubr.f32.gmra.mrb[38].mxu0 %v3559_v46  ;;  %v3538_v8 = vsel %vm1998_vm9, %v3506_v62, %v5129_v61  ;;  %v3592_v42 = vsel %vm296_vm3, %v2566_v25, %v5099_v36  ;;  %v3495_v33 = vsel %vm296_vm3, %v2438_v48, %v4913_v43  ;;  %v2693_v56 = vld [vmem:[#allocation3 + $0x4a] sm:$0xff]  ;;  %v2452_v25 = vld [vmem:[#allocation3 + $0xd8] sm:$0xff] }
 0x466   : > { %5346 = vrot.lane.b32.xlu0 %v5345_v4, %s5459_s23  ;;  %v3634_v10 = vsel %vm1998_vm9, %v3602_v27, %v5103_v18  ;;  %v3537_v52 = vsel %vm1998_vm9, %v3505_v2, %v5104_v11  ;;  %v3667_v31 = vsel %vm3555_vm12, %v3635_v37, %v5138_v57  ;;  %v3571_v45 = vsel %vm3555_vm12, %v3538_v8, %v5139_v21  ;;  %v2696_v62 = vld [vmem:[#allocation3 + $0x6a] sm:$0xff] }
 0x467   : > { %v5112_v55 = vpop.permute.xlu1 %5111  ;;  %v7714_v19 = vpop.permute.xlu0 %5146 }
 0x468   : > { %v5114_v1 = vunpack.i.h.bf16 %v5112_v55  ;;  %v5113_v59 = vunpack.i.l.bf16 %v5112_v55  ;;  %v2450_v55 = vld [vmem:[#allocation3 + $0xc0] sm:$0xff]  ;;  %v5149_v27 = vunpack.i.h.bf16 %v7714_v19  ;;  %v5148_v26 = vunpack.i.l.bf16 %v7714_v19 }
 0x469   : > { %5361 = vrot.lane.b32.xlu1 %v5360_v22, %s5459_s23 }
 0x46a   : > { %5356 = vrot.lane.b32.xlu0 %v5355_v30, %s5457_s7  ;;  %v3666_v29 = vsel %vm3555_vm12, %v3634_v10, %v5113_v59  ;;  %v3570_v28 = vsel %vm3555_vm12, %v3537_v52, %v5114_v1  ;;  %v2692_v59 = vld [vmem:[#allocation3 + $0x3a] sm:$0xff] }
 0x46b   : > { %v5122_v5 = vpop.permute.xlu1 %5121  ;;  %v7733_v58 = vpop.permute.xlu0 %5156  ;;  %3957 = vmatprep.mubr.f32.mxu1 %v3666_v29 }
 0x46c   : > { %3958 = vmatmul.mubr.f32.gmra.mrb[18].mxu1 %v3570_v28  ;;  %v5124_v35 = vunpack.i.h.bf16 %v5122_v5  ;;  %v5123_v13 = vunpack.i.l.bf16 %v5122_v5  ;;  %v5159_v57 = vunpack.i.h.bf16 %v7733_v58  ;;  %v5158_v10 = vunpack.i.l.bf16 %v7733_v58  ;;  %v2579_v58 = vld [vmem:[#allocation3 + $0xe1] sm:$0xff] }
 0x46d   : > { %5371 = vrot.lane.b32.xlu1 %v5370_v17, %s5457_s7  ;;  %3962 = vmatprep.mubr.f32.mxu1 %v3667_v31  ;;  %v2695_v17 = vld [vmem:[#allocation3 + $0x62] sm:$0xff] }
 0x46e   : > { %5366 = vrot.lane.b32.xlu0 %v5365_v3, %s5453_s20  ;;  %v3624_v4 = vsel %vm1998_vm9, %v3592_v42, %v5123_v13  ;;  %v3527_v46 = vsel %vm1998_vm9, %v3495_v33, %v5124_v35  ;;  %v2451_v3 = vld [vmem:[#allocation3 + $0xc8] sm:$0xff]  ;;  %v3605_v37 = vsel %vm296_vm3, %v2579_v58, %v5158_v10 }
 0x46f   : > { %v5132_v51 = vpop.permute.xlu1 %5131  ;;  %v7747_v53 = vpop.permute.xlu0 %5166  ;;  %v3508_v34 = vsel %vm296_vm3, %v2451_v3, %v5159_v57  ;;  %v2582_v58 = vld [vmem:[#allocation3 + $0x109] sm:$0xff] }
 0x470   : > { %v5134_v49 = vunpack.i.h.bf16 %v5132_v51  ;;  %v5133_v50 = vunpack.i.l.bf16 %v5132_v51  ;;  %3963 = vmatmul.mubr.f32.gmra.mrb[20].mxu1 %v3571_v45  ;;  %v5169_v6 = vunpack.i.h.bf16 %v7747_v53  ;;  %v5168_v43 = vunpack.i.l.bf16 %v7747_v53  ;;  %v2697_v53 = vld [vmem:[#allocation3 + $0x7a] sm:$0xff]  ;;  %v2454_v3 = vld [vmem:[#allocation3 + $0xf0] sm:$0xff] }
 0x472   : > { %5376 = vrot.lane.b32.xlu0 %v5375_v40, %s5459_s23  ;;  %v3656_v60 = vsel %vm3555_vm12, %v3624_v4, %v5133_v50  ;;  %v3560_v44 = vsel %vm3555_vm12, %v3527_v46, %v5134_v49  ;;  %v2580_v40 = vld [vmem:[#allocation3 + $0xf1] sm:$0xff]  ;;  %v2698_v46 = vld [vmem:[#allocation3 + $0x82] sm:$0xff] }
 0x473   : > { %v5142_v9 = vpop.permute.xlu1 %5141  ;;  %v7758_v23 = vpop.permute.xlu0 %5176  ;;  %3907 = vmatprep.mubr.f32.mxu0 %v3656_v60 }
 0x474   : > { %v5144_v11 = vunpack.i.h.bf16 %v5142_v9  ;;  %v5143_v18 = vunpack.i.l.bf16 %v5142_v9  ;;  %3908 = vmatmul.mubr.f32.gmra.mrb[40].mxu0 %v3560_v44  ;;  %v5179_v50 = vunpack.i.h.bf16 %v7758_v23  ;;  %v5178_v42 = vunpack.i.l.bf16 %v7758_v23  ;;  %v2699_v9 = vld [vmem:[#allocation3 + $0x92] sm:$0xff] }
 0x475   : > { %4716 = vmatprep.mubr.msk.f32.mxu0 %vm296_vm3, %v2691_v7 }
 0x476   : > { %v3604_v22 = vsel %vm296_vm3, %v2578_v0, %v5143_v18  ;;  %v3507_v30 = vsel %vm296_vm3, %v2450_v55, %v5144_v11 }
 0x477   : > { %v5152_v41 = vpop.permute.xlu1 %5151  ;;  %v7765_v1 = vpop.permute.xlu0 %5186  ;;  %v3636_v52 = vsel %vm1998_vm9, %v3604_v22, %v5148_v26  ;;  %v3539_v61 = vsel %vm1998_vm9, %v3507_v30, %v5149_v27  ;;  %v2700_v30 = vld [vmem:[#allocation3 + $0x9a] sm:$0xff] }
 0x478   : > { %v5154_v2 = vunpack.i.h.bf16 %v5152_v41  ;;  %v5153_v32 = vunpack.i.l.bf16 %v5152_v41  ;;  %4717 = vmatmul.mubr.msk.f32.vlgmr.msra.gmra.mrb[42].mxu0 %vm296_vm3, %v2692_v59  ;;  %v5189_v11 = vunpack.i.h.bf16 %v7765_v1  ;;  %v5188_v18 = vunpack.i.l.bf16 %v7765_v1  ;;  %v2701_v41 = vld [vmem:[#allocation3 + $0xaa] sm:$0xff]  ;;  %v2581_v1 = vld [vmem:[#allocation3 + $0xf9] sm:$0xff] }
 0x479   : > { %4719 = vmatprep.mubr.msk.f32.mxu0 %vm296_vm3, %v2693_v56  ;;  %v2453_v59 = vld [vmem:[#allocation3 + $0xe0] sm:$0xff] }
 0x47a   : > { %v3668_v19 = vsel %vm3555_vm12, %v3636_v52, %v5153_v32  ;;  %v3572_v29 = vsel %vm3555_vm12, %v3539_v61, %v5154_v2  ;;  %v3607_v57 = vsel %vm296_vm3, %v2581_v1, %v5188_v18  ;;  %v3510_v10 = vsel %vm296_vm3, %v2453_v59, %v5189_v11  ;;  %v2709_v1 = vld [vmem:[#allocation3 + $0x10a] sm:$0xff]  ;;  %v2584_v59 = vld [vmem:[#allocation3 + $0x121] sm:$0xff] }
 0x47b   : > { %v5162_v28 = vpop.permute.xlu1 %5161  ;;  %3967 = vmatprep.mubr.f32.mxu1 %v3668_v19  ;;  %v5197_v36 = vpop.permute.xlu0 %5196 }
 0x47c   : > { %v5164_v21 = vunpack.i.h.bf16 %v5162_v28  ;;  %v5163_v5 = vunpack.i.l.bf16 %v5162_v28  ;;  %3968 = vmatmul.mubr.f32.gmra.mrb[22].mxu1 %v3572_v29  ;;  %4720 = vmatmul.mubr.msk.f32.gmra.mrb[44].mxu0 %vm296_vm3, %v2694_v47  ;;  %v5199_v2 = vunpack.i.h.bf16 %v5197_v36  ;;  %v5198_v32 = vunpack.i.l.bf16 %v5197_v36  ;;  %v2702_v28 = vld [vmem:[#allocation3 + $0xb2] sm:$0xff] }
 0x47d   : > { %4722 = vmatprep.mubr.msk.f32.mxu0 %vm296_vm3, %v2695_v17  ;;  %v2703_v17 = vld [vmem:[#allocation3 + $0xc2] sm:$0xff] }
 0x47e   : > { %v3637_v63 = vsel %vm1998_vm9, %v3605_v37, %v5163_v5  ;;  %v3540_v35 = vsel %vm1998_vm9, %v3508_v34, %v5164_v21 }
 0x47f   : > { %v5172_v13 = vpop.permute.xlu1 %5171  ;;  %v3669_v31 = vsel %vm3555_vm12, %v3637_v63, %v5168_v43  ;;  %v3573_v8 = vsel %vm3555_vm12, %v3540_v35, %v5169_v6  ;;  %v5207_v33 = vpop.permute.xlu0 %5206  ;;  %v2704_v35 = vld [vmem:[#allocation3 + $0xca] sm:$0xff] }
 0x480   : > { %v5174_v51 = vunpack.i.h.bf16 %v5172_v13  ;;  %v5173_v45 = vunpack.i.l.bf16 %v5172_v13  ;;  %3972 = vmatprep.mubr.f32.mxu1 %v3669_v31  ;;  %4723 = vmatmul.mubr.msk.f32.gmra.mrb[46].mxu0 %vm296_vm3, %v2696_v62  ;;  %v5209_v36 = vunpack.i.h.bf16 %v5207_v33  ;;  %v5208_v37 = vunpack.i.l.bf16 %v5207_v33  ;;  %v2705_v62 = vld [vmem:[#allocation3 + $0xda] sm:$0xff] }
 0x481   : > { %3973 = vmatmul.mubr.f32.gmra.mrb[24].mxu1 %v3573_v8  ;;  %4725 = vmatprep.mubr.msk.f32.mxu0 %vm296_vm3, %v2697_v53 }
 0x482   : > { %v3606_v48 = vsel %vm296_vm3, %v2580_v40, %v5173_v45  ;;  %v3509_v49 = vsel %vm296_vm3, %v2452_v25, %v5174_v51 }
 0x483   : > { %v5182_v4 = vpop.permute.xlu1 %5181  ;;  %v3638_v7 = vsel %vm1998_vm9, %v3606_v48, %v5178_v42  ;;  %v3541_v0 = vsel %vm1998_vm9, %v3509_v49, %v5179_v50  ;;  %v5217_v56 = vpop.permute.xlu0 %5216  ;;  %v2706_v50 = vld [vmem:[#allocation3 + $0xe2] sm:$0xff] }
 0x484   : > { %v5184_v60 = vunpack.i.h.bf16 %v5182_v4  ;;  %v5183_v44 = vunpack.i.l.bf16 %v5182_v4  ;;  %4726 = vmatmul.mubr.msk.f32.gmra.mrb[48].mxu0 %vm296_vm3, %v2698_v46  ;;  %v5219_v8 = vunpack.i.h.bf16 %v5217_v56  ;;  %v5218_v51 = vunpack.i.l.bf16 %v5217_v56  ;;  %v2707_v4 = vld [vmem:[#allocation3 + $0xf2] sm:$0xff] }
 0x485   : > { %4728 = vmatprep.mubr.msk.f32.mxu0 %vm296_vm3, %v2699_v9  ;;  %v2583_v46 = vld [vmem:[#allocation3 + $0x111] sm:$0xff] }
 0x486   : > { %v3670_v23 = vsel %vm3555_vm12, %v3638_v7, %v5183_v44  ;;  %v3574_v55 = vsel %vm3555_vm12, %v3541_v0, %v5184_v60  ;;  %v2455_v60 = vld [vmem:[#allocation3 + $0xf8] sm:$0xff]  ;;  %v3609_v11 = vsel %vm296_vm3, %v2583_v46, %v5218_v51 }
 0x487   : > { %v5192_v22 = vpop.permute.xlu1 %5191  ;;  %3977 = vmatprep.mubr.f32.mxu1 %v3670_v23  ;;  %v5227_v34 = vpop.permute.xlu0 %5226  ;;  %v3512_v18 = vsel %vm296_vm3, %v2455_v60, %v5219_v8 }
 0x488   : > { %v5194_v27 = vunpack.i.h.bf16 %v5192_v22  ;;  %v5193_v26 = vunpack.i.l.bf16 %v5192_v22  ;;  %3978 = vmatmul.mubr.f32.gmra.mrb[26].mxu1 %v3574_v55  ;;  %4729 = vmatmul.mubr.msk.f32.gmra.mrb[50].mxu0 %vm296_vm3, %v2700_v30  ;;  %v5229_v44 = vunpack.i.h.bf16 %v5227_v34  ;;  %v5228_v9 = vunpack.i.l.bf16 %v5227_v34  ;;  %v2708_v22 = vld [vmem:[#allocation3 + $0xfa] sm:$0xff] }
 0x489   : > { %4731 = vmatprep.mubr.msk.f32.mxu0 %vm296_vm3, %v2701_v41 }
 0x48a   : > { %v3639_v52 = vsel %vm1998_vm9, %v3607_v57, %v5193_v26  ;;  %v3542_v61 = vsel %vm1998_vm9, %v3510_v10, %v5194_v27 }
 0x48b   : > { %v5202_v19 = vpop.permute.xlu1 %5201  ;;  %v3671_v29 = vsel %vm3555_vm12, %v3639_v52, %v5198_v32  ;;  %v3575_v47 = vsel %vm3555_vm12, %v3542_v61, %v5199_v2  ;;  %v2456_v2 = vld [vmem:[#allocation3 + $0x108] sm:$0xff]  ;;  %v2710_v61 = vld [vmem:[#allocation3 + $0x112] sm:$0xff] }
 0x48c   : > { %v5204_v21 = vunpack.i.h.bf16 %v5202_v19  ;;  %v5203_v5 = vunpack.i.l.bf16 %v5202_v19  ;;  %3982 = vmatprep.mubr.f32.mxu1 %v3671_v29  ;;  %4732 = vmatmul.mubr.msk.f32.gmra.mrb[52].mxu0 %vm296_vm3, %v2702_v28  ;;  %v2711_v28 = vld [vmem:[#allocation3 + $0x122] sm:$0xff] }
 0x48d   : > { %3983 = vmatmul.mubr.f32.gmra.mrb[28].mxu1 %v3575_v47  ;;  %4734 = vmatprep.mubr.msk.f32.mxu0 %vm296_vm3, %v2703_v17 }
 0x48e   : > { %v3608_v6 = vsel %vm296_vm3, %v2582_v58, %v5203_v5  ;;  %v3511_v43 = vsel %vm296_vm3, %v2454_v3, %v5204_v21 }
 0x48f   : > { %v5212_v63 = vpop.permute.xlu1 %5211  ;;  %v3640_v45 = vsel %vm1998_vm9, %v3608_v6, %v5208_v37  ;;  %v3543_v53 = vsel %vm1998_vm9, %v3511_v43, %v5209_v36  ;;  %v2712_v36 = vld [vmem:[#allocation3 + $0x12a] sm:$0xff] }
 0x490   : > { %v5214_v13 = vunpack.i.h.bf16 %v5212_v63  ;;  %v5213_v31 = vunpack.i.l.bf16 %v5212_v63  ;;  %4735 = vmatmul.mubr.msk.f32.gmra.mrb[54].mxu0 %vm296_vm3, %v2704_v35  ;;  %v2713_v63 = vld [vmem:[#allocation3 + $0x13a] sm:$0xff]  ;;  %v2585_v35 = vld [vmem:[#allocation3 + $0x129] sm:$0xff] }
 0x491   : > { %4737 = vmatprep.mubr.msk.f32.mxu0 %vm296_vm3, %v2705_v62 }
 0x492   : > { %v3672_v40 = vsel %vm3555_vm12, %v3640_v45, %v5213_v31  ;;  %v3576_v25 = vsel %vm3555_vm12, %v3543_v53, %v5214_v13  ;;  %v2457_v13 = vld [vmem:[#allocation3 + $0x110] sm:$0xff] }
 0x493   : > { %v5222_v48 = vpop.permute.xlu1 %5221  ;;  %v5237_v49 = vpop.permute.xlu0 %5236  ;;  %3987 = vmatprep.mubr.f32.mxu1 %v3672_v40 }
 0x494   : > { %v5224_v42 = vunpack.i.h.bf16 %v5222_v48  ;;  %v5223_v33 = vunpack.i.l.bf16 %v5222_v48  ;;  %3988 = vmatmul.mubr.f32.gmra.mrb[30].mxu1 %v3576_v25  ;;  %4738 = vmatmul.mubr.msk.f32.gmra.mrb[56].mxu0 %vm296_vm3, %v2706_v50  ;;  %v5239_v57 = vunpack.i.h.bf16 %v5237_v49  ;;  %v5238_v10 = vunpack.i.l.bf16 %v5237_v49  ;;  %v5405_v49 = vld [vmem:[#allocation3 + $0x142] sm:$0xff] }
 0x495   : > { %4740 = vmatprep.mubr.msk.f32.mxu0 %vm296_vm3, %v2707_v4 }
 0x496   : > { %v3641_v7 = vsel %vm1998_vm9, %v3609_v11, %v5223_v33  ;;  %v3544_v0 = vsel %vm1998_vm9, %v3512_v18, %v5224_v42  ;;  %v2586_v11 = vld [vmem:[#allocation3 + $0x139] sm:$0xff] }
 0x497   : > { %v5232_v23 = vpop.permute.xlu1 %5231  ;;  %v3673_v55 = vsel %vm3555_vm12, %v3641_v7, %v5228_v9  ;;  %v3577_v30 = vsel %vm3555_vm12, %v3544_v0, %v5229_v44  ;;  %v5247_v41 = vpop.permute.xlu0 %5246  ;;  %v2458_v18 = vld [vmem:[#allocation3 + $0x120] sm:$0xff] }
 0x498   : > { %v5234_v27 = vunpack.i.h.bf16 %v5232_v23  ;;  %v5233_v26 = vunpack.i.l.bf16 %v5232_v23  ;;  %3992 = vmatprep.mubr.f32.mxu1 %v3673_v55  ;;  %4741 = vmatmul.mubr.msk.f32.gmra.mrb[58].mxu0 %vm296_vm3, %v2708_v22  ;;  %v5249_v47 = vunpack.i.h.bf16 %v5247_v41  ;;  %v5248_v21 = vunpack.i.l.bf16 %v5247_v41 }
 0x499   : > { %3993 = vmatmul.mubr.f32.gmra.mrb[32].mxu1 %v3577_v30  ;;  %4743 = vmatprep.mubr.msk.f32.mxu0 %vm296_vm3, %v2709_v1  ;;  %v2587_v1 = vld [vmem:[#allocation3 + $0x141] sm:$0xff] }
 0x49a   : > { %v3610_v32 = vsel %vm296_vm3, %v2584_v59, %v5233_v26  ;;  %v3513_v56 = vsel %vm296_vm3, %v2456_v2, %v5234_v27  ;;  %v3611_v8 = vsel %vm296_vm3, %v2585_v35, %v5248_v21  ;;  %v3514_v51 = vsel %vm296_vm3, %v2457_v13, %v5249_v47  ;;  %v2459_v59 = vld [vmem:[#allocation3 + $0x128] sm:$0xff] }
 0x49b   : > { %v5242_v52 = vpop.permute.xlu1 %5241  ;;  %v3642_v5 = vsel %vm1998_vm9, %v3610_v32, %v5238_v10  ;;  %v3545_v17 = vsel %vm1998_vm9, %v3513_v56, %v5239_v57  ;;  %v5257_v58 = vpop.permute.xlu0 %5256  ;;  %v2721_v56 = vld [vmem:[#allocation3 + $0x19a] sm:$0xff] }
 0x49c   : > { %v5244_v19 = vunpack.i.h.bf16 %v5242_v52  ;;  %v5243_v29 = vunpack.i.l.bf16 %v5242_v52  ;;  %4744 = vmatmul.mubr.msk.f32.gmra.mrb[60].mxu0 %vm296_vm3, %v2710_v61  ;;  %v5259_v31 = vunpack.i.h.bf16 %v5257_v58  ;;  %v5258_v62 = vunpack.i.l.bf16 %v5257_v58 }
 0x49d   : > { %4746 = vmatprep.mubr.msk.f32.mxu0 %vm296_vm3, %v2711_v28 }
 0x49e   : > { %v3674_v3 = vsel %vm3555_vm12, %v3642_v5, %v5243_v29  ;;  %v3578_v6 = vsel %vm3555_vm12, %v3545_v17, %v5244_v19 }
 0x49f   : > { %v5252_v43 = vpop.permute.xlu1 %5251  ;;  %3997 = vmatprep.mubr.f32.mxu1 %v3674_v3 }
 0x4a0   : > { %v5254_v37 = vunpack.i.h.bf16 %v5252_v43  ;;  %v5253_v34 = vunpack.i.l.bf16 %v5252_v43  ;;  %3998 = vmatmul.mubr.f32.gmra.mrb[34].mxu1 %v3578_v6  ;;  %4747 = vmatmul.mubr.msk.f32.gmra.mrb[62].mxu0 %vm296_vm3, %v2712_v36  ;;  %v2588_v43 = vld [vmem:[#allocation3 + $0x151] sm:$0xff] }
 0x4a1   : > { %4749 = vmatprep.mubr.msk.f32.mxu0 %vm296_vm3, %v2713_v63  ;;  %v2460_v36 = vld [vmem:[#allocation3 + $0x138] sm:$0xff] }
 0x4a2   : > { %v3643_v45 = vsel %vm1998_vm9, %v3611_v8, %v5253_v34  ;;  %v3546_v53 = vsel %vm1998_vm9, %v3514_v51, %v5254_v37 }
 0x4a3   : > { %v5262_v40 = vpop.permute.xlu1 %5261  ;;  %v3675_v25 = vsel %vm3555_vm12, %v3643_v45, %v5258_v62  ;;  %v3579_v48 = vsel %vm3555_vm12, %v3546_v53, %v5259_v31 }
 0x4a4   : > { %4002 = vmatprep.mubr.f32.mxu1 %v3675_v25  ;;  %4750 = vmatmul.mubr.msk.f32.gmra.mrb[64].mxu0 %vm296_vm3, %v5405_v49  ;;  %v5264_v50 = vunpack.i.h.bf16 %v5262_v40  ;;  %v5263_v42 = vunpack.i.l.bf16 %v5262_v40  ;;  %v2589_v25 = vld [vmem:[#allocation3 + $0x159] sm:$0xff] }
 0x4a5   : > { %4003 = vmatmul.mubr.f32.gmra.mrb[36].mxu1 %v3579_v48  ;;  %4752 = vmatprep.mubr.msk.f32.mxu0 %vm296_vm3, %v7544_v16  ;;  %v2461_v48 = vld [vmem:[#allocation3 + $0x140] sm:$0xff] }
 0x4a6   : > { %v3612_v7 = vsel %vm296_vm3, %v2586_v11, %v5263_v42  ;;  %v3515_v0 = vsel %vm296_vm3, %v2458_v18, %v5264_v50 }
 0x4a7   : > { %v5272_v33 = vpop.permute.xlu1 %5271 }
 0x4a8   : > { %v5267_v4 = vpop.permute.xlu0 %5266  ;;  %v5274_v46 = vunpack.i.h.bf16 %v5272_v33  ;;  %v5273_v60 = vunpack.i.l.bf16 %v5272_v33  ;;  %4753 = vmatmul.mubr.msk.f32.gmra.mrb[66].mxu0 %vm296_vm3, %v7601_v20 }
 0x4a9   : > { %v5269_v44 = vunpack.i.h.bf16 %v5267_v4  ;;  %v5268_v9 = vunpack.i.l.bf16 %v5267_v4  ;;  %4755 = vmatprep.mubr.msk.f32.mxu0 %vm296_vm3, %v7620_v38 }
 0x4ab   : > { %v3644_v16 = vsel %vm1998_vm9, %v3612_v7, %v5268_v9  ;;  %v3547_v23 = vsel %vm1998_vm9, %v3515_v0, %v5269_v44  ;;  %v5282_v55 = vpop.permute.xlu1 %5281 }
 0x4ac   : > { %v5277_v22 = vpop.permute.xlu0 %5276  ;;  %v3676_v30 = vsel %vm3555_vm12, %v3644_v16, %v5273_v60  ;;  %v3580_v27 = vsel %vm3555_vm12, %v3547_v23, %v5274_v46  ;;  %4756 = vmatmul.mubr.msk.f32.gmra.mrb[68].mxu0 %vm296_vm3, %v7675_v15  ;;  %v5284_v38 = vunpack.i.h.bf16 %v5282_v55  ;;  %v5283_v41 = vunpack.i.l.bf16 %v5282_v55 }
 0x4ad   : > { %v5279_v20 = vunpack.i.h.bf16 %v5277_v22  ;;  %v5278_v26 = vunpack.i.l.bf16 %v5277_v22  ;;  %4007 = vmatprep.mubr.f32.mxu1 %v3676_v30  ;;  %4758 = vmatprep.mubr.msk.f32.mxu0 %vm296_vm3, %v7691_v12  ;;  %v2722_v12 = vld [vmem:[#allocation3 + $0x1a2] sm:$0xff] }
 0x4ae   : > { %4008 = vmatmul.mubr.f32.gmra.mrb[38].mxu1 %v3580_v27  ;;  %v2590_v27 = vld [vmem:[#allocation3 + $0x169] sm:$0xff] }
 0x4af   : > { %v3613_v2 = vsel %vm296_vm3, %v2587_v1, %v5278_v26  ;;  %v3516_v32 = vsel %vm296_vm3, %v2459_v59, %v5279_v20  ;;  %v5292_v28 = vpop.permute.xlu1 %5291  ;;  %v2462_v20 = vld [vmem:[#allocation3 + $0x150] sm:$0xff] }
 0x4b0   : > { %v5287_v57 = vpop.permute.xlu0 %5286  ;;  %4759 = vmatmul.mubr.msk.f32.gmra.mrb[70].mxu0 %vm296_vm3, %v7721_v54  ;;  %v3645_v15 = vsel %vm1998_vm9, %v3613_v2, %v5283_v41  ;;  %v3548_v61 = vsel %vm1998_vm9, %v3516_v32, %v5284_v38  ;;  %v5294_v47 = vunpack.i.h.bf16 %v5292_v28  ;;  %v5293_v21 = vunpack.i.l.bf16 %v5292_v28 }
 0x4b1   : > { %v5289_v10 = vunpack.i.h.bf16 %v5287_v57  ;;  %v5288_v52 = vunpack.i.l.bf16 %v5287_v57  ;;  %4761 = vmatprep.mubr.msk.f32.mxu0 %vm296_vm3, %v2721_v56 }
 0x4b2   : > { %v3614_v37 = vsel %vm296_vm3, %v2588_v43, %v5293_v21  ;;  %v3517_v34 = vsel %vm296_vm3, %v2460_v36, %v5294_v47 }
 0x4b3   : > { %v3677_v19 = vsel %vm3555_vm12, %v3645_v15, %v5288_v52  ;;  %v3581_v29 = vsel %vm3555_vm12, %v3548_v61, %v5289_v10  ;;  %v2463_v61 = vld [vmem:[#allocation3 + $0x158] sm:$0xff] }
 0x4b4   : > { %4012 = vmatprep.mubr.f32.mxu1 %v3677_v19  ;;  %4762 = vmatmul.mubr.msk.f32.gmra.mrb[72].mxu0 %vm296_vm3, %v2722_v12 }
 0x4b5   : > { %4013 = vmatmul.mubr.f32.gmra.mrb[40].mxu1 %v3581_v29 }
 0x4bb   : > { %v5302_v5 = vpop.permute.xlu1 %5301 }
 0x4bc   : > { %v5297_v54 = vpop.permute.xlu0 %5296  ;;  %v5304_v17 = vunpack.i.h.bf16 %v5302_v5  ;;  %v5303_v58 = vunpack.i.l.bf16 %v5302_v5 }
 0x4bd   : > { %v5299_v3 = vunpack.i.h.bf16 %v5297_v54  ;;  %v5298_v6 = vunpack.i.l.bf16 %v5297_v54 }
 0x4bf   : > { %v3646_v63 = vsel %vm1998_vm9, %v3614_v37, %v5298_v6  ;;  %v3549_v35 = vsel %vm1998_vm9, %v3517_v34, %v5299_v3  ;;  %v5312_v13 = vpop.permute.xlu1 %5311 }
 0x4c0   : > { %v5307_v31 = vpop.permute.xlu0 %5306  ;;  %v3678_v62 = vsel %vm3555_vm12, %v3646_v63, %v5303_v58  ;;  %v3582_v8 = vsel %vm3555_vm12, %v3549_v35, %v5304_v17  ;;  %v5314_v53 = vunpack.i.h.bf16 %v5312_v13  ;;  %v5313_v40 = vunpack.i.l.bf16 %v5312_v13  ;;  %v2464_v35 = vld [vmem:[#allocation3 + $0x168] sm:$0xff] }
 0x4c1   : > { %v5309_v51 = vunpack.i.h.bf16 %v5307_v31  ;;  %v5308_v45 = vunpack.i.l.bf16 %v5307_v31  ;;  %4017 = vmatprep.mubr.f32.mxu1 %v3678_v62 }
 0x4c2   : > { %4018 = vmatmul.mubr.f32.gmra.mrb[42].mxu1 %v3582_v8 }
 0x4c3   : > { %v3615_v49 = vsel %vm296_vm3, %v2589_v25, %v5308_v45  ;;  %v3518_v50 = vsel %vm296_vm3, %v2461_v48, %v5309_v51  ;;  %v5322_v11 = vpop.permute.xlu1 %5321 }
 0x4c4   : > { %v5317_v42 = vpop.permute.xlu0 %5316  ;;  %v3647_v46 = vsel %vm1998_vm9, %v3615_v49, %v5313_v40  ;;  %v3550_v60 = vsel %vm1998_vm9, %v3518_v50, %v5314_v53  ;;  %v5324_v18 = vunpack.i.h.bf16 %v5322_v11  ;;  %v5323_v7 = vunpack.i.l.bf16 %v5322_v11 }
 0x4c5   : > { %v5319_v33 = vunpack.i.h.bf16 %v5317_v42  ;;  %v5318_v4 = vunpack.i.l.bf16 %v5317_v42  ;;  %v2465_v42 = vld [vmem:[#allocation3 + $0x170] sm:$0xff] }
 0x4c6   : > { %v3616_v26 = vsel %vm296_vm3, %v2590_v27, %v5323_v7  ;;  %v3519_v38 = vsel %vm296_vm3, %v2462_v20, %v5324_v18 }
 0x4c7   : > { %v3679_v44 = vsel %vm3555_vm12, %v3647_v46, %v5318_v4  ;;  %v3583_v9 = vsel %vm3555_vm12, %v3550_v60, %v5319_v33 }
 0x4c8   : > { %4022 = vmatprep.mubr.f32.mxu1 %v3679_v44 }
 0x4c9   : > { %4023 = vmatmul.mubr.f32.gmra.mrb[44].mxu1 %v3583_v9 }
 0x4cf   : > { %v5332_v0 = vpop.permute.xlu1 %5331 }
 0x4d0   : > { %v5327_v16 = vpop.permute.xlu0 %5326  ;;  %v5334_v23 = vunpack.i.h.bf16 %v5332_v0  ;;  %v5333_v55 = vunpack.i.l.bf16 %v5332_v0 }
 0x4d1   : > { %v5329_v22 = vunpack.i.h.bf16 %v5327_v16  ;;  %v5328_v30 = vunpack.i.l.bf16 %v5327_v16 }
 0x4d3   : > { %v3648_v41 = vsel %vm1998_vm9, %v3616_v26, %v5328_v30  ;;  %v3551_v1 = vsel %vm1998_vm9, %v3519_v38, %v5329_v22  ;;  %v5342_v59 = vpop.permute.xlu1 %5341 }
 0x4d4   : > { %v5337_v2 = vpop.permute.xlu0 %5336  ;;  %v3680_v32 = vsel %vm3555_vm12, %v3648_v41, %v5333_v55  ;;  %v3584_v56 = vsel %vm3555_vm12, %v3551_v1, %v5334_v23  ;;  %v5344_v52 = vunpack.i.h.bf16 %v5342_v59  ;;  %v5343_v15 = vunpack.i.l.bf16 %v5342_v59 }
 0x4d5   : > { %v5339_v57 = vunpack.i.h.bf16 %v5337_v2  ;;  %v5338_v10 = vunpack.i.l.bf16 %v5337_v2  ;;  %4027 = vmatprep.mubr.f32.mxu1 %v3680_v32 }
 0x4d6   : > { %4028 = vmatmul.mubr.f32.gmra.mrb[46].mxu1 %v3584_v56 }
 0x4d7   : > { %v3617_v12 = vsel %vm296_vm3, %v7622_v39, %v5338_v10  ;;  %v3520_v19 = vsel %vm296_vm3, %v2463_v61, %v5339_v57  ;;  %v5352_v29 = vpop.permute.xlu1 %5351 }
 0x4d8   : > { %v5347_v28 = vpop.permute.xlu0 %5346  ;;  %v5354_v5 = vunpack.i.h.bf16 %v5352_v29  ;;  %v5353_v54 = vunpack.i.l.bf16 %v5352_v29  ;;  %v3649_v17 = vsel %vm1998_vm9, %v3617_v12, %v5343_v15  ;;  %v3552_v58 = vsel %vm1998_vm9, %v3520_v19, %v5344_v52 }
 0x4d9   : > { %v5349_v47 = vunpack.i.h.bf16 %v5347_v28  ;;  %v5348_v21 = vunpack.i.l.bf16 %v5347_v28 }
 0x4da   : > { %v3618_v13 = vsel %vm296_vm3, %v7661_v14, %v5353_v54  ;;  %v3521_v31 = vsel %vm296_vm3, %v2464_v35, %v5354_v5 }
 0x4db   : > { %v3681_v3 = vsel %vm3555_vm12, %v3649_v17, %v5348_v21  ;;  %v3585_v6 = vsel %vm3555_vm12, %v3552_v58, %v5349_v47  ;;  %v5362_v43 = vpop.permute.xlu1 %5361  ;;  %v7926_v58 = vld [vmem:[%s8020_s4] ss:$0 sm:$0xff] }
 0x4dc   : > { %v5357_v36 = vpop.permute.xlu0 %5356  ;;  %4032 = vmatprep.mubr.f32.mxu1 %v3681_v3  ;;  %v5364_v39 = vunpack.i.h.bf16 %v5362_v43  ;;  %v5363_v37 = vunpack.i.l.bf16 %v5362_v43 }
 0x4dd   : > { %v5359_v34 = vunpack.i.h.bf16 %v5357_v36  ;;  %v5358_v63 = vunpack.i.l.bf16 %v5357_v36  ;;  %4033 = vmatmul.mubr.f32.gmra.mrb[48].mxu1 %v3585_v6 }
 0x4df   : > { %v3650_v62 = vsel %vm1998_vm9, %v3618_v13, %v5358_v63  ;;  %v3553_v8 = vsel %vm1998_vm9, %v3521_v31, %v5359_v34  ;;  %v5372_v51 = vpop.permute.xlu1 %5371 }
 0x4e0   : > { %v5367_v45 = vpop.permute.xlu0 %5366  ;;  %v3682_v53 = vsel %vm3555_vm12, %v3650_v62, %v5363_v37  ;;  %v3586_v40 = vsel %vm3555_vm12, %v3553_v8, %v5364_v39  ;;  %v5374_v49 = vunpack.i.h.bf16 %v5372_v51  ;;  %v5373_v50 = vunpack.i.l.bf16 %v5372_v51 }
 0x4e1   : > { %v5369_v25 = vunpack.i.h.bf16 %v5367_v45  ;;  %v5368_v48 = vunpack.i.l.bf16 %v5367_v45  ;;  %4037 = vmatprep.mubr.f32.mxu1 %v3682_v53 }
 0x4e2   : > { %4038 = vmatmul.mubr.f32.gmra.mrb[50].mxu1 %v3586_v40 }
 0x4e3   : > { %v3619_v14 = vsel %vm296_vm3, %v7693_v24, %v5368_v48  ;;  %v3522_v33 = vsel %vm296_vm3, %v2465_v42, %v5369_v25 }
 0x4e4   : > { %v5377_v4 = vpop.permute.xlu0 %5376  ;;  %v3651_v44 = vsel %vm1998_vm9, %v3619_v14, %v5373_v50  ;;  %v3554_v9 = vsel %vm1998_vm9, %v3522_v33, %v5374_v49 }
 0x4e5   : > { %v5379_v46 = vunpack.i.h.bf16 %v5377_v4  ;;  %v5378_v60 = vunpack.i.l.bf16 %v5377_v4 }
 0x4e7   : > { %v3683_v11 = vsel %vm3555_vm12, %v3651_v44, %v5378_v60  ;;  %v3587_v18 = vsel %vm3555_vm12, %v3554_v9, %v5379_v46 }
 0x4e8   : > { %4042 = vmatprep.mubr.f32.mxu1 %v3683_v11 }
 0x4e9   : > { %4043 = vmatmul.mubr.f32.gmra.mrb[52].mxu1 %v3587_v18 }
 0x4fb   : > { %v3914_v7 = vpop.f32.mrb[0].mxu1 }
 0x4fc   : > { %v3916_v0 = vpop.f32.mrb[1].mxu1  ;;  %v3915_v25 = vadd.f32 %v7926_v58, %v3914_v7 }
 0x500   : > { %v3919_v16 = vpop.f32.mrb[2].mxu1 }
 0x501   : > { %v3921_v23 = vpop.f32.mrb[3].mxu1  ;;  %v3920_v9 = vadd.f32 %v7926_v58, %v3919_v16 }
 0x504   : > { %v3924_v24 = vpop.f32.mrb[4].mxu1 }
 0x505   : > { %v3926_v55 = vpop.f32.mrb[5].mxu1  ;;  %v3925_v44 = vadd.f32 %v7926_v58, %v3924_v24 }
 0x50b   : > { %v7909_v22 = vpop.f32.mrb[6].mxu1 }
 0x50c   : > { %v3931_v30 = vpop.f32.mrb[7].mxu1 }
 0x50f   : > { %v3889_v27 = vpop.f32.mrb[32].mxu0  ;;  %v3934_v20 = vpop.f32.mrb[8].mxu1 }
 0x510   : > { %v3891_v26 = vpop.f32.mrb[33].mxu0  ;;  %v3936_v38 = vpop.f32.mrb[9].mxu1  ;;  %v3890_v6 = vadd.f32 %v7926_v58, %v3889_v27  ;;  %v3935_v30 = vadd.f32 %v7926_v58, %v3934_v20  ;;  %v3930_v27 = vadd.f32 %v7926_v58, %v7909_v22 }
 0x514   : > { %v7911_v41 = vpop.f32.mrb[10].mxu1 }
 0x515   : > { %v3941_v1 = vpop.f32.mrb[11].mxu1 }
 0x51f   : > { %v7913_v59 = vpop.f32.mrb[12].mxu1 }
 0x520   : > { %v3946_v2 = vpop.f32.mrb[13].mxu1 }
 0x523   : > { %v7915_v32 = vpop.f32.mrb[14].mxu1 }
 0x524   : > { %v3951_v56 = vpop.f32.mrb[15].mxu1 }
 0x527   : > { %v3894_v57 = vpop.f32.mrb[34].mxu0 }
 0x528   : > { %v3896_v10 = vpop.f32.mrb[35].mxu0  ;;  %v3895_v3 = vadd.f32 %v7926_v58, %v3894_v57 }
 0x529   : > { %v3945_v10 = vadd.f32 %v7926_v58, %v7913_v59  ;;  %v3950_v59 = vadd.f32 %v7926_v58, %v7915_v32 }
 0x52b   : > { %v3899_v52 = vpop.f32.mrb[36].mxu0 }
 0x52c   : > { %v3901_v15 = vpop.f32.mrb[37].mxu0  ;;  %v3900_v63 = vadd.f32 %v7926_v58, %v3899_v52  ;;  %v3940_v52 = vadd.f32 %v7926_v58, %v7911_v41 }
 0x533   : > { %v7917_v61 = vpop.f32.mrb[16].mxu1 }
 0x534   : > { %v3956_v12 = vpop.f32.mrb[17].mxu1 }
 0x538   : > { %v3904_v19 = vpop.f32.mrb[38].mxu0 }
 0x539   : > { %v3906_v29 = vpop.f32.mrb[39].mxu0  ;;  %v3905_v34 = vadd.f32 %v7926_v58, %v3904_v19 }
 0x53f   : > { %v7919_v28 = vpop.f32.mrb[18].mxu1 }
 0x540   : > { %v3961_v47 = vpop.f32.mrb[19].mxu1 }
 0x543   : > { %v7921_v21 = vpop.f32.mrb[20].mxu1 }
 0x544   : > { %v3966_v5 = vpop.f32.mrb[21].mxu1 }
 0x547   : > { %v3909_v54 = vpop.f32.mrb[40].mxu0 }
 0x548   : > { %v3911_v17 = vpop.f32.mrb[41].mxu0  ;;  %v3910_v48 = vadd.f32 %v7926_v58, %v3909_v54  ;;  %v3955_v54 = vadd.f32 %v7926_v58, %v7917_v61 }
 0x54b   : > { %v4718_v43 = vpop.f32.mrb[42].mxu0 }
 0x54c   : > { %v4120_v36 = vadd.f32 %v4718_v43, %v3895_v3  ;;  %v4114_v39 = vpop.f32.mrb[43].mxu0 }
 0x54d   : > { %v4115_v37 = vadd.f32 %v4114_v39, %v3890_v6  ;;  %v3965_v39 = vadd.f32 %v7926_v58, %v7921_v21 }
 0x54e   : > { %v4274_v45 = vmax.f32 %v4120_v36, 0.0 }
 0x54f   : > { %v4273_v35 = vmax.f32 %v4115_v37, 0.0  ;;  %v7932_v13 = vpop.f32.mrb[22].mxu1  ;;  %v4721_v31 = vpop.f32.mrb[44].mxu0  ;;  %v3960_v37 = vadd.f32 %v7926_v58, %v7919_v28 }
 0x550   : > { %v4130_v62 = vadd.f32 %v4721_v31, %v3905_v34  ;;  %v3971_v8 = vpop.f32.mrb[23].mxu1  ;;  %v4124_v51 = vpop.f32.mrb[45].mxu0  ;;  %v4306_v33 = vadd.f32 1.0, %v4274_v45  ;;  %v3970_v45 = vadd.f32 %v7926_v58, %v7932_v13 }
 0x551   : > { %v4305_v53 = vadd.f32 1.0, %v4273_v35  ;;  %v4125_v40 = vadd.f32 %v4124_v51, %v3900_v63 }
 0x552   : > { %v4276_v7 = vmax.f32 %v4130_v62, 0.0 }
 0x553   : > { %v4724_v49 = vpop.f32.mrb[46].mxu0  ;;  %4337 = vxpose.xlu1.b32.start [1/16] (narrow) %v4305_v53, 64  ;;  %v4275_v4 = vmax.f32 %v4125_v40, 0.0 }
 0x554   : > { %v4140_v50 = vadd.f32 %v4724_v49, %v3915_v25  ;;  %v3974_v42 = vpop.f32.mrb[24].mxu1  ;;  %v4134_v14 = vpop.f32.mrb[47].mxu0  ;;  %v4308_v16 = vadd.f32 1.0, %v4276_v7 }
 0x555   : > { %v4135_v46 = vadd.f32 %v4134_v14, %v3910_v48  ;;  %v3976_v60 = vpop.f32.mrb[25].mxu1  ;;  %v4307_v23 = vadd.f32 1.0, %v4275_v4  ;;  %v3975_v51 = vadd.f32 %v7926_v58, %v3974_v42 }
 0x556   : > { %v4278_v19 = vmax.f32 %v4140_v50, 0.0 }
 0x557   : > { %v4727_v11 = vpop.f32.mrb[48].mxu0  ;;  %4338 = vxpose.xlu1.b32.cont [2/16] (narrow) %v4306_v33, 64  ;;  %v4277_v56 = vmax.f32 %v4135_v46, 0.0 }
 0x558   : > { %v4150_v18 = vadd.f32 %v4727_v11, %v3925_v44  ;;  %v4144_v0 = vpop.f32.mrb[49].mxu0  ;;  %v4310_v6 = vadd.f32 1.0, %v4278_v19 }
 0x559   : > { %v4145_v55 = vadd.f32 %v4144_v0, %v3920_v9  ;;  %v4309_v29 = vadd.f32 1.0, %v4277_v56 }
 0x55a   : > { %v4280_v31 = vmax.f32 %v4150_v18, 0.0 }
 0x55b   : > { %v3979_v26 = vpop.f32.mrb[26].mxu1  ;;  %v4730_v38 = vpop.f32.mrb[50].mxu0  ;;  %4339 = vxpose.xlu1.b32.cont [3/16] (narrow) %v4307_v23, 64  ;;  %v4279_v43 = vmax.f32 %v4145_v55, 0.0 }
 0x55c   : > { %v7941_v1 = vadd.f32 %v4730_v38, %v3935_v30  ;;  %v3981_v24 = vpop.f32.mrb[27].mxu1  ;;  %v4154_v2 = vpop.f32.mrb[51].mxu0  ;;  %v4312_v25 = vadd.f32 1.0, %v4280_v31  ;;  %v3980_v33 = vadd.f32 %v7926_v58, %v3979_v26 }
 0x55d   : > { %v4155_v57 = vadd.f32 %v4154_v2, %v3930_v27  ;;  %v4311_v62 = vadd.f32 1.0, %v4279_v43 }
 0x55e   : > { %v4282_v42 = vmax.f32 %v7941_v1, 0.0 }
 0x55f   : > { %v4733_v20 = vpop.f32.mrb[52].mxu0  ;;  %4340 = vxpose.xlu1.b32.cont [4/16] (narrow) %v4308_v16, 64  ;;  %v4281_v48 = vmax.f32 %v4155_v57, 0.0 }
 0x560   : > { %v7947_v15 = vadd.f32 %v4733_v20, %v3945_v10  ;;  %v3984_v22 = vpop.f32.mrb[28].mxu1  ;;  %v4164_v12 = vpop.f32.mrb[53].mxu0  ;;  %v4314_v1 = vadd.f32 1.0, %v4282_v42 }
 0x561   : > { %v7949_v47 = vadd.f32 %v4164_v12, %v3940_v52  ;;  %v3986_v5 = vpop.f32.mrb[29].mxu1  ;;  %v3985_v14 = vadd.f32 %v7926_v58, %v3984_v22  ;;  %v4313_v44 = vadd.f32 1.0, %v4281_v48 }
 0x562   : > { %v4284_v10 = vmax.f32 %v7947_v15, 0.0 }
 0x563   : > { %v4736_v17 = vpop.f32.mrb[54].mxu0  ;;  %4341 = vxpose.xlu1.b32.cont [5/16] (narrow) %v4309_v29, 64  ;;  %v4283_v30 = vmax.f32 %v7949_v47, 0.0 }
 0x564   : > { %v7955_v41 = vadd.f32 %v4736_v17, %v3955_v54  ;;  %v4174_v3 = vpop.f32.mrb[55].mxu0 }
 0x565   : > { %v7957_v36 = vadd.f32 %v4174_v3, %v3950_v59  ;;  %v4315_v52 = vadd.f32 1.0, %v4283_v30  ;;  %v4316_v3 = vadd.f32 1.0, %v4284_v10 }
 0x567   : > { %v3989_v34 = vpop.f32.mrb[30].mxu1  ;;  %v4739_v61 = vpop.f32.mrb[56].mxu0  ;;  %4342 = vxpose.xlu1.b32.cont [6/16] (narrow) %v4310_v6, 64  ;;  %v4285_v6 = vmax.f32 %v7957_v36, 0.0 }
 0x568   : > { %v7963_v63 = vadd.f32 %v4739_v61, %v3965_v39  ;;  %v3991_v32 = vpop.f32.mrb[31].mxu1  ;;  %v4184_v35 = vpop.f32.mrb[57].mxu0  ;;  %v3990_v7 = vadd.f32 %v7926_v58, %v3989_v34 }
 0x569   : > { %v7965_v8 = vadd.f32 %v4184_v35, %v3960_v37  ;;  %v4286_v37 = vmax.f32 %v7955_v41, 0.0  ;;  %v4317_v32 = vadd.f32 1.0, %v4285_v6 }
 0x56b   : > { %v4742_v21 = vpop.f32.mrb[58].mxu0  ;;  %4343 = vxpose.xlu1.b32.cont [7/16] (narrow) %v4311_v62, 64 }
 0x56c   : > { %v4200_v53 = vadd.f32 %v4742_v21, %v3975_v51  ;;  %v3994_v28 = vpop.f32.mrb[32].mxu1  ;;  %v4194_v40 = vpop.f32.mrb[59].mxu0 }
 0x56d   : > { %v4195_v49 = vadd.f32 %v4194_v40, %v3970_v45  ;;  %v3996_v50 = vpop.f32.mrb[33].mxu1  ;;  %v3995_v0 = vadd.f32 %v7926_v58, %v3994_v28  ;;  %v4287_v28 = vmax.f32 %v7965_v8, 0.0 }
 0x56e   : > { %v4290_v9 = vmax.f32 %v4200_v53, 0.0  ;;  %v4318_v53 = vadd.f32 1.0, %v4286_v37 }
 0x56f   : > { %v4289_v4 = vmax.f32 %v4195_v49, 0.0  ;;  %v4745_v46 = vpop.f32.mrb[60].mxu0  ;;  %4344 = vxpose.xlu1.b32.cont [8/16] (narrow) %v4312_v25, 64 }
 0x570   : > { %v4210_v60 = vadd.f32 %v4745_v46, %v3985_v14  ;;  %v4204_v13 = vpop.f32.mrb[61].mxu0  ;;  %v4322_v24 = vadd.f32 1.0, %v4290_v9 }
 0x571   : > { %v4321_v11 = vadd.f32 1.0, %v4289_v4  ;;  %v4205_v18 = vadd.f32 %v4204_v13, %v3980_v33  ;;  %v4288_v33 = vmax.f32 %v7963_v63, 0.0  ;;  %v4319_v4 = vadd.f32 1.0, %v4287_v28 }
 0x572   : > { %v4292_v12 = vmax.f32 %v4210_v60, 0.0 }
 0x573   : > { %v3999_v23 = vpop.f32.mrb[34].mxu1  ;;  %v4748_v55 = vpop.f32.mrb[62].mxu0  ;;  %4369 = vxpose.xlu0.b32.start [1/16] (narrow) %v4321_v11, 64  ;;  %4345 = vxpose.xlu1.b32.cont [9/16] (narrow) %v4313_v44, 64  ;;  %v4291_v2 = vmax.f32 %v4205_v18, 0.0  ;;  %v4320_v13 = vadd.f32 1.0, %v4288_v33 }
 0x574   : > { %v4220_v27 = vadd.f32 %v4748_v55, %v3995_v0  ;;  %v4001_v26 = vpop.f32.mrb[35].mxu1  ;;  %v4214_v38 = vpop.f32.mrb[63].mxu0  ;;  %v4000_v56 = vadd.f32 %v7926_v58, %v3999_v23  ;;  %v4324_v43 = vadd.f32 1.0, %v4292_v12 }
 0x575   : > { %v4215_v16 = vadd.f32 %v4214_v38, %v3990_v7  ;;  %v4323_v19 = vadd.f32 1.0, %v4291_v2 }
 0x576   : > { %v4294_v35 = vmax.f32 %v4220_v27, 0.0 }
 0x577   : > { %v4751_v57 = vpop.f32.mrb[64].mxu0  ;;  %4370 = vxpose.xlu0.b32.cont [2/16] (narrow) %v4322_v24, 64  ;;  %4346 = vxpose.xlu1.b32.cont [10/16] (narrow) %v4314_v1, 64  ;;  %v4293_v39 = vmax.f32 %v4215_v16, 0.0 }
 0x578   : > { %v4004_v20 = vpop.f32.mrb[36].mxu1  ;;  %v4224_v22 = vpop.f32.mrb[65].mxu0  ;;  %v4326_v40 = vadd.f32 1.0, %v4294_v35 }
 0x579   : > { %v4005_v29 = vadd.f32 %v7926_v58, %v4004_v20  ;;  %v4225_v47 = vadd.f32 %v4224_v22, %v4000_v56  ;;  %v4006_v5 = vpop.f32.mrb[37].mxu1  ;;  %v4325_v31 = vadd.f32 1.0, %v4293_v39 }
 0x57b   : > { %v4230_v54 = vadd.f32 %v4751_v57, %v4005_v29  ;;  %v4754_v59 = vpop.f32.mrb[66].mxu0  ;;  %4371 = vxpose.xlu0.b32.cont [3/16] (narrow) %v4323_v19, 64  ;;  %4347 = vxpose.xlu1.b32.cont [11/16] (narrow) %v4315_v52, 64  ;;  %v4295_v25 = vmax.f32 %v4225_v47, 0.0 }
 0x57c   : > { %v4234_v17 = vpop.f32.mrb[67].mxu0 }
 0x57d   : > { %v4296_v46 = vmax.f32 %v4230_v54, 0.0  ;;  %v4327_v42 = vadd.f32 1.0, %v4295_v25 }
 0x57f   : > { %v4757_v15 = vpop.f32.mrb[68].mxu0  ;;  %4372 = vxpose.xlu0.b32.cont [4/16] (narrow) %v4324_v43, 64  ;;  %4348 = vxpose.xlu1.b32.cont [12/16] (narrow) %v4316_v3, 64  ;;  %v4328_v8 = vadd.f32 1.0, %v4296_v46 }
 0x580   : > { %v4244_v61 = vpop.f32.mrb[69].mxu0 }
 0x581   : > { %v4009_v34 = vpop.f32.mrb[38].mxu1 }
 0x582   : > { %v4010_v62 = vadd.f32 %v7926_v58, %v4009_v34  ;;  %v4011_v51 = vpop.f32.mrb[39].mxu1 }
 0x583   : > { %v4760_v21 = vpop.f32.mrb[70].mxu0  ;;  %4373 = vxpose.xlu0.b32.cont [5/16] (narrow) %v4325_v31, 64  ;;  %4349 = vxpose.xlu1.b32.cont [13/16] (narrow) %v4317_v32, 64 }
 0x584   : > { %v4235_v45 = vadd.f32 %v4234_v17, %v4010_v62  ;;  %v4254_v36 = vpop.f32.mrb[71].mxu0 }
 0x586   : > { %v4297_v44 = vmax.f32 %v4235_v45, 0.0 }
 0x587   : > { %4374 = vxpose.xlu0.b32.cont [6/16] (narrow) %v4326_v40, 64  ;;  %4350 = vxpose.xlu1.b32.cont [14/16] (narrow) %v4318_v53, 64  ;;  %v4763_v41 = vpop.f32.mrb[72].mxu0 }
 0x588   : > { %v4014_v48 = vpop.f32.mrb[40].mxu1  ;;  %v4264_v14 = vpop.f32.mrb[73].mxu0  ;;  %v4329_v9 = vadd.f32 1.0, %v4297_v44 }
 0x589   : > { %v4015_v49 = vadd.f32 %v7926_v58, %v4014_v48  ;;  %v4016_v50 = vpop.f32.mrb[41].mxu1 }
 0x58b   : > { %v4240_v60 = vadd.f32 %v4754_v59, %v4015_v49  ;;  %4375 = vxpose.xlu0.b32.cont [7/16] (narrow) %v4327_v42, 64  ;;  %4351 = vxpose.xlu1.b32.cont [15/16] (narrow) %v4319_v4, 64 }
 0x58d   : > { %v4298_v11 = vmax.f32 %v4240_v60, 0.0 }
 0x58f   : > { %4376 = vxpose.xlu0.b32.cont [8/16] (narrow) %v4328_v8, 64  ;;  %4352 = vxpose.xlu1.b32.end [16/16] (narrow) %v4320_v13, 64  ;;  %v4330_v0 = vadd.f32 1.0, %v4298_v11 }
 0x593   : > { %4377 = vxpose.xlu0.b32.cont [9/16] (narrow) %v4329_v9, 64 }
 0x595   : > { %v4019_v18 = vpop.f32.mrb[42].mxu1 }
 0x596   : > { %v4020_v7 = vadd.f32 %v7926_v58, %v4019_v18  ;;  %v4021_v23 = vpop.f32.mrb[43].mxu1 }
 0x597   : > { %4378 = vxpose.xlu0.b32.cont [10/16] (narrow) %v4330_v0, 64 }
 0x598   : > { %v4245_v63 = vadd.f32 %v4244_v61, %v4020_v7 }
 0x59a   : > { %v4299_v55 = vmax.f32 %v4245_v63, 0.0 }
 0x59c   : > { %v4331_v30 = vadd.f32 1.0, %v4299_v55  ;;  %v4024_v27 = vpop.f32.mrb[44].mxu1 }
 0x59d   : > { %v4025_v26 = vadd.f32 %v7926_v58, %v4024_v27  ;;  %v4026_v38 = vpop.f32.mrb[45].mxu1 }
 0x59e   : > { %4379 = vxpose.xlu0.b32.cont [11/16] (narrow) %v4331_v30, 64 }
 0x59f   : > { %v4250_v1 = vadd.f32 %v4757_v15, %v4025_v26 }
 0x5a1   : > { %v4300_v24 = vmax.f32 %v4250_v1, 0.0 }
 0x5a3   : > { %v4332_v2 = vadd.f32 1.0, %v4300_v24 }
 0x5a5   : > { %4380 = vxpose.xlu0.b32.cont [12/16] (narrow) %v4332_v2, 64 }
 0x5a9   : > { %v4029_v16 = vpop.f32.mrb[46].mxu1 }
 0x5aa   : > { %v4030_v56 = vadd.f32 %v7926_v58, %v4029_v16  ;;  %v4031_v57 = vpop.f32.mrb[47].mxu1 }
 0x5ac   : > { %v4255_v10 = vadd.f32 %v4254_v36, %v4030_v56 }
 0x5ae   : > { %v4301_v52 = vmax.f32 %v4255_v10, 0.0 }
 0x5b0   : > { %v4333_v20 = vadd.f32 1.0, %v4301_v52  ;;  %v4034_v22 = vpop.f32.mrb[48].mxu1 }
 0x5b1   : > { %v4035_v12 = vadd.f32 %v7926_v58, %v4034_v22  ;;  %v4036_v19 = vpop.f32.mrb[49].mxu1 }
 0x5b2   : > { %4381 = vxpose.xlu0.b32.cont [13/16] (narrow) %v4333_v20, 64 }
 0x5b3   : > { %v4260_v29 = vadd.f32 %v4760_v21, %v4035_v12 }
 0x5b5   : > { %v4302_v47 = vmax.f32 %v4260_v29, 0.0  ;;  %v4039_v5 = vpop.f32.mrb[50].mxu1 }
 0x5b6   : > { %v4040_v54 = vadd.f32 %v7926_v58, %v4039_v5  ;;  %v4041_v59 = vpop.f32.mrb[51].mxu1 }
 0x5b7   : > { %v4334_v17 = vadd.f32 1.0, %v4302_v47 }
 0x5b8   : > { %v4265_v3 = vadd.f32 %v4264_v14, %v4040_v54 }
 0x5b9   : > { %4382 = vxpose.xlu0.b32.cont [14/16] (narrow) %v4334_v17, 64 }
 0x5ba   : > { %v4303_v6 = vmax.f32 %v4265_v3, 0.0 }
 0x5bc   : > { %v4335_v43 = vadd.f32 1.0, %v4303_v6  ;;  %v4044_v39 = vpop.f32.mrb[52].mxu1 }
 0x5bd   : > { %v4045_v15 = vadd.f32 %v7926_v58, %v4044_v39  ;;  %v4046_v37 = vpop.f32.mrb[53].mxu1 }
 0x5be   : > { %4383 = vxpose.xlu0.b32.cont [15/16] (narrow) %v4335_v43, 64 }
 0x5bf   : > { %v4270_v34 = vadd.f32 %v4763_v41, %v4045_v15 }
 0x5c1   : > { %v4304_v61 = vmax.f32 %v4270_v34, 0.0 }
 0x5c3   : > { %v4336_v32 = vadd.f32 1.0, %v4304_v61 }
 0x5c5   : > { %4384 = vxpose.xlu0.b32.end [16/16] (narrow) %v4336_v32, 64 }
 0x5d3   : > { %v4353_v58 = vpop.trf.xlu1 }
 0x5d4   : > { %4401 = vst [vmem:[%s7995_s30] sm:$0xff] %v4353_v58 }
 0x5d7   : > { %v4354_v35 = vpop.trf.xlu1 }
 0x5d8   : > { %4403 = vst [vmem:[%s7995_s30 + $0x10] sm:$0xff] %v4354_v35 }
 0x5db   : > { %v4355_v31 = vpop.trf.xlu1 }
 0x5dc   : > { %4405 = vst [vmem:[%s7995_s30 + $0x20] sm:$0xff] %v4355_v31 }
 0x5df   : > { %v4356_v62 = vpop.trf.xlu1 }
 0x5e0   : > { %4407 = vst [vmem:[%s7995_s30 + $0x30] sm:$0xff] %v4356_v62 }
 0x5e3   : > { %v4357_v51 = vpop.trf.xlu1 }
 0x5e4   : > { %4409 = vst [vmem:[%s7995_s30 + $0x40] sm:$0xff] %v4357_v51 }
 0x5e7   : > { %v4358_v45 = vpop.trf.xlu1 }
 0x5e8   : > { %4411 = vst [vmem:[%s7995_s30 + $0x50] sm:$0xff] %v4358_v45 }
 0x5eb   : > { %v4359_v21 = vpop.trf.xlu1 }
 0x5ec   : > { %4413 = vst [vmem:[%s7995_s30 + $0x60] sm:$0xff] %v4359_v21 }
 0x5ef   : > { %v4360_v36 = vpop.trf.xlu1 }
 0x5f0   : > { %4415 = vst [vmem:[%s7995_s30 + $0x70] sm:$0xff] %v4360_v36 }
 0x609   : > { %v4385_v53 = vpop.trf.xlu0 }
 0x60a   : > { %4402 = vst [vmem:[%s7995_s30 + $0x8] sm:$0xff] %v4385_v53 }
 0x60d   : > { %v4386_v28 = vpop.trf.xlu0 }
 0x60e   : > { %4404 = vst [vmem:[%s7995_s30 + $0x18] sm:$0xff] %v4386_v28 }
 0x611   : > { %v4387_v40 = vpop.trf.xlu0 }
 0x612   : > { %4406 = vst [vmem:[%s7995_s30 + $0x28] sm:$0xff] %v4387_v40 }
 0x615   : > { %v4388_v25 = vpop.trf.xlu0 }
 0x616   : > { %4408 = vst [vmem:[%s7995_s30 + $0x38] sm:$0xff] %v4388_v25 }
 0x619   : > { %v4389_v48 = vpop.trf.xlu0 }
 0x61a   : > { %4410 = vst [vmem:[%s7995_s30 + $0x48] sm:$0xff] %v4389_v48 }
 0x61d   : > { %v4390_v41 = vpop.trf.xlu0 }
 0x61e   : > { %4412 = vst [vmem:[%s7995_s30 + $0x58] sm:$0xff] %v4390_v41 }
 0x621   : > { %v4391_v49 = vpop.trf.xlu0 }
 0x622   : > { %4414 = vst [vmem:[%s7995_s30 + $0x68] sm:$0xff] %v4391_v49 }
 0x625   : > { %v4392_v50 = vpop.trf.xlu0 }
 0x626   : > { %4416 = vst [vmem:[%s7995_s30 + $0x78] sm:$0xff] %v4392_v50 }
 0x627 PF: > { %s16_s18 = sadd.s32 1, %s5444_s18  }
 0x628   : > { %p13_p2 = scmp.ge.s32.totalorder %s16_s18, 4  }
 0x62a   :  { %15 = sbr.rel (!%p13_p2) target bundleno = 1 (0x1), region = 79 }
 0x631   :  { %4438 = vsyncpa [#allocation5], 1 }
 0x632   :  { %4440 = vsyncpa [#allocation5 + $0x1], 1 }

</bundles_post_ra>
